<compile_context>
chip_gen: v5e
topology: v5e:2x2
jax: 0.10.0
libtpu: 0.0.40
codegen_flags: <defaults>
</compile_context>

<pallas_src>
import math

import jax
import jax.numpy as jnp
from jax.experimental import pallas as pl
from jax.experimental.pallas import tpu as pltpu

_INV_SQRT2 = 1.0 / math.sqrt(2.0)


def _round_up(x, m):
    return ((x + m - 1) // m) * m


def _mlp_kernel(x_ref, w1_ref, b1_ref, w2_ref, b2_ref, o_ref):
    # x_ref : (tm, C_in) tile of flattened tokens (native dtype)
    # w1_ref: (C_in, C_hidden)   (pre-transposed vs PyTorch's (out, in))
    # b1_ref: (1, C_hidden)
    # w2_ref: (C_hidden, C_out)
    # b2_ref: (1, C_out)
    # o_ref : (tm, C_out)

    # fc1: native-dtype MXU matmul, f32 accumulation.
    h = jnp.dot(x_ref[...], w1_ref[...], preferred_element_type=jnp.float32)
    h = h + b1_ref[...].astype(jnp.float32)          # bias broadcast in f32

    # Exact erf-based GELU (matches torch.nn.GELU default), computed in f32.
    h = 0.5 * h * (1.0 + jax.lax.erf(h * _INV_SQRT2))

    # dropout(p=0.0) == identity

    # fc2: cast activation back to the weight dtype so bf16 weights keep
    # full bf16 MXU throughput; accumulate in f32.
    h = h.astype(w2_ref.dtype)
    o = jnp.dot(h, w2_ref[...], preferred_element_type=jnp.float32)
    o = o + b2_ref[...].astype(jnp.float32)

    o_ref[...] = o.astype(o_ref.dtype)


def mlp_pallas(x, w1, b1, w2, b2, H, W, *, tile_m=256):
    """x: (B, N, C_in) with N == H*W.  Returns (B, N, C_out).

    Weights are stored pre-transposed: w1 (C_in, C_hidden), w2 (C_hidden, C_out);
    biases are (1, C_hidden) / (1, C_out).
    """
    B, N, C_in = x.shape
    assert N == H * W
    C_hidden = w1.shape[1]
    C_out = w2.shape[1]
    assert tile_m % 8 == 0, "tile_m must be sublane-aligned (multiple of 8)"

    M = B * N
    x2d = x.reshape(M, C_in)                      # free reshape, no copy

    # Clamp the M-tile to the (sublane-aligned) problem size; ragged final
    # blocks are masked by Pallas, so no host-side pad/slice is needed.
    tm = min(tile_m, _round_up(M, 8))
    grid = (pl.cdiv(M, tm),)

    # VMEM budget: double-buffered x/out tiles, (default double-buffered)
    # resident weights/biases, plus the f32 intermediates.
    isz_x = jnp.dtype(x.dtype).itemsize
    isz_w = jnp.dtype(w1.dtype).itemsize
    needed = (
        2 * tm * C_in * isz_x                          # x tile (x2 buffers)
        + 2 * tm * C_out * isz_x                       # out tile (x2 buffers)
        + 2 * (C_in * C_hidden + C_hidden
               + C_hidden * C_out + C_out) * isz_w     # weights + biases
        + tm * C_hidden * 4                            # fc1/GELU intermediate (f32)
        + tm * C_out * 4                               # fc2 accumulator (f32)
    )
    # Cap at 64 MiB so the same configuration remains valid on v7x.
    # TODO(synk): for very large C_hidden (weights that don't fit VMEM), add a
    # hidden-dimension grid axis with an f32 accumulator + pl.when finalize.
    vmem_limit = int(min(max(int(needed * 1.25), 32 * 1024 * 1024),
                         64 * 1024 * 1024))

    out2d = pl.pallas_call(
        _mlp_kernel,
        out_shape=jax.ShapeDtypeStruct((M, C_out), x.dtype),
        grid_spec=pltpu.PrefetchScalarGridSpec(
            num_scalar_prefetch=0,
            grid=grid,
            in_specs=[
                pl.BlockSpec((tm, C_in), lambda i: (i, 0)),
                # Weight / bias blocks are grid-invariant ((0,0) every step):
                # the pipeline keeps them resident and does not re-DMA them.
                pl.BlockSpec((C_in, C_hidden), lambda i: (0, 0)),
                pl.BlockSpec((1, C_hidden), lambda i: (0, 0)),
                pl.BlockSpec((C_hidden, C_out), lambda i: (0, 0)),
                pl.BlockSpec((1, C_out), lambda i: (0, 0)),
            ],
            out_specs=pl.BlockSpec((tm, C_out), lambda i: (i, 0)),
        ),
        compiler_params=pltpu.CompilerParams(
            dimension_semantics=("parallel",),
            vmem_limit_bytes=vmem_limit,
        ),
    )(x2d, w1, b1, w2, b2)

    return out2d.reshape(B, N, C_out)


def init_mlp_params(key, in_features, hidden_features, out_features,
                    dtype=jnp.float32):
    """Deterministic init mimicking nn.Linear defaults.
    Weights are stored pre-transposed: (in, out)."""
    k1, k2, k3, k4 = jax.random.split(key, 4)
    bound1 = 1.0 / math.sqrt(in_features)
    bound2 = 1.0 / math.sqrt(hidden_features)
    w1 = jax.random.uniform(k1, (in_features, hidden_features),
                            minval=-bound1, maxval=bound1, dtype=dtype)
    b1 = jax.random.uniform(k2, (1, hidden_features),
                            minval=-bound1, maxval=bound1, dtype=dtype)
    w2 = jax.random.uniform(k3, (hidden_features, out_features),
                            minval=-bound2, maxval=bound2, dtype=dtype)
    b2 = jax.random.uniform(k4, (1, out_features),
                            minval=-bound2, maxval=bound2, dtype=dtype)
    return w1, b1, w2, b2


def mlp_reference(x, w1, b1, w2, b2):
    h = jnp.dot(x, w1) + b1[0]
    h = 0.5 * h * (1.0 + jax.lax.erf(h * _INV_SQRT2))
    return jnp.dot(h, w2) + b2[0]


if __name__ == "__main__":
    key = jax.random.PRNGKey(0)
    kx, kp = jax.random.split(key)

    # Small shapes consistent with the module's forward(x, H, W).
    # Channel dims are multiples of 128 (lane-dense stores); M = B*N = 512
    # gives a 2-step grid at tile_m=256.
    B, H, W = 2, 16, 16
    N = H * W
    in_features, hidden_features, out_features = 128, 256, 128

    x = jax.random.normal(kx, (B, N, in_features), dtype=jnp.float32)
    w1, b1, w2, b2 = init_mlp_params(kp, in_features, hidden_features,
                                     out_features)

    # --- float32 path ---
    out = mlp_pallas(x, w1, b1, w2, b2, H, W)
    out = jax.block_until_ready(out)
    ref = mlp_reference(x, w1, b1, w2, b2)
    assert out.shape == (B, N, out_features)
    assert jnp.allclose(out, ref, atol=1e-4, rtol=1e-4), "f32 mismatch vs reference"

    # --- bfloat16 path (native bf16 MXU matmuls, f32 accumulation) ---
    xb = x.astype(jnp.bfloat16)
    w1b, b1b, w2b, b2b = (t.astype(jnp.bfloat16) for t in (w1, b1, w2, b2))
    out_bf16 = jax.block_until_ready(mlp_pallas(xb, w1b, b1b, w2b, b2b, H, W))
    ref_bf16 = mlp_reference(xb.astype(jnp.float32), w1b.astype(jnp.float32),
                             b1b.astype(jnp.float32), w2b.astype(jnp.float32),
                             b2b.astype(jnp.float32))
    assert out_bf16.dtype == jnp.bfloat16
    assert jnp.allclose(out_bf16.astype(jnp.float32), ref_bf16,
                        atol=2e-2, rtol=2e-2), "bf16 mismatch vs reference"

    print("KERNEL_OK")
</pallas_src>

<mosaic_0001>
module attributes {stable_mosaic.version = 11 : i64} {
  func.func @_mlp_kernel(%arg0: i32, %arg1: memref<256x128xf32, #tpu.memory_space<vmem>>, %arg2: memref<128x256xf32, #tpu.memory_space<vmem>>, %arg3: memref<1x256xf32, #tpu.memory_space<vmem>>, %arg4: memref<256x128xf32, #tpu.memory_space<vmem>>, %arg5: memref<1x128xf32, #tpu.memory_space<vmem>>, %arg6: memref<256x128xf32, #tpu.memory_space<vmem>>) attributes {dimension_semantics = [#tpu.dimension_semantics<parallel>], iteration_bounds = array<i64: 2>, scalar_prefetch = 0 : i64, scratch_operands = 0 : i64, tpu.core_type = #tpu.core_type<tc>, window_params = [{transform_indices = @transform_0, window_bounds = array<i64: 256, 128>}, {pipeline_mode = #tpu.pipeline_mode<synchronous>, transform_indices = @transform_1, window_bounds = array<i64: 128, 256>}, {pipeline_mode = #tpu.pipeline_mode<synchronous>, transform_indices = @transform_2, window_bounds = array<i64: 1, 256>}, {pipeline_mode = #tpu.pipeline_mode<synchronous>, transform_indices = @transform_3, window_bounds = array<i64: 256, 128>}, {pipeline_mode = #tpu.pipeline_mode<synchronous>, transform_indices = @transform_4, window_bounds = array<i64: 1, 128>}, {transform_indices = @transform_5, window_bounds = array<i64: 256, 128>}]} {
    %c0 = arith.constant 0 : index
    %c0_0 = arith.constant 0 : index
    %0 = vector.load %arg1[%c0, %c0_0] : memref<256x128xf32, #tpu.memory_space<vmem>>, vector<256x128xf32>
    %c0_1 = arith.constant 0 : index
    %c0_2 = arith.constant 0 : index
    %1 = vector.load %arg2[%c0_1, %c0_2] : memref<128x256xf32, #tpu.memory_space<vmem>>, vector<128x256xf32>
    %cst = arith.constant dense<0.000000e+00> : vector<256x256xf32>
    %2 = tpu.matmul %0, %1, %cst {dimension_numbers = #tpu.dot_dimension_numbers<[1], [0], [0], [1], [0, 0, 1, 1], [], []>} : vector<256x128xf32>, vector<128x256xf32>, vector<256x256xf32> -> vector<256x256xf32>
    %c0_3 = arith.constant 0 : index
    %c0_4 = arith.constant 0 : index
    %3 = vector.load %arg3[%c0_3, %c0_4] : memref<1x256xf32, #tpu.memory_space<vmem>>, vector<1x256xf32>
    %4 = vector.broadcast %3 : vector<1x256xf32> to vector<256x256xf32>
    %5 = arith.addf %2, %4 : vector<256x256xf32>
    %cst_5 = arith.constant 5.000000e-01 : f32
    %6 = vector.broadcast %cst_5 : f32 to vector<256x256xf32>
    %7 = arith.mulf %6, %5 : vector<256x256xf32>
    %cst_6 = arith.constant 0.707106769 : f32
    %8 = vector.broadcast %cst_6 : f32 to vector<256x256xf32>
    %9 = arith.mulf %5, %8 : vector<256x256xf32>
    %10 = math.erf %9 : vector<256x256xf32>
    %cst_7 = arith.constant 1.000000e+00 : f32
    %11 = vector.broadcast %cst_7 : f32 to vector<256x256xf32>
    %12 = arith.addf %11, %10 : vector<256x256xf32>
    %13 = arith.mulf %7, %12 : vector<256x256xf32>
    %c0_8 = arith.constant 0 : index
    %c0_9 = arith.constant 0 : index
    %14 = vector.load %arg4[%c0_8, %c0_9] : memref<256x128xf32, #tpu.memory_space<vmem>>, vector<256x128xf32>
    %cst_10 = arith.constant dense<0.000000e+00> : vector<256x128xf32>
    %15 = tpu.matmul %13, %14, %cst_10 {dimension_numbers = #tpu.dot_dimension_numbers<[1], [0], [0], [1], [0, 0, 1, 1], [], []>} : vector<256x256xf32>, vector<256x128xf32>, vector<256x128xf32> -> vector<256x128xf32>
    %c0_11 = arith.constant 0 : index
    %c0_12 = arith.constant 0 : index
    %16 = vector.load %arg5[%c0_11, %c0_12] : memref<1x128xf32, #tpu.memory_space<vmem>>, vector<1x128xf32>
    %17 = vector.broadcast %16 : vector<1x128xf32> to vector<256x128xf32>
    %18 = arith.addf %15, %17 : vector<256x128xf32>
    %c0_13 = arith.constant 0 : index
    %c0_14 = arith.constant 0 : index
    %19 = vector.load %arg6[%c0_13, %c0_14] : memref<256x128xf32, #tpu.memory_space<vmem>>, vector<256x128xf32>
    tpu.vector_store %arg6[%c0_13, %c0_14], %18 {strides = array<i32>} : memref<256x128xf32, #tpu.memory_space<vmem>>, vector<256x128xf32>,
    return
  }
  func.func @transform_0(%arg0: i32) -> (i32, i32) {
    %c0_i32 = arith.constant 0 : i32
    %c0_i32_0 = arith.constant 0 : i32
    return %arg0, %c0_i32 : i32, i32
  }
  func.func @transform_1(%arg0: i32) -> (i32, i32) {
    %c0_i32 = arith.constant 0 : i32
    %c0_i32_0 = arith.constant 0 : i32
    %c0_i32_1 = arith.constant 0 : i32
    return %c0_i32, %c0_i32_0 : i32, i32
  }
  func.func @transform_2(%arg0: i32) -> (i32, i32) {
    %c0_i32 = arith.constant 0 : i32
    %c0_i32_0 = arith.constant 0 : i32
    %c0_i32_1 = arith.constant 0 : i32
    return %c0_i32, %c0_i32_0 : i32, i32
  }
  func.func @transform_3(%arg0: i32) -> (i32, i32) {
    %c0_i32 = arith.constant 0 : i32
    %c0_i32_0 = arith.constant 0 : i32
    %c0_i32_1 = arith.constant 0 : i32
    return %c0_i32, %c0_i32_0 : i32, i32
  }
  func.func @transform_4(%arg0: i32) -> (i32, i32) {
    %c0_i32 = arith.constant 0 : i32
    %c0_i32_0 = arith.constant 0 : i32
    %c0_i32_1 = arith.constant 0 : i32
    return %c0_i32, %c0_i32_0 : i32, i32
  }
  func.func @transform_5(%arg0: i32) -> (i32, i32) {
    %c0_i32 = arith.constant 0 : i32
    %c0_i32_0 = arith.constant 0 : i32
    return %arg0, %c0_i32 : i32, i32
  }
}

</mosaic_0001>

<bundles_post_ra>
// kernel: tpu_custom_call.1
= control target key start
LH: loop header
LB: loop body
LE: loop exit
PB: predicated region body
PF: predicated region fallthrough
CT: control target
= control target key end

     0   :  { %10 = vsyncpa [#allocation3], 0  ;;  %s7424_s0 = inlined_call_operand.hbm [shape: f32[512,128], index: 0, kind: input, shape index: {}]   ;;  %s7425_s1 = inlined_call_operand.hbm [shape: f32[128,256], index: 1, kind: input, shape index: {}]   ;;  %s7426_s2 = inlined_call_operand.hbm [shape: f32[1,256], index: 2, kind: input, shape index: {}]   ;;  %s7427_s3 = inlined_call_operand.hbm [shape: f32[256,128], index: 3, kind: input, shape index: {}]   ;;  %s7428_s4 = inlined_call_operand.vmem [shape: f32[1,128], index: 4, kind: input, shape index: {}]   ;;  %s7429_s5 = inlined_call_operand.hbm [shape: f32[512,128], index: 5, kind: output, shape index: {}]  }
   0x1   :  { %12 = vsyncpa [#allocation3 + $0x1], 0 }
   0x2   :  { %13 = vsyncpa [#allocation6], 0 }
   0x3   :  { %14 = vsyncpa [#allocation9], 0 }
   0x4   :  { %15 = vsyncpa [#allocation4], 0 }
   0x5   :  { %17 = vsyncpa [#allocation4 + $0x1], 0  ;;  %s4354_s18 = smov 0   ;;  %s4356_s19 = smov 0  }
   0x6   :  { %s4358_s20 = smov 0   ;;  %s4360_s21 = smov 0  }
   0x7 LB: > { %s4375_s22 = sadd.s32 4294967295, %s4313_s21   ;;  %s3819_s23 = sadd.s32 4294967294, %s4313_s21   ;;  %s4313_s21 = sphi %s4360_s21, %s7622_s21   ;;  %s4309_s20 = sphi %s4358_s20, %s7621_s20   ;;  %s4305_s19 = sphi %s4356_s19, %s7620_s19   ;;  %s4301_s18 = sphi %s4354_s18, %s7619_s18  }
   0x8   : > { %p43_p0 = scmp.ne.s32.totalorder %s4305_s19, %s4301_s18  ;;  %p44_p1 = scmp.eq.s32.totalorder %s4375_s22, 0 }
   0x9   : > { %p151_p2 = scmp.eq.s32.totalorder %s4375_s22, 1  ;;  %p157_p3 = scmp.eq.s32.totalorder %s3819_s23, 1 }
   0xa   : > { %p4384_p4 = por %p44_p1, %p43_p0  ;;  %p3820_p5 = scmp.ge.s32.totalorder %s4313_s21, 1 }
   0xb   : > { %p4389_p6 = por %p157_p3, %p43_p0  ;;  %p164_p7 = scmp.lt.s32.totalorder %s4313_s21, 3 }
   0xc   : > { %s175_s28 = sshll.u32 %s7425_s1, 4  ;;  %s4315_s30 = smov [#allocation5]   ;;  %s176_s28 = int_to_ptr.hbm [resolvable:$true] %s175_s28 }
   0xd   : > { %p4397_p8 = pnand %p3820_p5, %p164_p7  ;;  %s177_s6 = sshll.u32 %s4315_s30, 4  ;;  %s178_s6 = int_to_ptr.vmem [resolvable:$true] %s177_s6 }
   0xe   : > { %s190_s10 = sshll.u32 %s7426_s2, 4  ;;  %s4316_s11 = smov 256   ;;  %s191_s10 = int_to_ptr.hbm [resolvable:$true] %s190_s10 }
   0xf   : > { %p3921_p9 = pneg %p4397_p8  ;;  %s4317_s12 = smov 16  }
  0x10   : > { %s4318_s13 = smov [#allocation7]   ;;  %s201_s17 = sshll.u32 %s7427_s3, 4  ;;  %s202_s17 = int_to_ptr.hbm [resolvable:$true] %s201_s17 }
  0x11   : > { %p4405_p10 = pnand %p3921_p9, %p44_p1  ;;  %s192_s14 = sshll.u32 %s4318_s13, 4  ;;  %s193_s14 = int_to_ptr.vmem [resolvable:$true] %s192_s14 }
  0x12   : > { %s4319_s23 = smov [#allocation8]   ;;  %s7430_s27 = smov 128  }
  0x13   : > { %3924 = dma.hbm_to_vmem [thread:$0]  (!%p4405_p10), %s176_s28, 4096, %s178_s6, [#allocation6], %s4316_s11, %s4316_s11, %s4317_s12  }
  0x14   : > { %3927 = dma.hbm_to_vmem [thread:$0]  (!%p4405_p10), %s191_s10, 32, %s193_s14, [#allocation6]  }
  0x15   : > { %s203_s26 = sshll.u32 %s4319_s23, 4  ;;  %s4321_s28 = smov 8   ;;  %s204_s26 = int_to_ptr.vmem [resolvable:$true] %s203_s26 }
  0x16   : > { %3930 = dma.hbm_to_vmem [thread:$0]  (!%p4405_p10), %s202_s17, 4096, %s204_s26, [#allocation9], %s7430_s27, %s7430_s27, %s4321_s28  }
  0x17   : > { %s4426_s30 = sadd.s32 1, %s4313_s21   ;;  %s30_s8 = sadd.s32 1, %s4309_s20 }
  0x18   : > { %s27_s6 = ssub.s32 %s4313_s21, %s4426_s30  ;;  %p37_p13 = scmp.ne.s32.totalorder %s4309_s20, %s4305_s19 }
  0x19   : > { %p28_p12 = scmp.eq.s32.totalorder %s27_s6, 0  ;;  %p38_p0 = scmp.eq.s32.totalorder %s4313_s21, 0 }
  0x1a   : > { %p4439_p3 = por %p151_p2, %p37_p13  ;;  %p3942_p5 = scmp.lt.s32.totalorder %s4313_s21, 2 }
  0x1b   : > { %s4435_s9 = scalar_select %p28_p12, %s4309_s20, %s30_s8  }
  0x1c   : > { %s220_s7 = sand.u32 1, %s4309_s20   ;;  %s3903_s11 = sshll.u32 %s4313_s21, 8 }
  0x1d   : > { %p39_p7 = por %p38_p0, %p37_p13  ;;  %s3825_s12 = sshll.u32 %s220_s7, 8 }
  0x1e   : > { %s229_s15 = scalar_lea.hbm %s7424_s0, %s3903_s11  ;;  %s224_s17 = scalar_lea.vmem [#allocation2], %s3825_s12 }
  0x1f   : > { %s230_s16 = sshll.u32 %s229_s15, 4  ;;  %s232_s23 = sshll.u32 %s224_s17, 4  ;;  %s231_s16 = int_to_ptr.hbm [resolvable:$true] %s230_s16  ;;  %s233_s23 = int_to_ptr.vmem [resolvable:$true] %s232_s23 }
  0x20   : > { %p4449_p9 = pnand %p3942_p5, %p39_p7  ;;  %s221_s6 = scalar_lea.sflag [#allocation3], %s220_s7 }
  0x21   : > { %s4209_s8 = sshra.s32 %s231_s16, 4  ;;  %s4216_s12 = scalar_lea.hbm %s7424_s0, 512  ;;  %s4210_s8 = int_to_ptr.hbm [resolvable:$true] %s4209_s8 }
  0x22   : > { %s4211_s27 = scalar_lea.hbm %s4210_s8, 256  ;;  %p4213_p10 = pneg %p4449_p9 }
  0x23   : > { %p4212_p2 = scmp.ne.s32.totalorder %s4210_s8, %s4211_s27  ;;  %p4217_p0 = scmp.lt.s32.totalorder %s4210_s8, %s7424_s0 }
  0x24   : > { %p4218_p5 = scmp.lt.s32.totalorder %s4216_s12, %s4211_s27 }
  0x25   : > { %p4214_p12 = pnand %p4213_p10, %p4212_p2 }
  0x26   : > { %p4219_p7 = por %p4218_p5, %p4217_p0 }
  0x27   : > { %p4215_p13 = pneg %p4214_p12 }
  0x29   : > { %p4220_p11 = pnand %p4219_p7, %p4215_p13 }
  0x2b   : > { %4223 = shalt.err (!%p4220_p11)
}
  0x2c   : > { %s7459_s7 = smov 128   ;;  %244 = sbr.rel (%p4397_p8) target bundleno = 1078 (0x436), region = 40 }
  0x2d   : > { %3934 = dma.hbm_to_vmem [thread:$0]  (!%p4449_p9), %s231_s16, 4096, %s233_s23, %s221_s6, %s7459_s7, %s7459_s7, %s4321_s28  }
  0x31   : > { %s4469_s17 = sand.u32 1, %s4305_s19  }
  0x32   : > { %s3829_s27 = sshll.u32 %s4469_s17, 8  ;;  %s247_s8 = scalar_lea.sflag [#allocation3], %s4469_s17 }
  0x33   : > { %s4475_s11 = scalar_lea.vmem [#allocation2], %s3829_s27 }
  0x34   : > { %4284 = dma.done.wait (%p4384_p4), %s247_s8, 4096  }
  0x35   : > { %4286 = vsyncadd (%p4384_p4), %s247_s8, 4294963200 }
  0x36   : > { %4288 = dma.done.wait (%p44_p1), [#allocation6], 4128  }
  0x37   : > { %4290 = vsyncadd (%p44_p1), [#allocation6], 4294963168 }
  0x38   : > { %4292 = dma.done.wait (%p44_p1), [#allocation9], 4096  }
  0x39   : > { %4294 = vsyncadd (%p44_p1), [#allocation9], 4294963200  ;;  %v357_v0 = vld [vmem:[#allocation5 + $0xf0] sm:$0xff]  ;;  %v358_v1 = vld [vmem:[#allocation5 + $0xf8] sm:$0xff]  ;;  %s6046_s28 = scalar_lea.vmem [#allocation10], %s3829_s27  ;;  %s3904_s13 = sshll.u32 %s4375_s22, 8 }
  0x3a   : > { %v355_v2 = vld [vmem:[#allocation5 + $0xe0] sm:$0xff]  ;;  %365 = vmatpush.msra.mxu0 %v357_v0  ;;  %478 = vmatpush.msra.mxu1 %v358_v1  ;;  %v356_v3 = vld [vmem:[#allocation5 + $0xe8] sm:$0xff]  ;;  %v353_v4 = vld [vmem:[#allocation5 + $0xd0] sm:$0xff]  ;;  %s3713_s15 = scalar_lea.hbm %s7429_s5, %s3904_s13  ;;  %s3714_s7 = sshll.u32 %s6046_s28, 4  ;;  %s3715_s7 = int_to_ptr.vmem [resolvable:$true] %s3714_s7 }
  0x3b   : > { %v354_v5 = vld [vmem:[#allocation5 + $0xd8] sm:$0xff]  ;;  %v351_v6 = vld [vmem:[#allocation5 + $0xc0] sm:$0xff]  ;;  %v352_v7 = vld [vmem:[#allocation5 + $0xc8] sm:$0xff]  ;;  %s3716_s27 = sshll.u32 %s3713_s15, 4  ;;  %s3702_s8 = scalar_lea.sflag [#allocation4], %s4469_s17  ;;  %s3717_s27 = int_to_ptr.hbm [resolvable:$true] %s3716_s27 }
  0x3c   : > { %366 = vmatpush.msra.mxu0 %v355_v2  ;;  %479 = vmatpush.msra.mxu1 %v356_v3  ;;  %v349_v8 = vld [vmem:[#allocation5 + $0xb0] sm:$0xff]  ;;  %v350_v9 = vld [vmem:[#allocation5 + $0xb8] sm:$0xff]  ;;  %v347_v10 = vld [vmem:[#allocation5 + $0xa0] sm:$0xff]  ;;  %s4253_s22 = sshra.s32 %s3717_s27, 4  ;;  %s4259_s16 = scalar_lea.hbm %s7429_s5, 512  ;;  %s4254_s22 = int_to_ptr.hbm [resolvable:$true] %s4253_s22 }
  0x3d   : > { %v348_v11 = vld [vmem:[#allocation5 + $0xa8] sm:$0xff]  ;;  %v345_v12 = vld [vmem:[#allocation5 + $0x90] sm:$0xff]  ;;  %v346_v13 = vld [vmem:[#allocation5 + $0x98] sm:$0xff]  ;;  %p4260_p11 = scmp.lt.s32.totalorder %s4254_s22, %s7429_s5 }
  0x3e   : > { %367 = vmatpush.msra.mxu0 %v353_v4  ;;  %480 = vmatpush.msra.mxu1 %v354_v5  ;;  %v343_v14 = vld [vmem:[#allocation5 + $0x80] sm:$0xff]  ;;  %v344_v15 = vld [vmem:[#allocation5 + $0x88] sm:$0xff]  ;;  %v341_v16 = vld [vmem:[#allocation5 + $0x70] sm:$0xff] }
  0x3f   : > { %v342_v17 = vld [vmem:[#allocation5 + $0x78] sm:$0xff]  ;;  %v339_v18 = vld [vmem:[#allocation5 + $0x60] sm:$0xff]  ;;  %v340_v19 = vld [vmem:[#allocation5 + $0x68] sm:$0xff] }
  0x40   : > { %368 = vmatpush.msra.mxu0 %v351_v6  ;;  %481 = vmatpush.msra.mxu1 %v352_v7  ;;  %v337_v20 = vld [vmem:[#allocation5 + $0x50] sm:$0xff]  ;;  %v338_v21 = vld [vmem:[#allocation5 + $0x58] sm:$0xff]  ;;  %v335_v22 = vld [vmem:[#allocation5 + $0x40] sm:$0xff] }
  0x41   : > { %v336_v23 = vld [vmem:[#allocation5 + $0x48] sm:$0xff]  ;;  %v333_v24 = vld [vmem:[#allocation5 + $0x30] sm:$0xff]  ;;  %v334_v25 = vld [vmem:[#allocation5 + $0x38] sm:$0xff] }
  0x42   : > { %369 = vmatpush.msra.mxu0 %v349_v8  ;;  %482 = vmatpush.msra.mxu1 %v350_v9  ;;  %v331_v26 = vld [vmem:[#allocation5 + $0x20] sm:$0xff]  ;;  %v332_v27 = vld [vmem:[#allocation5 + $0x28] sm:$0xff]  ;;  %v329_v28 = vld [vmem:[#allocation5 + $0x10] sm:$0xff] }
  0x43   : > { %v330_v29 = vld [vmem:[#allocation5 + $0x18] sm:$0xff]  ;;  %v327_v30 = vld [vmem:[#allocation5] sm:$0xff]  ;;  %v328_v31 = vld [vmem:[#allocation5 + $0x8] sm:$0xff] }
  0x44   : > { %370 = vmatpush.msra.mxu0 %v347_v10  ;;  %483 = vmatpush.msra.mxu1 %v348_v11  ;;  %v295_v32 = vld [vmem:[%s4475_s11] sm:$0xff]  ;;  %v296_v33 = vld [vmem:[%s4475_s11 + $0x8] sm:$0xff]  ;;  %v297_v34 = vld [vmem:[%s4475_s11 + $0x10] sm:$0xff] }
  0x45   : > { %v298_v35 = vld [vmem:[%s4475_s11 + $0x18] sm:$0xff]  ;;  %v299_v36 = vld [vmem:[%s4475_s11 + $0x20] sm:$0xff]  ;;  %v300_v37 = vld [vmem:[%s4475_s11 + $0x28] sm:$0xff] }
  0x46   : > { %371 = vmatpush.msra.mxu0 %v345_v12  ;;  %484 = vmatpush.msra.mxu1 %v346_v13  ;;  %v301_v38 = vld [vmem:[%s4475_s11 + $0x30] sm:$0xff]  ;;  %v302_v39 = vld [vmem:[%s4475_s11 + $0x38] sm:$0xff]  ;;  %v303_v40 = vld [vmem:[%s4475_s11 + $0x40] sm:$0xff] }
  0x47   : > { %v304_v41 = vld [vmem:[%s4475_s11 + $0x48] sm:$0xff]  ;;  %v305_v42 = vld [vmem:[%s4475_s11 + $0x50] sm:$0xff]  ;;  %v306_v43 = vld [vmem:[%s4475_s11 + $0x58] sm:$0xff] }
  0x48   : > { %372 = vmatpush.msra.mxu0 %v343_v14  ;;  %485 = vmatpush.msra.mxu1 %v344_v15  ;;  %v307_v44 = vld [vmem:[%s4475_s11 + $0x60] sm:$0xff]  ;;  %v308_v45 = vld [vmem:[%s4475_s11 + $0x68] sm:$0xff]  ;;  %v309_v46 = vld [vmem:[%s4475_s11 + $0x70] sm:$0xff] }
  0x49   : > { %v3422_v47 = vld [vmem:[#allocation8 + $0x78] sm:$0xff]  ;;  %v3421_v51 = vld [vmem:[#allocation8 + $0x70] sm:$0xff]  ;;  %v3420_v54 = vld [vmem:[#allocation8 + $0x68] sm:$0xff] }
  0x4a   : > { %373 = vmatpush.msra.mxu0 %v341_v16  ;;  %486 = vmatpush.msra.mxu1 %v342_v17  ;;  %v3438_v48 = vld [vmem:[#allocation8 + $0xf8] sm:$0xff]  ;;  %v3437_v52 = vld [vmem:[#allocation8 + $0xf0] sm:$0xff]  ;;  %v3436_v55 = vld [vmem:[#allocation8 + $0xe8] sm:$0xff] }
  0x4b   : > { %v310_v49 = vld [vmem:[%s4475_s11 + $0x78] sm:$0xff]  ;;  %3443 = vmatpush.msra.mxu2 %v3422_v47  ;;  %3556 = vmatpush.msra.mxu3 %v3438_v48  ;;  %v359_v50 = vld [vmem:[#allocation7] sm:$0x3]  ;;  %v3419_v59 = vld [vmem:[#allocation8 + $0x60] sm:$0xff] }
  0x4c   : > { %374 = vmatpush.msra.mxu0 %v339_v18  ;;  %487 = vmatpush.msra.mxu1 %v340_v19  ;;  %v4505_v53 = vperm.slane %v359_v50, 0  ;;  %v311_v58 = vld [vmem:[%s4475_s11 + $0x80] sm:$0xff]  ;;  %v4511_v62 = vperm.slane %v359_v50, 1  ;;  %v3417_v2 = vld [vmem:[#allocation8 + $0x50] sm:$0xff]  ;;  %v3416_v6 = vld [vmem:[#allocation8 + $0x48] sm:$0xff] }
  0x4d   : > { %3444 = vmatpush.msra.mxu2 %v3421_v51  ;;  %3557 = vmatpush.msra.mxu3 %v3437_v52  ;;  %v3435_v60 = vld [vmem:[#allocation8 + $0xe0] sm:$0xff]  ;;  %v3418_v63 = vld [vmem:[#allocation8 + $0x58] sm:$0xff]  ;;  %v3433_v3 = vld [vmem:[#allocation8 + $0xd0] sm:$0xff] }
  0x4e   : > { %375 = vmatpush.msra.mxu0 %v337_v20  ;;  %488 = vmatpush.msra.mxu1 %v338_v21  ;;  %v3434_v0 = vld [vmem:[#allocation8 + $0xd8] sm:$0xff]  ;;  %v3432_v7 = vld [vmem:[#allocation8 + $0xc8] sm:$0xff]  ;;  %v3415_v12 = vld [vmem:[#allocation8 + $0x40] sm:$0xff] }
  0x4f   : > { %3445 = vmatpush.msra.mxu2 %v3420_v54  ;;  %3558 = vmatpush.msra.mxu3 %v3436_v55  ;;  %v312_v11 = vld [vmem:[%s4475_s11 + $0x88] sm:$0xff]  ;;  %v3414_v17 = vld [vmem:[#allocation8 + $0x38] sm:$0xff]  ;;  %v3413_v21 = vld [vmem:[#allocation8 + $0x30] sm:$0xff] }
  0x50   : > { %376 = vmatpush.msra.mxu0 %v335_v22  ;;  %489 = vmatpush.msra.mxu1 %v336_v23  ;;  %v3431_v13 = vld [vmem:[#allocation8 + $0xc0] sm:$0xff]  ;;  %v3430_v18 = vld [vmem:[#allocation8 + $0xb8] sm:$0xff]  ;;  %v3429_v22 = vld [vmem:[#allocation8 + $0xb0] sm:$0xff] }
  0x51   : > { %3446 = vmatpush.msra.mxu2 %v3419_v59  ;;  %3559 = vmatpush.msra.mxu3 %v3435_v60  ;;  %v3409_v47 = vld [vmem:[#allocation8 + $0x10] sm:$0xff]  ;;  %v3408_v51 = vld [vmem:[#allocation8 + $0x8] sm:$0xff]  ;;  %v3407_v59 = vld [vmem:[#allocation8] sm:$0xff] }
  0x52   : > { %377 = vmatpush.msra.mxu0 %v333_v24  ;;  %490 = vmatpush.msra.mxu1 %v334_v25  ;;  %v3425_v48 = vld [vmem:[#allocation8 + $0x90] sm:$0xff]  ;;  %v3424_v52 = vld [vmem:[#allocation8 + $0x88] sm:$0xff]  ;;  %v3423_v60 = vld [vmem:[#allocation8 + $0x80] sm:$0xff] }
  0x53   : > { %3447 = vmatpush.msra.mxu2 %v3418_v63  ;;  %3560 = vmatpush.msra.mxu3 %v3434_v0 }
  0x54   : > { %378 = vmatpush.msra.mxu0 %v331_v26  ;;  %491 = vmatpush.msra.mxu1 %v332_v27  ;;  %v3412_v27 = vld [vmem:[#allocation8 + $0x28] sm:$0xff] }
  0x55   : > { %3448 = vmatpush.msra.mxu2 %v3417_v2  ;;  %3561 = vmatpush.msra.mxu3 %v3433_v3 }
  0x56   : > { %379 = vmatpush.msra.mxu0 %v329_v28  ;;  %492 = vmatpush.msra.mxu1 %v330_v29  ;;  %v3428_v28 = vld [vmem:[#allocation8 + $0xa8] sm:$0xff] }
  0x57   : > { %3449 = vmatpush.msra.mxu2 %v3416_v6  ;;  %3562 = vmatpush.msra.mxu3 %v3432_v7 }
  0x58   : > { %380 = vmatpush.msra.mxu0 %v327_v30  ;;  %493 = vmatpush.msra.mxu1 %v328_v31  ;;  %v313_v31 = vld [vmem:[%s4475_s11 + $0x90] sm:$0xff] }
  0x59   : > { %381 = vmatmul.f32.vlgmr.msra.gmra.mxu0 %v295_v32  ;;  %494 = vmatmul.f32.vlgmr.msra.gmra.mxu1 %v295_v32  ;;  %v3411_v32 = vld [vmem:[#allocation8 + $0x20] sm:$0xff] }
  0x5a   : > { %3450 = vmatpush.msra.mxu2 %v3415_v12  ;;  %3563 = vmatpush.msra.mxu3 %v3431_v13 }
  0x5c   : > { %3451 = vmatpush.msra.mxu2 %v3414_v17  ;;  %3564 = vmatpush.msra.mxu3 %v3430_v18 }
  0x5e   : > { %3452 = vmatpush.msra.mxu2 %v3413_v21  ;;  %3565 = vmatpush.msra.mxu3 %v3429_v22 }
  0x60   : > { %3453 = vmatpush.msra.mxu2 %v3412_v27  ;;  %3566 = vmatpush.msra.mxu3 %v3428_v28 }
  0x61   : > { %384 = vmatmul.f32.gmra.mxu0 %v296_v33  ;;  %497 = vmatmul.f32.gmra.mxu1 %v296_v33  ;;  %v3427_v33 = vld [vmem:[#allocation8 + $0xa0] sm:$0xff] }
  0x62   : > { %3454 = vmatpush.msra.mxu2 %v3411_v32  ;;  %3567 = vmatpush.msra.mxu3 %v3427_v33 }
  0x69   : > { %387 = vmatmul.f32.gmra.mxu0 %v297_v34  ;;  %500 = vmatmul.f32.gmra.mxu1 %v297_v34 }
  0x71   : > { %390 = vmatmul.f32.gmra.mxu0 %v298_v35  ;;  %503 = vmatmul.f32.gmra.mxu1 %v298_v35 }
  0x79   : > { %393 = vmatmul.f32.gmra.mxu0 %v299_v36  ;;  %506 = vmatmul.f32.gmra.mxu1 %v299_v36 }
  0x81   : > { %396 = vmatmul.f32.gmra.mxu0 %v300_v37  ;;  %509 = vmatmul.f32.gmra.mxu1 %v300_v37 }
  0x89   : > { %399 = vmatmul.f32.gmra.mxu0 %v301_v38  ;;  %512 = vmatmul.f32.gmra.mxu1 %v301_v38 }
  0x91   : > { %402 = vmatmul.f32.gmra.mxu0 %v302_v39  ;;  %515 = vmatmul.f32.gmra.mxu1 %v302_v39 }
  0x99   : > { %405 = vmatmul.f32.gmra.mxu0 %v303_v40  ;;  %518 = vmatmul.f32.gmra.mxu1 %v303_v40  ;;  %v3410_v40 = vld [vmem:[#allocation8 + $0x18] sm:$0xff] }
  0x9a   : > { %3455 = vmatpush.msra.mxu2 %v3410_v40 }
  0x9c   : > { %3456 = vmatpush.msra.mxu2 %v3409_v47 }
  0x9e   : > { %3457 = vmatpush.msra.mxu2 %v3408_v51 }
  0xa0   : > { %3458 = vmatpush.msra.mxu2 %v3407_v59 }
  0xa1   : > { %408 = vmatmul.f32.gmra.mxu0 %v304_v41  ;;  %521 = vmatmul.f32.gmra.mxu1 %v304_v41  ;;  %v3426_v41 = vld [vmem:[#allocation8 + $0x98] sm:$0xff] }
  0xa2   : > { %3568 = vmatpush.msra.mxu3 %v3426_v41 }
  0xa4   : > { %3569 = vmatpush.msra.mxu3 %v3425_v48 }
  0xa6   : > { %3570 = vmatpush.msra.mxu3 %v3424_v52 }
  0xa8   : > { %3571 = vmatpush.msra.mxu3 %v3423_v60 }
  0xa9   : > { %411 = vmatmul.f32.gmra.mxu0 %v305_v42  ;;  %524 = vmatmul.f32.gmra.mxu1 %v305_v42 }
  0xb1   : > { %414 = vmatmul.f32.gmra.mxu0 %v306_v43  ;;  %527 = vmatmul.f32.gmra.mxu1 %v306_v43 }
  0xb9   : > { %417 = vmatmul.f32.gmra.mxu0 %v307_v44  ;;  %530 = vmatmul.f32.gmra.mxu1 %v307_v44 }
  0xc1   : > { %420 = vmatmul.f32.gmra.mxu0 %v308_v45  ;;  %533 = vmatmul.f32.gmra.mxu1 %v308_v45 }
  0xc9   : > { %423 = vmatmul.f32.gmra.mxu0 %v309_v46  ;;  %536 = vmatmul.f32.gmra.mxu1 %v309_v46 }
  0xd1   : > { %426 = vmatmul.f32.gmra.mxu0 %v310_v49  ;;  %539 = vmatmul.f32.gmra.mxu1 %v310_v49 }
  0xd6   : > { %v382_v56 = vpop.f32.mrf.mxu0  ;;  %v495_v57 = vpop.f32.mrf.mxu1 }
  0xd7   : > { %v4509_v61 = vadd.f32 %v382_v56, %v4505_v53  ;;  %v4519_v5 = vadd.f32 %v495_v57, %v4511_v62 }
  0xd9   : > { %v4514_v1 = vmul.f32 0.70710677, %v4509_v61  ;;  %429 = vmatmul.f32.gmra.mxu0 %v311_v58  ;;  %542 = vmatmul.f32.gmra.mxu1 %v311_v58  ;;  %v4525_v14 = vmul.f32 0.70710677, %v4519_v5  ;;  %v314_v58 = vld [vmem:[%s4475_s11 + $0x98] sm:$0xff] }
  0xdb   : > { %v719_v4 = vmul.f32 %v4514_v1, %v4514_v1  ;;  %v759_v24 = vmul.f32 %v4525_v14, %v4525_v14 }
  0xdd   : > { %v4521_v8 = vmin.f32 %v719_v4, 16.0  ;;  %v4547_v36 = vmin.f32 %v759_v24, 16.0 }
  0xde   : > { %v385_v9 = vpop.f32.mrf.mxu0  ;;  %v498_v10 = vpop.f32.mrf.mxu1 }
  0xdf   : > { %v4528_v15 = vadd.f32 %v385_v9, %v4505_v53  ;;  %v4531_v16 = vadd.f32 %v498_v10, %v4511_v62  ;;  %v732_v19 = vmul.f32 3.8918573e-05, %v4521_v8  ;;  %v721_v35 = vmul.f32 2.1237322e-06, %v4521_v8 }
  0xe0   : > { %v761_v46 = vmul.f32 2.1237322e-06, %v4547_v36  ;;  %v772_v10 = vmul.f32 3.8918573e-05, %v4547_v36 }
  0xe1   : > { %v4535_v20 = vmul.f32 0.70710677, %v4528_v15  ;;  %432 = vmatmul.f32.gmra.mxu0 %v312_v11  ;;  %545 = vmatmul.f32.gmra.mxu1 %v312_v11  ;;  %v733_v23 = vadd.f32 0.001143296, %v732_v19  ;;  %v4542_v26 = vmul.f32 0.70710677, %v4531_v16 }
  0xe2   : > { %v722_v45 = vadd.f32 0.00028619796, %v721_v35  ;;  %v762_v0 = vadd.f32 0.00028619796, %v761_v46  ;;  %v773_v24 = vadd.f32 0.001143296, %v772_v10 }
  0xe3   : > { %v799_v25 = vmul.f32 %v4535_v20, %v4535_v20  ;;  %v734_v34 = vmul.f32 %v733_v23, %v4521_v8  ;;  %v839_v39 = vmul.f32 %v4542_v26, %v4542_v26 }
  0xe4   : > { %v723_v3 = vmul.f32 %v722_v45, %v4521_v8  ;;  %v763_v13 = vmul.f32 %v762_v0, %v4547_v36 }
  0xe5   : > { %v4552_v38 = vmin.f32 %v799_v25, 16.0  ;;  %v735_v44 = vadd.f32 0.014752088, %v734_v34  ;;  %v4564_v50 = vmin.f32 %v839_v39, 16.0 }
  0xe6   : > { %v388_v29 = vpop.f32.mrf.mxu0  ;;  %v501_v30 = vpop.f32.mrf.mxu1  ;;  %v724_v18 = vadd.f32 0.0036580483, %v723_v3 }
  0xe7   : > { %v4550_v37 = vadd.f32 %v388_v29, %v4505_v53  ;;  %v4557_v42 = vadd.f32 %v501_v30, %v4511_v62  ;;  %v801_v49 = vmul.f32 2.1237322e-06, %v4552_v38  ;;  %v736_v63 = vmul.f32 %v735_v44, %v4521_v8  ;;  %v315_v29 = vld [vmem:[%s4475_s11 + $0xa0] sm:$0xff] }
  0xe8   : > { %v841_v6 = vmul.f32 2.1237322e-06, %v4564_v50  ;;  %v725_v33 = vmul.f32 %v724_v18, %v4521_v8  ;;  %v774_v44 = vmul.f32 %v773_v24, %v4547_v36 }
  0xe9   : > { %435 = vmatmul.f32.gmra.mxu0 %v313_v31  ;;  %548 = vmatmul.f32.gmra.mxu1 %v313_v31  ;;  %v4560_v43 = vmul.f32 0.70710677, %v4550_v37  ;;  %v4567_v54 = vmul.f32 0.70710677, %v4557_v42  ;;  %v802_v4 = vadd.f32 0.00028619796, %v801_v49 }
  0xea   : > { %v737_v12 = vadd.f32 0.112945676, %v736_v63  ;;  %v842_v21 = vadd.f32 0.00028619796, %v841_v6  ;;  %v764_v31 = vadd.f32 0.0036580483, %v763_v13 }
  0xeb   : > { %v879_v55 = vmul.f32 %v4560_v43, %v4560_v43  ;;  %v919_v7 = vmul.f32 %v4567_v54, %v4567_v54  ;;  %v803_v19 = vmul.f32 %v802_v4, %v4552_v38  ;;  %v726_v51 = vadd.f32 0.05243302, %v725_v33  ;;  %v316_v4 = vld [vmem:[%s4475_s11 + $0xa8] sm:$0xff] }
  0xec   : > { %v738_v30 = vmul.f32 %v737_v12, %v4521_v8  ;;  %v843_v35 = vmul.f32 %v842_v21, %v4564_v50  ;;  %v765_v48 = vmul.f32 %v764_v31, %v4547_v36  ;;  %v775_v59 = vadd.f32 0.014752088, %v774_v44 }
  0xed   : > { %v4584_v11 = vmin.f32 %v879_v55, 16.0  ;;  %v4591_v22 = vmin.f32 %v919_v7, 16.0  ;;  %v804_v34 = vadd.f32 0.0036580483, %v803_v19  ;;  %v727_v12 = vmul.f32 %v726_v51, %v4521_v8 }
  0xee   : > { %v391_v56 = vpop.f32.mrf.mxu0  ;;  %v504_v57 = vpop.f32.mrf.mxu1  ;;  %v739_v47 = vadd.f32 0.4994258, %v738_v30  ;;  %v844_v55 = vadd.f32 0.0036580483, %v843_v35  ;;  %v766_v7 = vadd.f32 0.05243302, %v765_v48 }
  0xef   : > { %v4574_v2 = vadd.f32 %v391_v56, %v4505_v53  ;;  %v4581_v9 = vadd.f32 %v504_v57, %v4511_v62  ;;  %v881_v25 = vmul.f32 2.1237322e-06, %v4584_v11  ;;  %v921_v40 = vmul.f32 2.1237322e-06, %v4591_v22 }
  0xf0   : > { %v805_v52 = vmul.f32 %v804_v34, %v4552_v38  ;;  %v740_v6 = vmul.f32 %v739_v47, %v4521_v8  ;;  %v845_v18 = vmul.f32 %v844_v55, %v4564_v50  ;;  %v767_v31 = vmul.f32 %v766_v7, %v4547_v36 }
  0xf1   : > { %7460 = vst [vmem:[#allocation15_spill] sm:$0xff] %v4574_v2  ;;  %438 = vmatmul.f32.gmra.mxu0 %v314_v58  ;;  %551 = vmatmul.f32.gmra.mxu1 %v314_v58  ;;  %v4588_v17 = vmul.f32 0.70710677, %v4574_v2  ;;  %v4594_v23 = vmul.f32 0.70710677, %v4581_v9 }
  0xf2   : > { %7461 = vst [vmem:[#allocation16_spill] sm:$0xff] %v4581_v9  ;;  %v882_v45 = vadd.f32 0.00028619796, %v881_v25  ;;  %v922_v57 = vadd.f32 0.00028619796, %v921_v40  ;;  %v776_v25 = vmul.f32 %v775_v59, %v4547_v36  ;;  %v4641_v30 = vadd.f32 1.0, %v740_v6 }
  0xf3   : > { %v959_v32 = vmul.f32 %v4588_v17, %v4588_v17  ;;  %v999_v41 = vmul.f32 %v4594_v23, %v4594_v23  ;;  %v806_v13 = vadd.f32 0.05243302, %v805_v52  ;;  %v728_v33 = vadd.f32 0.18741608, %v727_v12 }
  0xf4   : > { %v883_v60 = vmul.f32 %v882_v45, %v4584_v11  ;;  %v923_v21 = vmul.f32 %v922_v57, %v4591_v22  ;;  %v846_v35 = vadd.f32 0.05243302, %v845_v18  ;;  %v777_v47 = vadd.f32 0.112945676, %v776_v25  ;;  %v317_v57 = vld [vmem:[%s4475_s11 + $0xb0] sm:$0xff] }
  0xf5   : > { %v4614_v49 = vmin.f32 %v959_v32, 16.0  ;;  %v4620_v58 = vmin.f32 %v999_v41, 16.0  ;;  %v807_v34 = vmul.f32 %v806_v13, %v4552_v38  ;;  %3989 = vrcp.f32 %v4641_v30 }
  0xf6   : > { %v394_v27 = vpop.f32.mrf.mxu0  ;;  %v507_v28 = vpop.f32.mrf.mxu1  ;;  %v924_v41 = vadd.f32 0.0036580483, %v923_v21  ;;  %v768_v59 = vadd.f32 0.18741608, %v767_v31  ;;  %v778_v18 = vmul.f32 %v777_v47, %v4547_v36  ;;  %v4681_v31 = vmul.f32 0.5, %v4509_v61 }
  0xf7   : > { %v4604_v39 = vadd.f32 %v394_v27, %v4505_v53  ;;  %v4611_v46 = vadd.f32 %v507_v28, %v4511_v62  ;;  %v961_v10 = vmul.f32 2.1237322e-06, %v4614_v49  ;;  %v1001_v24 = vmul.f32 2.1237322e-06, %v4620_v58 }
  0xf8   : > { %v884_v27 = vadd.f32 0.0036580483, %v883_v60  ;;  %vm747_vm1 = vweird.f32 %v4641_v30  ;;  %v4727_v9 = vmul.f32 0.5, %v4519_v5 }
  0xf9   : > { %7462 = vst [vmem:[#allocation17_spill] sm:$0xff] %v4604_v39  ;;  %441 = vmatmul.f32.gmra.mxu0 %v315_v29  ;;  %554 = vmatmul.f32.gmra.mxu1 %v315_v29  ;;  %v4618_v56 = vmul.f32 0.70710677, %v4604_v39  ;;  %v4624_v63 = vmul.f32 0.70710677, %v4611_v46 }
  0xfa   : > { %7463 = vst [vmem:[#allocation18_spill] sm:$0xff] %v4611_v46  ;;  %v962_v32 = vadd.f32 0.00028619796, %v961_v10  ;;  %v1002_v44 = vadd.f32 0.00028619796, %v1001_v24  ;;  %v885_v48 = vmul.f32 %v884_v27, %v4584_v11 }
  0xfb   : > { %v1039_v19 = vmul.f32 %v4618_v56, %v4618_v56  ;;  %v1079_v28 = vmul.f32 %v4624_v63, %v4624_v63  ;;  %v808_v10 = vadd.f32 0.18741608, %v807_v34  ;;  %v769_v34 = vmul.f32 %v768_v59, %v4547_v36 }
  0xfc   : > { %v963_v60 = vmul.f32 %v962_v32, %v4614_v49  ;;  %v1003_v12 = vmul.f32 %v1002_v44, %v4620_v58  ;;  %v3990_v32 = vpop.eup %3989 }
  0xfd   : > { %v4645_v40 = vmin.f32 %v1039_v19, 16.0  ;;  %v4651_v51 = vmin.f32 %v1079_v28, 16.0  ;;  %v886_v19 = vadd.f32 0.05243302, %v885_v48  ;;  %v809_v44 = vmul.f32 %v808_v10, %v4552_v38 }
  0xfe   : > { %v397_v0 = vpop.f32.mrf.mxu0  ;;  %v510_v3 = vpop.f32.mrf.mxu1  ;;  %v964_v25 = vadd.f32 0.0036580483, %v963_v60  ;;  %v1004_v47 = vadd.f32 0.0036580483, %v1003_v12  ;;  %v770_v10 = vadd.f32 1.1283791, %v769_v34  ;;  %vm748_vm0 = vweird.f32 %v3990_v32 }
  0xff   : > { %v4639_v29 = vadd.f32 %v397_v0, %v4505_v53  ;;  %v4648_v45 = vadd.f32 %v510_v3, %v4511_v62  ;;  %v729_v0 = vmul.f32 %v728_v33, %v4521_v8  ;;  %v847_v3 = vmul.f32 %v846_v35, %v4564_v50  ;;  %vm749_vm2 = vmor %vm747_vm1, %vm748_vm0 }
 0x100   : > { %v925_v8 = vmul.f32 %v924_v41, %v4591_v22  ;;  %v1081_v21 = vmul.f32 2.1237322e-06, %v4651_v51  ;;  %v965_v61 = vmul.f32 %v964_v25, %v4614_v49 }
 0x101   : > { %444 = vmatmul.f32.gmra.mxu0 %v316_v4  ;;  %557 = vmatmul.f32.gmra.mxu1 %v316_v4  ;;  %7464 = vst [vmem:[#allocation19_spill] sm:$0xff] %v4639_v29  ;;  %v4654_v52 = vmul.f32 0.70710677, %v4639_v29  ;;  %v1041_v4 = vmul.f32 2.1237322e-06, %v4645_v40 }
 0x102   : > { %7465 = vst [vmem:[#allocation20_spill] sm:$0xff] %v4648_v45  ;;  %v4667_v13 = vmul.f32 0.70710677, %v4648_v45  ;;  %v730_v33 = vadd.f32 1.1283791, %v729_v0 }
 0x103   : > { %v1119_v24 = vmul.f32 %v4654_v52, %v4654_v52  ;;  %v848_v35 = vadd.f32 0.18741608, %v847_v3  ;;  %v1042_v41 = vadd.f32 0.00028619796, %v1041_v4  ;;  %v926_v60 = vadd.f32 0.05243302, %v925_v8 }
 0x104   : > { %v1159_v48 = vmul.f32 %v4667_v13, %v4667_v13  ;;  %v743_v3 = vmul.f32 %v3990_v32, %v4641_v30  ;;  %v731_v4 = vmul.f32 %v730_v33, %v4514_v1  ;;  %v1005_v8 = vmul.f32 %v1004_v47, %v4620_v58 }
 0x105   : > { %v849_v12 = vmul.f32 %v848_v35, %v4564_v50  ;;  %v927_v25 = vmul.f32 %v926_v60, %v4591_v22  ;;  %v966_v33 = vadd.f32 0.05243302, %v965_v61 }
 0x106   : > { %v400_v55 = vpop.f32.mrf.mxu0  ;;  %v513_v7 = vpop.f32.mrf.mxu1  ;;  %v744_v29 = vsub.f32 1.0, %v743_v3  ;;  %v1006_v47 = vadd.f32 0.05243302, %v1005_v8 }
 0x107   : > { %v4663_v6 = vadd.f32 %v400_v55, %v4505_v53  ;;  %v4678_v28 = vadd.f32 %v513_v7, %v4511_v62  ;;  %v779_v55 = vadd.f32 0.4994258, %v778_v18  ;;  %v1082_v7 = vadd.f32 0.00028619796, %v1081_v21 }
 0x108   : > { %v1043_v18 = vmul.f32 %v1042_v41, %v4645_v40  ;;  %v4701_v21 = vmin.f32 %v1159_v48, 16.0  ;;  %v850_v8 = vadd.f32 1.1283791, %v849_v12 }
 0x109   : > { %7466 = vst [vmem:[#allocation21_spill] sm:$0xff] %v4663_v6  ;;  %447 = vmatmul.f32.gmra.mxu0 %v317_v57  ;;  %560 = vmatmul.f32.gmra.mxu1 %v317_v57  ;;  %v4675_v27 = vmul.f32 0.70710677, %v4663_v6  ;;  %v887_v57 = vmul.f32 %v886_v19, %v4584_v11  ;;  %v4688_v6 = vmin.f32 %v1119_v24, 16.0  ;;  %v4694_v0 = vmul.f32 0.70710677, %v4678_v28 }
 0x10a   : > { %7467 = vst [vmem:[#allocation22_spill] sm:$0xff] %v4678_v28  ;;  %v810_v19 = vadd.f32 1.1283791, %v809_v44  ;;  %v780_v24 = vmul.f32 %v779_v55, %v4547_v36  ;;  %v1083_v28 = vmul.f32 %v1082_v7, %v4651_v51  ;;  %v1044_v41 = vadd.f32 0.0036580483, %v1043_v18  ;;  %v318_v18 = vld [vmem:[%s4475_s11 + $0xb8] sm:$0xff] }
 0x10b   : > { %v1199_v59 = vmul.f32 %v4675_v27, %v4675_v27  ;;  %v1121_v45 = vmul.f32 2.1237322e-06, %v4688_v6  ;;  %v888_v1 = vadd.f32 0.18741608, %v887_v57  ;;  %v1239_v35 = vmul.f32 %v4694_v0, %v4694_v0 }
 0x10c   : > { %v745_v44 = vmul.f32 %v3990_v32, %v744_v29  ;;  %v751_v36 = vand.u32 2147483647, %v4641_v30  ;;  %v1161_v48 = vmul.f32 2.1237322e-06, %v4701_v21  ;;  %v753_v55 = vand.u32 2147483648, %v4641_v30 }
 0x10d   : > { %v4707_v34 = vmin.f32 %v1199_v59, 16.0  ;;  %v4714_v60 = vadd.f32 1.0, %v780_v24  ;;  %v1084_v57 = vadd.f32 0.0036580483, %v1083_v28  ;;  %v1122_v7 = vadd.f32 0.00028619796, %v1121_v45 }
 0x10e   : > { %v746_v61 = vadd.f32 %v3990_v32, %v745_v44  ;;  %v4718_v3 = vmin.f32 %v1239_v35, 16.0  ;;  %v754_v29 = vor.u32 1.1754944e-38, %v753_v55  ;;  %v1045_v46 = vmul.f32 %v1044_v41, %v4645_v40 }
 0x10f   : > { %v1201_v59 = vmul.f32 2.1237322e-06, %v4707_v34  ;;  %3991 = vrcp.f32 %v4714_v60  ;;  %vm752_vm3 = vcmp.eq.f32.partialorder %v751_v36, 8.507059e+37  ;;  %v889_v45 = vmul.f32 %v888_v1, %v4584_v11 }
 0x110   : > { %7468 = vst [vmem:[#allocation23_spill] sm:$0xff] %v4718_v3  ;;  %v750_v39 = vsel %vm749_vm2, %v3990_v32, %v746_v61  ;;  %v928_v28 = vadd.f32 0.18741608, %v927_v25  ;;  %v1162_v30 = vadd.f32 0.00028619796, %v1161_v48  ;;  %v967_v35 = vmul.f32 %v966_v33, %v4614_v49 }
 0x111   : > { %450 = vmatmul.f32.gmra.mxu0 %v318_v18  ;;  %563 = vmatmul.f32.gmra.mxu1 %v318_v18  ;;  %v755_v24 = vsel %vm752_vm3, %v754_v29, %v750_v39  ;;  %v1007_v44 = vmul.f32 %v1006_v47, %v4620_v58  ;;  %v1085_v12 = vmul.f32 %v1084_v57, %v4651_v51  ;;  %v1202_v41 = vadd.f32 0.00028619796, %v1201_v59 }
 0x112   : > { %v756_v55 = vmul.f32 %v755_v24, %v731_v4  ;;  %v1123_v32 = vmul.f32 %v1122_v7, %v4688_v6  ;;  %v1241_v36 = vmul.f32 2.1237322e-06, %v4718_v3  ;;  %v771_v1 = vmul.f32 %v770_v10, %v4525_v14 }
 0x113   : > { %v4734_v25 = vmul.f32 %v810_v19, %v4535_v20  ;;  %v1046_v39 = vadd.f32 0.05243302, %v1045_v46  ;;  %v4737_v4 = vmul.f32 %v850_v8, %v4542_v26  ;;  %v4739_v5 = vadd.f32 1.1283791, %v889_v45  ;;  %v403_v46 = vpop.f32.mrf.mxu0 }
 0x114   : > { %v3834_v33 = vclamps-f32 %v756_v55, 1.0  ;;  %v4742_v47 = vmul.f32 %v928_v28, %v4591_v22  ;;  %v1163_v57 = vmul.f32 %v1162_v30, %v4701_v21  ;;  %v4745_v7 = vadd.f32 0.18741608, %v967_v35 }
 0x115   : > { %v3992_v48 = vpop.eup %3991  ;;  %v4747_v61 = vadd.f32 0.18741608, %v1007_v44  ;;  %v1086_v10 = vadd.f32 0.05243302, %v1085_v12  ;;  %v1124_v19 = vadd.f32 0.0036580483, %v1123_v32  ;;  %v1203_v26 = vmul.f32 %v1202_v41, %v4707_v34 }
 0x116   : > { %v3279_v14 = vadd.f32 1.0, %v3834_v33  ;;  %v783_v20 = vmul.f32 %v3992_v48, %v4714_v60  ;;  %v1242_v59 = vadd.f32 0.00028619796, %v1241_v36  ;;  %v4752_v29 = vmul.f32 %v1046_v39, %v4645_v40  ;;  %v516_v33 = vpop.f32.mrf.mxu1 }
 0x117   : > { %v812_v45 = vmul.f32 3.8918573e-05, %v4552_v38  ;;  %v1164_v28 = vadd.f32 0.0036580483, %v1163_v57  ;;  %v791_v30 = vand.u32 2147483647, %v4714_v60  ;;  %v4759_v35 = vadd.f32 %v403_v46, %v4505_v53 }
 0x118   : > { %v3343_v18 = vmul.f32 %v3279_v14, %v4681_v31  ;;  %v784_v8 = vsub.f32 1.0, %v783_v20  ;;  %v793_v24 = vand.u32 2147483648, %v4714_v60  ;;  %vm788_vm4 = vweird.f32 %v3992_v48 }
 0x119   : > { %7469 = vst [vmem:[#allocation24_spill] sm:$0xff] %v4759_v35  ;;  %v813_v55 = vadd.f32 0.001143296, %v812_v45  ;;  %v852_v12 = vmul.f32 3.8918573e-05, %v4564_v50  ;;  %v1087_v32 = vmul.f32 %v1086_v10, %v4651_v51  ;;  %v1125_v31 = vmul.f32 %v1124_v19, %v4688_v6 }
 0x11a   : > { %3459 = vmatmul.f32.vlgmr.msra.gmra.mxu2 %v3343_v18  ;;  %v785_v44 = vmul.f32 %v3992_v48, %v784_v8  ;;  %v1204_v41 = vadd.f32 0.0036580483, %v1203_v26  ;;  %v1243_v36 = vmul.f32 %v1242_v59, %v4718_v3  ;;  %vm787_vm5 = vweird.f32 %v4714_v60 }
 0x11b   : > { %v814_v57 = vmul.f32 %v813_v55, %v4552_v38  ;;  %v853_v14 = vadd.f32 0.001143296, %v852_v12  ;;  %v1165_v20 = vmul.f32 %v1164_v28, %v4701_v21  ;;  %vm789_vm6 = vmor %vm787_vm5, %vm788_vm4  ;;  %v794_v46 = vor.u32 1.1754944e-38, %v793_v24 }
 0x11c   : > { %v786_v39 = vadd.f32 %v3992_v48, %v785_v44  ;;  %v4769_v18 = vmul.f32 0.70710677, %v4759_v35  ;;  %v892_v10 = vmul.f32 3.8918573e-05, %v4584_v11  ;;  %vm792_vm7 = vcmp.eq.f32.partialorder %v791_v30, 8.507059e+37 }
 0x11d   : > { %v815_v26 = vadd.f32 0.014752088, %v814_v57  ;;  %v854_v59 = vmul.f32 %v853_v14, %v4564_v50  ;;  %v1244_v8 = vadd.f32 0.0036580483, %v1243_v36  ;;  %v4774_v45 = vadd.f32 %v516_v33, %v4511_v62 }
 0x11e   : > { %v790_v19 = vsel %vm789_vm6, %v3992_v48, %v786_v39  ;;  %v893_v44 = vadd.f32 0.001143296, %v892_v10  ;;  %v932_v12 = vmul.f32 3.8918573e-05, %v4591_v22  ;;  %v1126_v35 = vadd.f32 0.05243302, %v1125_v31 }
 0x11f   : > { %v795_v60 = vsel %vm792_vm7, %v794_v46, %v790_v19  ;;  %7470 = vst [vmem:[#allocation25_spill] sm:$0xff] %v4774_v45  ;;  %v816_v28 = vmul.f32 %v815_v26, %v4552_v38  ;;  %v855_v24 = vadd.f32 0.014752088, %v854_v59  ;;  %v1166_v2 = vadd.f32 0.05243302, %v1165_v20 }
 0x120   : > { %v796_v55 = vmul.f32 %v795_v60, %v771_v1  ;;  %v1279_v48 = vmul.f32 %v4769_v18, %v4769_v18  ;;  %v894_v30 = vmul.f32 %v893_v44, %v4584_v11  ;;  %v933_v33 = vadd.f32 0.001143296, %v932_v12 }
 0x121   : > { %v817_v36 = vadd.f32 0.112945676, %v816_v28  ;;  %v856_v57 = vmul.f32 %v855_v24, %v4564_v50  ;;  %v1205_v14 = vmul.f32 %v1204_v41, %v4707_v34  ;;  %v1245_v1 = vmul.f32 %v1244_v8, %v4718_v3 }
 0x122   : > { %v3835_v39 = vclamps-f32 %v796_v55, 1.0  ;;  %v4785_v46 = vmul.f32 0.70710677, %v4774_v45  ;;  %v895_v10 = vadd.f32 0.014752088, %v894_v30  ;;  %v934_v26 = vmul.f32 %v933_v33, %v4591_v22 }
 0x123   : > { %v818_v20 = vmul.f32 %v817_v36, %v4552_v38  ;;  %v857_v19 = vadd.f32 0.112945676, %v856_v57  ;;  %v1127_v59 = vmul.f32 %v1126_v35, %v4688_v6  ;;  %v1167_v60 = vmul.f32 %v1166_v2, %v4701_v21  ;;  %v319_v57 = vld [vmem:[%s4475_s11 + $0xc0] sm:$0xff] }
 0x124   : > { %v3280_v31 = vadd.f32 1.0, %v3835_v39  ;;  %v4791_v44 = vmin.f32 %v1279_v48, 16.0  ;;  %v896_v41 = vmul.f32 %v895_v10, %v4584_v11  ;;  %v935_v24 = vadd.f32 0.014752088, %v934_v26  ;;  %453 = vmatmul.f32.gmra.mxu0 %v319_v57  ;;  %566 = vmatmul.f32.gmra.mxu1 %v319_v57 }
 0x125   : > { %v819_v55 = vadd.f32 0.4994258, %v818_v20  ;;  %v858_v28 = vmul.f32 %v857_v19, %v4564_v50  ;;  %v969_v12 = vmul.f32 %v4745_v7, %v4614_v49  ;;  %v1009_v30 = vmul.f32 %v4747_v61, %v4620_v58 }
 0x126   : > { %v3344_v8 = vmul.f32 %v3280_v31, %v4727_v9  ;;  %v1048_v35 = vadd.f32 0.18741608, %v4752_v29  ;;  %v1206_v2 = vadd.f32 0.05243302, %v1205_v14  ;;  %v1246_v39 = vadd.f32 0.05243302, %v1245_v1 }
 0x127   : > { %v1319_v48 = vmul.f32 %v4785_v46, %v4785_v46  ;;  %v820_v9 = vmul.f32 %v819_v55, %v4552_v38  ;;  %v859_v36 = vadd.f32 0.4994258, %v858_v28  ;;  %v1088_v33 = vadd.f32 0.18741608, %v1087_v32 }
 0x128   : > { %3572 = vmatmul.f32.vlgmr.msra.gmra.mxu3 %v3344_v8  ;;  %v1128_v10 = vadd.f32 0.18741608, %v1127_v59  ;;  %v897_v7 = vadd.f32 0.112945676, %v896_v41  ;;  %v936_v31 = vmul.f32 %v935_v24, %v4591_v22  ;;  %v1168_v61 = vadd.f32 0.18741608, %v1167_v60 }
 0x129   : > { %v1281_v29 = vmul.f32 2.1237322e-06, %v4791_v44  ;;  %v4807_v14 = vadd.f32 1.0, %v820_v9  ;;  %v860_v1 = vmul.f32 %v859_v36, %v4564_v50  ;;  %v930_v20 = vadd.f32 1.1283791, %v4742_v47 }
 0x12a   : > { %v970_v19 = vadd.f32 1.1283791, %v969_v12  ;;  %v1010_v38 = vadd.f32 1.1283791, %v1009_v30  ;;  %v1207_v26 = vmul.f32 %v1206_v2, %v4707_v34  ;;  %v1049_v32 = vmul.f32 %v1048_v35, %v4645_v40 }
 0x12b   : > { %v1247_v59 = vmul.f32 %v1246_v39, %v4718_v3  ;;  %v4814_v41 = vmin.f32 %v1319_v48, 16.0  ;;  %3993 = vrcp.f32 %v4807_v14  ;;  %v1089_v60 = vmul.f32 %v1088_v33, %v4651_v51  ;;  %v406_v39 = vpop.f32.mrf.mxu0 }
 0x12c   : > { %v4818_v8 = vadd.f32 1.0, %v860_v1  ;;  %v898_v50 = vmul.f32 %v897_v7, %v4584_v11  ;;  %v937_v55 = vadd.f32 0.112945676, %v936_v31  ;;  %v4823_v47 = vmul.f32 %v4739_v5, %v4560_v43 }
 0x12d   : > { %v1129_v28 = vmul.f32 %v1128_v10, %v4688_v6  ;;  %v1169_v24 = vmul.f32 %v1168_v61, %v4701_v21  ;;  %v1282_v12 = vadd.f32 0.00028619796, %v1281_v29  ;;  %v4828_v30 = vmul.f32 %v930_v20, %v4567_v54 }
 0x12e   : > { %v4831_v35 = vmul.f32 %v970_v19, %v4588_v17  ;;  %v1208_v2 = vadd.f32 0.18741608, %v1207_v26  ;;  %3995 = vrcp.f32 %v4818_v8  ;;  %v4835_v48 = vmul.f32 %v1010_v38, %v4594_v23 }
 0x12f   : > { %v1248_v43 = vadd.f32 0.18741608, %v1247_v59  ;;  %v1321_v5 = vmul.f32 2.1237322e-06, %v4814_v41  ;;  %v972_v9 = vmul.f32 3.8918573e-05, %v4614_v49  ;;  %v938_v17 = vmul.f32 %v937_v55, %v4591_v22  ;;  %v519_v55 = vpop.f32.mrf.mxu1 }
 0x130   : > { %v4839_v36 = vadd.f32 1.1283791, %v1049_v32  ;;  %v4841_v57 = vadd.f32 1.1283791, %v1089_v60  ;;  %v899_v54 = vadd.f32 0.4994258, %v898_v50  ;;  %v1283_v23 = vmul.f32 %v1282_v12, %v4791_v44 }
 0x131   : > { %v3994_v33 = vpop.eup %3993  ;;  %v4844_v10 = vadd.f32 1.1283791, %v1129_v28  ;;  %v4846_v7 = vadd.f32 1.1283791, %v1169_v24  ;;  %v4850_v31 = vadd.f32 %v406_v39, %v4505_v53  ;;  %v4853_v61 = vmul.f32 0.5, %v4528_v15 }
 0x132   : > { %v823_v29 = vmul.f32 %v3994_v33, %v4807_v14  ;;  %v900_v1 = vmul.f32 %v899_v54, %v4584_v11  ;;  %v939_v20 = vadd.f32 0.4994258, %v938_v17  ;;  %v1209_v19 = vmul.f32 %v1208_v2, %v4707_v34 }
 0x133   : > { %v4859_v38 = vmul.f32 %v1248_v43, %v4718_v3  ;;  %v1322_v26 = vadd.f32 0.00028619796, %v1321_v5  ;;  %v973_v32 = vadd.f32 0.001143296, %v972_v9  ;;  %v4862_v50 = vmul.f32 0.5, %v4531_v16 }
 0x134   : > { %v3996_v59 = vpop.eup %3995  ;;  %v824_v60 = vsub.f32 1.0, %v823_v29  ;;  %v4864_v15 = vadd.f32 1.0, %v900_v1  ;;  %v940_v28 = vmul.f32 %v939_v20, %v4591_v22  ;;  %v1284_v24 = vadd.f32 0.0036580483, %v1283_v23 }
 0x135   : > { %v833_v11 = vand.u32 2147483648, %v4807_v14  ;;  %v863_v12 = vmul.f32 %v3996_v59, %v4818_v8  ;;  %v4870_v2 = vmul.f32 0.70710677, %v4850_v31  ;;  %vm828_vm8 = vweird.f32 %v3994_v33 }
 0x136   : > { %v825_v39 = vmul.f32 %v3994_v33, %v824_v60  ;;  %v831_v43 = vand.u32 2147483647, %v4807_v14  ;;  %3997 = vrcp.f32 %v4864_v15  ;;  %v1323_v16 = vmul.f32 %v1322_v26, %v4814_v41  ;;  %v320_v26 = vld [vmem:[%s4475_s11 + $0xc8] sm:$0xff] }
 0x137   : > { %v864_v5 = vsub.f32 1.0, %v863_v12  ;;  %v4876_v22 = vadd.f32 %v519_v55, %v4511_v62  ;;  %v974_v9 = vmul.f32 %v973_v32, %v4614_v49  ;;  %vm827_vm9 = vweird.f32 %v4807_v14  ;;  %456 = vmatmul.f32.gmra.mxu0 %v320_v26  ;;  %569 = vmatmul.f32.gmra.mxu1 %v320_v26 }
 0x138   : > { %v826_v54 = vadd.f32 %v3994_v33, %v825_v39  ;;  %v873_v17 = vand.u32 2147483648, %v4818_v8  ;;  %v4881_v23 = vadd.f32 1.0, %v940_v28  ;;  %vm829_vm10 = vmor %vm827_vm9, %vm828_vm8  ;;  %v834_v29 = vor.u32 1.1754944e-38, %v833_v11 }
 0x139   : > { %v865_v1 = vmul.f32 %v3996_v59, %v864_v5  ;;  %vm868_vm11 = vweird.f32 %v3996_v59  ;;  %v871_v20 = vand.u32 2147483647, %v4818_v8  ;;  %vm832_vm12 = vcmp.eq.f32.partialorder %v831_v43, 8.507059e+37 }
 0x13a   : > { %v830_v60 = vsel %vm829_vm10, %v3994_v33, %v826_v54  ;;  %v1359_v55 = vmul.f32 %v4870_v2, %v4870_v2  ;;  %3999 = vrcp.f32 %v4881_v23  ;;  %vm867_vm13 = vweird.f32 %v4818_v8 }
 0x13b   : > { %v835_v14 = vsel %vm832_vm12, %v834_v29, %v830_v60  ;;  %v866_v32 = vadd.f32 %v3996_v59, %v865_v1  ;;  %v975_v28 = vadd.f32 0.014752088, %v974_v9  ;;  %v1324_v12 = vadd.f32 0.0036580483, %v1323_v16  ;;  %vm869_vm14 = vmor %vm867_vm13, %vm868_vm11 }
 0x13c   : > { %v3998_v11 = vpop.eup %3997  ;;  %v836_v39 = vmul.f32 %v835_v14, %v4734_v25  ;;  %v874_v33 = vor.u32 1.1754944e-38, %v873_v17  ;;  %v4892_v43 = vmul.f32 0.70710677, %v4876_v22  ;;  %v4894_v5 = vadd.f32 1.1283791, %v1209_v19 }
 0x13d   : > { %v870_v54 = vsel %vm869_vm14, %v3996_v59, %v866_v32  ;;  %vm872_vm15 = vcmp.eq.f32.partialorder %v871_v20, 8.507059e+37  ;;  %v903_v29 = vmul.f32 %v3998_v11, %v4864_v15  ;;  %v4897_v8 = vmin.f32 %v1359_v55, 16.0 }
 0x13e   : > { %v3836_v1 = vclamps-f32 %v836_v39, 1.0  ;;  %v875_v26 = vsel %vm872_vm15, %v874_v33, %v870_v54  ;;  %v4900_v16 = vmul.f32 0.5, %v4550_v37  ;;  %v1285_v25 = vmul.f32 %v1284_v24, %v4791_v44  ;;  %v409_v39 = vpop.f32.mrf.mxu0 }
 0x13f   : > { %v876_v9 = vmul.f32 %v875_v26, %v4737_v4  ;;  %v904_v17 = vsub.f32 1.0, %v903_v29  ;;  %v976_v60 = vmul.f32 %v975_v28, %v4614_v49  ;;  %v4906_v59 = vmul.f32 %v1324_v12, %v4814_v41 }
 0x140   : > { %v4000_v19 = vpop.eup %3999  ;;  %v3281_v20 = vadd.f32 1.0, %v3836_v1  ;;  %v1399_v14 = vmul.f32 %v4892_v43, %v4892_v43  ;;  %v913_v55 = vand.u32 2147483648, %v4864_v15  ;;  %vm908_vm0 = vweird.f32 %v3998_v11 }
 0x141   : > { %v3837_v32 = vclamps-f32 %v876_v9, 1.0  ;;  %v905_v37 = vmul.f32 %v3998_v11, %v904_v17  ;;  %v911_v24 = vand.u32 2147483647, %v4864_v15  ;;  %v1361_v28 = vmul.f32 2.1237322e-06, %v4897_v8 }
 0x142   : > { %v3345_v4 = vmul.f32 %v3281_v20, %v4853_v61  ;;  %v943_v33 = vmul.f32 %v4000_v19, %v4881_v23  ;;  %v1012_v12 = vmul.f32 3.8918573e-05, %v4620_v58  ;;  %vm907_vm1 = vweird.f32 %v4864_v15 }
 0x143   : > { %v3282_v54 = vadd.f32 1.0, %v3837_v32  ;;  %v906_v29 = vadd.f32 %v3998_v11, %v905_v37  ;;  %v977_v1 = vadd.f32 0.112945676, %v976_v60  ;;  %v4917_v26 = vmin.f32 %v1399_v14, 16.0  ;;  %vm909_vm2 = vmor %vm907_vm1, %vm908_vm0 }
 0x144   : > { %3462 = vmatmul.f32.gmra.mxu2 %v3345_v4  ;;  %v914_v9 = vor.u32 1.1754944e-38, %v913_v55  ;;  %v944_v17 = vsub.f32 1.0, %v943_v33  ;;  %v4920_v45 = vadd.f32 %v409_v39, %v4505_v53  ;;  %vm912_vm3 = vcmp.eq.f32.partialorder %v911_v24, 8.507059e+37 }
 0x145   : > { %v3346_v61 = vmul.f32 %v3282_v54, %v4862_v50  ;;  %v910_v20 = vsel %vm909_vm2, %v3998_v11, %v906_v29  ;;  %v953_v3 = vand.u32 2147483648, %v4881_v23  ;;  %vm948_vm4 = vweird.f32 %v4000_v19 }
 0x146   : > { %v915_v32 = vsel %vm912_vm3, %v914_v9, %v910_v20  ;;  %v945_v37 = vmul.f32 %v4000_v19, %v944_v17  ;;  %v951_v15 = vand.u32 2147483647, %v4881_v23  ;;  %v1362_v60 = vadd.f32 0.00028619796, %v1361_v28 }
 0x147   : > { %3575 = vmatmul.f32.gmra.mxu3 %v3346_v61  ;;  %v916_v14 = vmul.f32 %v915_v32, %v4823_v47  ;;  %v978_v55 = vmul.f32 %v977_v1, %v4614_v49  ;;  %v1013_v4 = vadd.f32 0.001143296, %v1012_v12  ;;  %vm947_vm5 = vweird.f32 %v4881_v23 }
 0x148   : > { %v946_v39 = vadd.f32 %v4000_v19, %v945_v37  ;;  %v4929_v50 = vmul.f32 0.70710677, %v4920_v45  ;;  %v1052_v11 = vmul.f32 3.8918573e-05, %v4645_v40  ;;  %vm949_vm6 = vmor %vm947_vm5, %vm948_vm4  ;;  %v954_v33 = vor.u32 1.1754944e-38, %v953_v3 }
 0x149   : > { %v3838_v24 = vclamps-f32 %v916_v14, 1.0  ;;  %v979_v54 = vadd.f32 0.4994258, %v978_v55  ;;  %v1014_v29 = vmul.f32 %v1013_v4, %v4620_v58  ;;  %v1401_v28 = vmul.f32 2.1237322e-06, %v4917_v26  ;;  %v522_v14 = vpop.f32.mrf.mxu1 }
 0x14a   : > { %v950_v47 = vsel %vm949_vm6, %v4000_v19, %v946_v39  ;;  %vm952_vm7 = vcmp.eq.f32.partialorder %v951_v15, 8.507059e+37  ;;  %v1053_v1 = vadd.f32 0.001143296, %v1052_v11  ;;  %v1286_v61 = vadd.f32 0.05243302, %v1285_v25 }
 0x14b   : > { %v3283_v12 = vadd.f32 1.0, %v3838_v24  ;;  %v955_v9 = vsel %vm952_vm7, %v954_v33, %v950_v47  ;;  %v980_v23 = vmul.f32 %v979_v54, %v4614_v49  ;;  %v1015_v17 = vadd.f32 0.014752088, %v1014_v29 }
 0x14c   : > { %v956_v20 = vmul.f32 %v955_v9, %v4828_v30  ;;  %v1439_v32 = vmul.f32 %v4929_v50, %v4929_v50  ;;  %v1054_v3 = vmul.f32 %v1053_v1, %v4645_v40  ;;  %v1092_v15 = vmul.f32 3.8918573e-05, %v4651_v51 }
 0x14d   : > { %v3347_v37 = vmul.f32 %v3283_v12, %v4900_v16  ;;  %v4940_v55 = vadd.f32 1.0, %v980_v23  ;;  %v1016_v19 = vmul.f32 %v1015_v17, %v4620_v58  ;;  %v4946_v49 = vmul.f32 %v4839_v36, %v4618_v56 }
 0x14e   : > { %v1326_v30 = vadd.f32 0.05243302, %v4906_v59  ;;  %v3839_v25 = vclamps-f32 %v956_v20, 1.0  ;;  %v1055_v4 = vadd.f32 0.014752088, %v1054_v3  ;;  %v1363_v39 = vmul.f32 %v1362_v60, %v4897_v8 }
 0x14f   : > { %v1402_v11 = vadd.f32 0.00028619796, %v1401_v28  ;;  %3465 = vmatmul.f32.gmra.mxu2 %v3347_v37  ;;  %v596_v16 = vmul.f32 0.5, %v4557_v42  ;;  %4001 = vrcp.f32 %v4940_v55  ;;  %v4952_v33 = vmin.f32 %v1439_v32, 16.0  ;;  %v321_v37 = vld [vmem:[%s4475_s11 + $0xd0] sm:$0xff] }
 0x150   : > { %v3284_v24 = vadd.f32 1.0, %v3839_v25  ;;  %v4955_v54 = vadd.f32 %v522_v14, %v4511_v62  ;;  %v1056_v56 = vmul.f32 %v1055_v4, %v4645_v40  ;;  %v4960_v36 = vmul.f32 %v4841_v57, %v4624_v63  ;;  %459 = vmatmul.f32.gmra.mxu0 %v321_v37  ;;  %572 = vmatmul.f32.gmra.mxu1 %v321_v37 }
 0x151   : > { %v1250_v59 = vadd.f32 1.1283791, %v4859_v38  ;;  %v1017_v60 = vadd.f32 0.112945676, %v1016_v19  ;;  %v1093_v29 = vadd.f32 0.001143296, %v1092_v15  ;;  %v1287_v42 = vmul.f32 %v1286_v61, %v4791_v44 }
 0x152   : > { %v1327_v28 = vmul.f32 %v1326_v30, %v4814_v41  ;;  %v3348_v47 = vmul.f32 %v3284_v24, %v596_v16  ;;  %v1057_v1 = vadd.f32 0.112945676, %v1056_v56  ;;  %v1364_v12 = vadd.f32 0.0036580483, %v1363_v39  ;;  %v412_v30 = vpop.f32.mrf.mxu0 }
 0x153   : > { %v1403_v9 = vmul.f32 %v1402_v11, %v4917_v26  ;;  %v1018_v23 = vmul.f32 %v1017_v60, %v4620_v58  ;;  %v1094_v17 = vmul.f32 %v1093_v29, %v4651_v51  ;;  %v4970_v63 = vmul.f32 %v4844_v10, %v4654_v52 }
 0x154   : > { %v4974_v57 = vmul.f32 %v4846_v7, %v4667_v13  ;;  %3578 = vmatmul.f32.gmra.mxu3 %v3348_v47  ;;  %v1441_v38 = vmul.f32 2.1237322e-06, %v4952_v33  ;;  %v4978_v61 = vmul.f32 0.70710677, %v4955_v54  ;;  %v4982_v32 = vmul.f32 %v4894_v5, %v4675_v27  ;;  %v7472_v7 = vld [vmem:[#allocation15_spill] sm:$0xff] }
 0x155   : > { %v4002_v20 = vpop.eup %4001  ;;  %v1019_v3 = vadd.f32 0.4994258, %v1018_v23  ;;  %v1058_v52 = vmul.f32 %v1057_v1, %v4645_v40  ;;  %v1095_v10 = vadd.f32 0.014752088, %v1094_v17  ;;  %v4987_v14 = vmul.f32 %v1250_v59, %v4694_v0 }
 0x156   : > { %v1288_v13 = vadd.f32 0.18741608, %v1287_v42  ;;  %v4990_v19 = vmul.f32 0.5, %v7472_v7  ;;  %v983_v15 = vmul.f32 %v4002_v20, %v4940_v55  ;;  %v1328_v25 = vadd.f32 0.18741608, %v1327_v28 }
 0x157   : > { %7471 = vst [vmem:[#allocation26_spill] sm:$0xff] %v4987_v14  ;;  %v1365_v27 = vmul.f32 %v1364_v12, %v4897_v8  ;;  %v1404_v5 = vadd.f32 0.0036580483, %v1403_v9  ;;  %v1020_v4 = vmul.f32 %v1019_v3, %v4620_v58  ;;  %v1442_v39 = vadd.f32 0.00028619796, %v1441_v38  ;;  %v525_v12 = vpop.f32.mrf.mxu1 }
 0x158   : > { %v1479_v0 = vmul.f32 %v4978_v61, %v4978_v61  ;;  %v984_v11 = vsub.f32 1.0, %v983_v15  ;;  %v1096_v16 = vmul.f32 %v1095_v10, %v4651_v51  ;;  %v993_v24 = vand.u32 2147483648, %v4940_v55 }
 0x159   : > { %v4999_v56 = vadd.f32 1.0, %v1020_v4  ;;  %v5002_v59 = vadd.f32 %v412_v30, %v4505_v53  ;;  %v1059_v60 = vadd.f32 0.4994258, %v1058_v52  ;;  %vm988_vm8 = vweird.f32 %v4002_v20 }
 0x15a   : > { %v985_v29 = vmul.f32 %v4002_v20, %v984_v11  ;;  %v991_v42 = vand.u32 2147483647, %v4940_v55  ;;  %v1097_v58 = vadd.f32 0.112945676, %v1096_v16  ;;  %v1289_v28 = vmul.f32 %v1288_v13, %v4791_v44 }
 0x15b   : > { %v1329_v47 = vmul.f32 %v1328_v25, %v4814_v41  ;;  %v1366_v1 = vadd.f32 0.05243302, %v1365_v27  ;;  %4003 = vrcp.f32 %v4999_v56  ;;  %v1443_v9 = vmul.f32 %v1442_v39, %v4952_v33  ;;  %v7473_v39 = vld [vmem:[#allocation16_spill] sm:$0xff] }
 0x15c   : > { %v5009_v23 = vmin.f32 %v1479_v0, 16.0  ;;  %v986_v17 = vadd.f32 %v4002_v20, %v985_v29  ;;  %vm987_vm9 = vweird.f32 %v4940_v55  ;;  %v994_v38 = vor.u32 1.1754944e-38, %v993_v24 }
 0x15d   : > { %vm989_vm10 = vmor %vm987_vm9, %vm988_vm8  ;;  %v5013_v3 = vmul.f32 0.70710677, %v5002_v59  ;;  %v1060_v37 = vmul.f32 %v1059_v60, %v4645_v40  ;;  %v1098_v52 = vmul.f32 %v1097_v58, %v4651_v51  ;;  %v1405_v10 = vmul.f32 %v1404_v5, %v4917_v26 }
 0x15e   : > { %v990_v13 = vsel %vm989_vm10, %v4002_v20, %v986_v17  ;;  %vm992_vm11 = vcmp.eq.f32.partialorder %v991_v42, 8.507059e+37  ;;  %v5019_v7 = vadd.f32 %v525_v12, %v4511_v62  ;;  %v1367_v15 = vmul.f32 %v1366_v1, %v4897_v8 }
 0x15f   : > { %v995_v30 = vsel %vm992_vm11, %v994_v38, %v990_v13  ;;  %v5022_v55 = vadd.f32 1.0, %v1060_v37  ;;  %v1099_v25 = vadd.f32 0.4994258, %v1098_v52  ;;  %v1444_v27 = vadd.f32 0.0036580483, %v1443_v9 }
 0x160   : > { %v1481_v4 = vmul.f32 2.1237322e-06, %v5009_v23  ;;  %v996_v40 = vmul.f32 %v995_v30, %v4831_v35  ;;  %v5027_v0 = vmul.f32 0.5, %v7473_v39  ;;  %v5029_v20 = vadd.f32 1.1283791, %v1289_v28 }
 0x161   : > { %v4004_v5 = vpop.eup %4003  ;;  %v5032_v11 = vmul.f32 0.5, %v4850_v31  ;;  %v1519_v16 = vmul.f32 %v5013_v3, %v5013_v3  ;;  %4005 = vrcp.f32 %v5022_v55  ;;  %v5037_v24 = vadd.f32 1.1283791, %v1329_v47 }
 0x162   : > { %v3840_v60 = vclamps-f32 %v996_v40, 1.0  ;;  %v1023_v29 = vmul.f32 %v4004_v5, %v4999_v56  ;;  %v5041_v35 = vmul.f32 0.70710677, %v5019_v7  ;;  %v1368_v42 = vadd.f32 0.18741608, %v1367_v15  ;;  %v322_v15 = vld [vmem:[%s4475_s11 + $0xd8] sm:$0xff] }
 0x163   : > { %7474 = vst [vmem:[#allocation15_spill] sm:$0xff] %v5032_v11  ;;  %v1406_v58 = vadd.f32 0.05243302, %v1405_v10  ;;  %v1100_v28 = vmul.f32 %v1099_v25, %v4651_v51  ;;  %v1132_v31 = vmul.f32 3.8918573e-05, %v4688_v6  ;;  %v1445_v1 = vmul.f32 %v1444_v27, %v4952_v33  ;;  %v7476_v27 = vld [vmem:[#allocation17_spill] sm:$0xff]  ;;  %462 = vmatmul.f32.gmra.mxu0 %v322_v15  ;;  %575 = vmatmul.f32.gmra.mxu1 %v322_v15 }
 0x164   : > { %7475 = vst [vmem:[#allocation16_spill] sm:$0xff] %v5041_v35  ;;  %v1482_v12 = vadd.f32 0.00028619796, %v1481_v4  ;;  %v3285_v9 = vadd.f32 1.0, %v3840_v60  ;;  %v1024_v17 = vsub.f32 1.0, %v1023_v29  ;;  %v1033_v38 = vand.u32 2147483648, %v4999_v56 }
 0x165   : > { %v1031_v47 = vand.u32 2147483647, %v4999_v56  ;;  %v5048_v37 = vmin.f32 %v1519_v16, 16.0  ;;  %v5050_v52 = vadd.f32 1.0, %v1100_v28  ;;  %vm1028_vm12 = vweird.f32 %v4004_v5 }
 0x166   : > { %v3349_v13 = vmul.f32 %v3285_v9, %v4990_v19  ;;  %v1025_v10 = vmul.f32 %v4004_v5, %v1024_v17  ;;  %v1559_v51 = vmul.f32 %v5041_v35, %v5041_v35  ;;  %v1407_v25 = vmul.f32 %v1406_v58, %v4917_v26 }
 0x167   : > { %v4006_v30 = vpop.eup %4005  ;;  %v5058_v4 = vmul.f32 0.5, %v7476_v27  ;;  %4007 = vrcp.f32 %v5050_v52  ;;  %v1133_v40 = vadd.f32 0.001143296, %v1132_v31  ;;  %v5062_v39 = vmul.f32 %v1368_v42, %v4897_v8 }
 0x168   : > { %3468 = vmatmul.f32.gmra.mxu2 %v3349_v13  ;;  %v1026_v19 = vadd.f32 %v4004_v5, %v1025_v10  ;;  %vm1027_vm13 = vweird.f32 %v4999_v56  ;;  %v1063_v16 = vmul.f32 %v4006_v30, %v5022_v55  ;;  %v1446_v60 = vadd.f32 0.05243302, %v1445_v1 }
 0x169   : > { %v1483_v29 = vmul.f32 %v1482_v12, %v5009_v23  ;;  %vm1029_vm14 = vmor %vm1027_vm13, %vm1028_vm12  ;;  %v1034_v58 = vor.u32 1.1754944e-38, %v1033_v38  ;;  %v1521_v28 = vmul.f32 2.1237322e-06, %v5048_v37  ;;  %vm1032_vm15 = vcmp.eq.f32.partialorder %v1031_v47, 8.507059e+37 }
 0x16a   : > { %v1030_v9 = vsel %vm1029_vm14, %v4004_v5, %v1026_v19  ;;  %v5069_v31 = vmin.f32 %v1559_v51, 16.0  ;;  %v1064_v42 = vsub.f32 1.0, %v1063_v16  ;;  %v1071_v13 = vand.u32 2147483647, %v5022_v55 }
 0x16b   : > { %v1035_v17 = vsel %vm1032_vm15, %v1034_v58, %v1030_v9  ;;  %v1073_v56 = vand.u32 2147483648, %v5022_v55  ;;  %v1134_v10 = vmul.f32 %v1133_v40, %v4688_v6  ;;  %vm1068_vm0 = vweird.f32 %v4006_v30  ;;  %v415_v40 = vpop.f32.mrf.mxu0 }
 0x16c   : > { %v1036_v1 = vmul.f32 %v1035_v17, %v4835_v48  ;;  %v1065_v12 = vmul.f32 %v4006_v30, %v1064_v42  ;;  %v1172_v38 = vmul.f32 3.8918573e-05, %v4701_v21  ;;  %v1408_v27 = vadd.f32 0.18741608, %v1407_v25 }
 0x16d   : > { %v4008_v15 = vpop.eup %4007  ;;  %v5077_v5 = vmul.f32 %v1446_v60, %v4952_v33  ;;  %v1484_v47 = vadd.f32 0.0036580483, %v1483_v29  ;;  %v1522_v51 = vadd.f32 0.00028619796, %v1521_v28  ;;  %vm1067_vm1 = vweird.f32 %v5022_v55 }
 0x16e   : > { %v3841_v19 = vclamps-f32 %v1036_v1, 1.0  ;;  %v1066_v16 = vadd.f32 %v4006_v30, %v1065_v12  ;;  %v1103_v58 = vmul.f32 %v4008_v15, %v5050_v52  ;;  %v1561_v48 = vmul.f32 2.1237322e-06, %v5069_v31  ;;  %vm1069_vm2 = vmor %vm1067_vm1, %vm1068_vm0 }
 0x16f   : > { %vm1072_vm3 = vcmp.eq.f32.partialorder %v1071_v13, 8.507059e+37  ;;  %v1074_v9 = vor.u32 1.1754944e-38, %v1073_v56  ;;  %v1135_v42 = vadd.f32 0.014752088, %v1134_v10  ;;  %v1173_v60 = vadd.f32 0.001143296, %v1172_v38 }
 0x170   : > { %v3286_v17 = vadd.f32 1.0, %v3841_v19  ;;  %v1070_v25 = vsel %vm1069_vm2, %v4006_v30, %v1066_v16  ;;  %v1104_v11 = vsub.f32 1.0, %v1103_v58  ;;  %v1111_v29 = vand.u32 2147483647, %v5050_v52  ;;  %v528_v16 = vpop.f32.mrf.mxu1 }
 0x171   : > { %v1075_v35 = vsel %vm1072_vm3, %v1074_v9, %v1070_v25  ;;  %v1113_v28 = vand.u32 2147483648, %v5050_v52  ;;  %v5085_v55 = vadd.f32 %v415_v40, %v4505_v53  ;;  %vm1108_vm4 = vweird.f32 %v4008_v15 }
 0x172   : > { %v3350_v1 = vmul.f32 %v3286_v17, %v5027_v0  ;;  %v1076_v12 = vmul.f32 %v1075_v35, %v4946_v49  ;;  %v1105_v14 = vmul.f32 %v4008_v15, %v1104_v11  ;;  %v1485_v13 = vmul.f32 %v1484_v47, %v5009_v23 }
 0x173   : > { %v1523_v30 = vmul.f32 %v1522_v51, %v5048_v37  ;;  %v1562_v56 = vadd.f32 0.00028619796, %v1561_v48  ;;  %v1136_v10 = vmul.f32 %v1135_v42, %v4688_v6  ;;  %vm1107_vm5 = vweird.f32 %v5050_v52 }
 0x174   : > { %3581 = vmatmul.f32.gmra.mxu3 %v3350_v1  ;;  %v3842_v38 = vclamps-f32 %v1076_v12, 1.0  ;;  %v1106_v19 = vadd.f32 %v4008_v15, %v1105_v14  ;;  %v1174_v58 = vmul.f32 %v1173_v60, %v4701_v21  ;;  %vm1109_vm6 = vmor %vm1107_vm5, %vm1108_vm4  ;;  %vm1112_vm7 = vcmp.eq.f32.partialorder %v1111_v29, 8.507059e+37 }
 0x175   : > { %v1114_v49 = vor.u32 1.1754944e-38, %v1113_v28  ;;  %v5095_v0 = vmul.f32 0.70710677, %v5085_v55  ;;  %v1137_v11 = vadd.f32 0.112945676, %v1136_v10  ;;  %v5099_v14 = vadd.f32 %v528_v16, %v4511_v62  ;;  %v7477_v16 = vld [vmem:[#allocation18_spill] sm:$0xff] }
 0x176   : > { %v3287_v35 = vadd.f32 1.0, %v3842_v38  ;;  %v1110_v47 = vsel %vm1109_vm6, %v4008_v15, %v1106_v19  ;;  %v1175_v51 = vadd.f32 0.014752088, %v1174_v58  ;;  %v1212_v40 = vmul.f32 3.8918573e-05, %v4707_v34 }
 0x177   : > { %v1524_v48 = vadd.f32 0.0036580483, %v1523_v30  ;;  %v1115_v9 = vsel %vm1112_vm7, %v1114_v49, %v1110_v47  ;;  %v1138_v52 = vmul.f32 %v1137_v11, %v4688_v6  ;;  %v1370_v29 = vadd.f32 1.1283791, %v5062_v39  ;;  %v323_v47 = vld [vmem:[%s4475_s11 + $0xe0] sm:$0xff] }
 0x178   : > { %v3351_v42 = vmul.f32 %v3287_v35, %v5058_v4  ;;  %v1116_v17 = vmul.f32 %v1115_v9, %v4960_v36  ;;  %v1176_v25 = vmul.f32 %v1175_v51, %v4701_v21  ;;  %v1213_v60 = vadd.f32 0.001143296, %v1212_v40  ;;  %465 = vmatmul.f32.gmra.mxu0 %v323_v47  ;;  %578 = vmatmul.f32.gmra.mxu1 %v323_v47 }
 0x179   : > { %v1486_v15 = vadd.f32 0.05243302, %v1485_v13  ;;  %v1599_v28 = vmul.f32 %v5095_v0, %v5095_v0  ;;  %v1139_v1 = vadd.f32 0.4994258, %v1138_v52  ;;  %v1563_v12 = vmul.f32 %v1562_v56, %v5069_v31 }
 0x17a   : > { %3471 = vmatmul.f32.gmra.mxu2 %v3351_v42  ;;  %v3843_v30 = vclamps-f32 %v1116_v17, 1.0  ;;  %v1177_v10 = vadd.f32 0.112945676, %v1176_v25  ;;  %v1214_v4 = vmul.f32 %v1213_v60, %v4707_v34  ;;  %v1409_v36 = vmul.f32 %v1408_v27, %v4917_v26 }
 0x17b   : > { %v1525_v38 = vmul.f32 %v1524_v48, %v5048_v37  ;;  %v5113_v19 = vmul.f32 0.70710677, %v5099_v14  ;;  %v1140_v39 = vmul.f32 %v1139_v1, %v4688_v6  ;;  %v1448_v13 = vadd.f32 0.18741608, %v5077_v5 }
 0x17c   : > { %v600_v58 = vmul.f32 0.5, %v7477_v16  ;;  %v3288_v56 = vadd.f32 1.0, %v3843_v30  ;;  %v1178_v49 = vmul.f32 %v1177_v10, %v4701_v21  ;;  %v5120_v11 = vmul.f32 0.5, %v4876_v22 }
 0x17d   : > { %v5122_v35 = vmin.f32 %v1599_v28, 16.0  ;;  %v5124_v27 = vadd.f32 1.0, %v1140_v39  ;;  %v1215_v51 = vadd.f32 0.014752088, %v1214_v4  ;;  %v1487_v40 = vmul.f32 %v1486_v15, %v5009_v23  ;;  %v7480_v4 = vld [vmem:[#allocation20_spill] sm:$0xff] }
 0x17e   : > { %v1564_v48 = vadd.f32 0.0036580483, %v1563_v12  ;;  %v3352_v6 = vmul.f32 %v3288_v56, %v600_v58  ;;  %v1179_v9 = vadd.f32 0.4994258, %v1178_v49  ;;  %v1410_v5 = vadd.f32 1.1283791, %v1409_v36  ;;  %v418_v12 = vpop.f32.mrf.mxu0 }
 0x17f   : > { %v1526_v52 = vadd.f32 0.05243302, %v1525_v38  ;;  %v1639_v42 = vmul.f32 %v5113_v19, %v5113_v19  ;;  %4009 = vrcp.f32 %v5124_v27  ;;  %v5133_v22 = vmul.f32 %v5029_v20, %v4769_v18  ;;  %v7481_v38 = vld [vmem:[#allocation23_spill] sm:$0xff] }
 0x180   : > { %v5137_v17 = vmul.f32 %v5037_v24, %v4785_v46  ;;  %v5140_v25 = vmul.f32 0.5, %v4920_v45  ;;  %3584 = vmatmul.f32.gmra.mxu3 %v3352_v6  ;;  %v1180_v60 = vmul.f32 %v1179_v9, %v4701_v21  ;;  %v5144_v15 = vmul.f32 %v1370_v29, %v4870_v2 }
 0x181   : > { %v5147_v28 = vmul.f32 0.5, %v4955_v54  ;;  %v1601_v1 = vmul.f32 2.1237322e-06, %v5122_v35  ;;  %v1216_v18 = vmul.f32 %v1215_v51, %v4707_v34  ;;  %v1449_v20 = vmul.f32 %v1448_v13, %v4952_v33  ;;  %v7478_v54 = vld [vmem:[#allocation19_spill] sm:$0xff] }
 0x182   : > { %v1488_v46 = vadd.f32 0.18741608, %v1487_v40  ;;  %v1565_v24 = vmul.f32 %v1564_v48, %v5069_v31  ;;  %v5153_v45 = vadd.f32 1.0, %v1180_v60  ;;  %v5156_v21 = vmul.f32 %v1410_v5, %v4892_v43  ;;  %v531_v40 = vpop.f32.mrf.mxu1 }
 0x183   : > { %v1527_v2 = vmul.f32 %v1526_v52, %v5048_v37  ;;  %v5159_v29 = vmin.f32 %v1639_v42, 16.0  ;;  %v5162_v30 = vmul.f32 0.5, %v7478_v54  ;;  %v5165_v10 = vmul.f32 0.5, %v5002_v59 }
 0x184   : > { %v5168_v36 = vmul.f32 0.5, %v7480_v4  ;;  %4011 = vrcp.f32 %v5153_v45  ;;  %v1252_v39 = vmul.f32 3.8918573e-05, %v7481_v38  ;;  %v5173_v43 = vmul.f32 0.5, %v5019_v7 }
 0x185   : > { %7479 = vst [vmem:[#allocation17_spill] sm:$0xff] %v5165_v10  ;;  %v4010_v13 = vpop.eup %4009  ;;  %v1602_v16 = vadd.f32 0.00028619796, %v1601_v1  ;;  %v5176_v58 = vadd.f32 %v418_v12, %v4505_v53  ;;  %v1217_v56 = vadd.f32 0.112945676, %v1216_v18  ;;  %v5181_v59 = vmul.f32 %v1488_v46, %v5009_v23 }
 0x186   : > { %7482 = vst [vmem:[#allocation18_spill] sm:$0xff] %v5173_v43  ;;  %v5178_v49 = vadd.f32 1.1283791, %v1449_v20  ;;  %v1566_v47 = vadd.f32 0.05243302, %v1565_v24  ;;  %v1143_v51 = vmul.f32 %v4010_v13, %v5124_v27  ;;  %v1153_v52 = vand.u32 2147483648, %v5124_v27 }
 0x187   : > { %v5184_v48 = vadd.f32 0.18741608, %v1527_v2  ;;  %v1641_v6 = vmul.f32 2.1237322e-06, %v5159_v29  ;;  %v1151_v7 = vand.u32 2147483647, %v5124_v27  ;;  %v1218_v9 = vmul.f32 %v1217_v56, %v4707_v34 }
 0x188   : > { %v1144_v5 = vsub.f32 1.0, %v1143_v51  ;;  %v1253_v42 = vadd.f32 0.001143296, %v1252_v39  ;;  %v1292_v60 = vmul.f32 3.8918573e-05, %v4791_v44  ;;  %v1603_v1 = vmul.f32 %v1602_v16, %v5122_v35 }
 0x189   : > { %v5193_v18 = vmul.f32 0.70710677, %v5176_v58  ;;  %v5196_v20 = vadd.f32 %v531_v40, %v4511_v62  ;;  %v1219_v46 = vadd.f32 0.4994258, %v1218_v9  ;;  %vm1148_vm8 = vweird.f32 %v4010_v13 }
 0x18a   : > { %v4012_v24 = vpop.eup %4011  ;;  %v1145_v12 = vmul.f32 %v4010_v13, %v1144_v5  ;;  %v1254_v2 = vmul.f32 %v1253_v42, %v7481_v38  ;;  %v1293_v54 = vadd.f32 0.001143296, %v1292_v60  ;;  %v1642_v4 = vadd.f32 0.00028619796, %v1641_v6 }
 0x18b   : > { %vm1147_vm9 = vweird.f32 %v5124_v27  ;;  %vm1152_vm10 = vcmp.eq.f32.partialorder %v1151_v7, 8.507059e+37  ;;  %v1183_v39 = vmul.f32 %v4012_v24, %v5153_v45  ;;  %v1154_v56 = vor.u32 1.1754944e-38, %v1153_v52 }
 0x18c   : > { %v1146_v16 = vadd.f32 %v4010_v13, %v1145_v12  ;;  %v1220_v51 = vmul.f32 %v1219_v46, %v4707_v34  ;;  %v1255_v43 = vadd.f32 0.014752088, %v1254_v2  ;;  %vm1149_vm11 = vmor %vm1147_vm9, %vm1148_vm8  ;;  %v1193_v9 = vand.u32 2147483648, %v5153_v45 }
 0x18d   : > { %v1184_v40 = vsub.f32 1.0, %v1183_v39  ;;  %v1679_v5 = vmul.f32 %v5193_v18, %v5193_v18  ;;  %v5206_v42 = vmul.f32 0.70710677, %v5196_v20  ;;  %v1294_v52 = vmul.f32 %v1293_v54, %v4791_v44 }
 0x18e   : > { %v1150_v6 = vsel %vm1149_vm11, %v4010_v13, %v1146_v16  ;;  %v5208_v27 = vadd.f32 1.0, %v1220_v51  ;;  %v1256_v7 = vmul.f32 %v1255_v43, %v7481_v38  ;;  %vm1188_vm12 = vweird.f32 %v4012_v24 }
 0x18f   : > { %v1155_v60 = vsel %vm1152_vm10, %v1154_v56, %v1150_v6  ;;  %v1185_v34 = vmul.f32 %v4012_v24, %v1184_v40  ;;  %v1191_v46 = vand.u32 2147483647, %v5153_v45  ;;  %v1643_v12 = vmul.f32 %v1642_v4, %v5159_v29 }
 0x190   : > { %v1156_v2 = vmul.f32 %v1155_v60, %v4970_v63  ;;  %vm1187_vm13 = vweird.f32 %v5153_v45  ;;  %4013 = vrcp.f32 %v5208_v27  ;;  %v5217_v39 = vmin.f32 %v1679_v5, 16.0 }
 0x191   : > { %v1186_v13 = vadd.f32 %v4012_v24, %v1185_v34  ;;  %v1719_v43 = vmul.f32 %v5206_v42, %v5206_v42  ;;  %v1332_v54 = vmul.f32 3.8918573e-05, %v4814_v41  ;;  %vm1189_vm14 = vmor %vm1187_vm13, %vm1188_vm12  ;;  %v1194_v56 = vor.u32 1.1754944e-38, %v1193_v9 }
 0x192   : > { %v3844_v16 = vclamps-f32 %v1156_v2, 1.0  ;;  %v1257_v51 = vadd.f32 0.112945676, %v1256_v7  ;;  %v1295_v40 = vadd.f32 0.014752088, %v1294_v52  ;;  %v1567_v63 = vmul.f32 %v1566_v47, %v5069_v31 }
 0x193   : > { %v1604_v4 = vadd.f32 0.0036580483, %v1603_v1  ;;  %v1190_v45 = vsel %vm1189_vm14, %v4012_v24, %v1186_v13  ;;  %vm1192_vm15 = vcmp.eq.f32.partialorder %v1191_v46, 8.507059e+37  ;;  %v1644_v6 = vadd.f32 0.0036580483, %v1643_v12  ;;  %v324_v24 = vld [vmem:[%s4475_s11 + $0xe8] sm:$0xff] }
 0x194   : > { %v3289_v60 = vadd.f32 1.0, %v3844_v16  ;;  %v1195_v5 = vsel %vm1192_vm15, %v1194_v56, %v1190_v45  ;;  %v1258_v34 = vmul.f32 %v1257_v51, %v7481_v38  ;;  %v5226_v10 = vmul.f32 %v5178_v49, %v4929_v50  ;;  %468 = vmatmul.f32.gmra.mxu0 %v324_v24  ;;  %581 = vmatmul.f32.gmra.mxu1 %v324_v24 }
 0x195   : > { %v1196_v2 = vmul.f32 %v1195_v5, %v4974_v57  ;;  %v1681_v9 = vmul.f32 2.1237322e-06, %v5217_v39  ;;  %v5230_v7 = vmin.f32 %v1719_v43, 16.0  ;;  %v1296_v46 = vmul.f32 %v1295_v40, %v4791_v44 }
 0x196   : > { %v4014_v52 = vpop.eup %4013  ;;  %v3353_v47 = vmul.f32 %v3289_v60, %v5162_v30  ;;  %v1259_v1 = vadd.f32 0.4994258, %v1258_v34  ;;  %v1333_v12 = vadd.f32 0.001143296, %v1332_v54  ;;  %v1490_v13 = vadd.f32 1.1283791, %v5181_v59 }
 0x197   : > { %v1529_v50 = vmul.f32 %v5184_v48, %v5048_v37  ;;  %v3845_v49 = vclamps-f32 %v1196_v2, 1.0  ;;  %v1223_v57 = vmul.f32 %v4014_v52, %v5208_v27  ;;  %v1568_v43 = vadd.f32 0.18741608, %v1567_v63 }
 0x198   : > { %v1605_v16 = vmul.f32 %v1604_v4, %v5122_v35  ;;  %v1645_v30 = vmul.f32 %v1644_v6, %v5159_v29  ;;  %3474 = vmatmul.f32.gmra.mxu2 %v3353_v47  ;;  %v1260_v56 = vmul.f32 %v1259_v1, %v7481_v38  ;;  %v1682_v54 = vadd.f32 0.00028619796, %v1681_v9 }
 0x199   : > { %v3290_v51 = vadd.f32 1.0, %v3845_v49  ;;  %v1721_v59 = vmul.f32 2.1237322e-06, %v5230_v7  ;;  %v1224_v40 = vsub.f32 1.0, %v1223_v57  ;;  %v1233_v48 = vand.u32 2147483648, %v5208_v27 }
 0x19a   : > { %v5244_v45 = vadd.f32 1.0, %v1260_v56  ;;  %v1297_v60 = vadd.f32 0.112945676, %v1296_v46  ;;  %v1334_v5 = vmul.f32 %v1333_v12, %v4814_v41  ;;  %vm1228_vm0 = vweird.f32 %v4014_v52 }
 0x19b   : > { %v3354_v63 = vmul.f32 %v3290_v51, %v5168_v36  ;;  %v1225_v4 = vmul.f32 %v4014_v52, %v1224_v40  ;;  %v1231_v6 = vand.u32 2147483647, %v5208_v27  ;;  %v5250_v38 = vmul.f32 %v1490_v13, %v4978_v61  ;;  %v421_v36 = vpop.f32.mrf.mxu0 }
 0x19c   : > { %v1530_v34 = vadd.f32 1.1283791, %v1529_v50  ;;  %v5253_v2 = vmul.f32 0.5, %v5085_v55  ;;  %4015 = vrcp.f32 %v5244_v45  ;;  %v1569_v9 = vmul.f32 %v1568_v43, %v5069_v31 }
 0x19d   : > { %3587 = vmatmul.f32.gmra.mxu3 %v3354_v63  ;;  %v1683_v47 = vmul.f32 %v1682_v54, %v5217_v39  ;;  %v1226_v1 = vadd.f32 %v4014_v52, %v1225_v4  ;;  %vm1227_vm1 = vweird.f32 %v5208_v27  ;;  %v1606_v24 = vadd.f32 0.05243302, %v1605_v16 }
 0x19e   : > { %7483 = vst [vmem:[#allocation19_spill] sm:$0xff] %v5253_v2  ;;  %vm1229_vm2 = vmor %vm1227_vm1, %vm1228_vm0  ;;  %v1234_v46 = vor.u32 1.1754944e-38, %v1233_v48  ;;  %v1298_v61 = vmul.f32 %v1297_v60, %v4791_v44  ;;  %v1335_v12 = vadd.f32 0.014752088, %v1334_v5  ;;  %v1646_v13 = vadd.f32 0.05243302, %v1645_v30  ;;  %v534_v48 = vpop.f32.mrf.mxu1 }
 0x19f   : > { %v1722_v55 = vadd.f32 0.00028619796, %v1721_v59  ;;  %v1230_v50 = vsel %vm1229_vm2, %v4014_v52, %v1226_v1  ;;  %vm1232_vm3 = vcmp.eq.f32.partialorder %v1231_v6, 8.507059e+37  ;;  %v5261_v57 = vadd.f32 %v421_v36, %v4505_v53  ;;  %v7485_v52 = vld [vmem:[#allocation21_spill] sm:$0xff] }
 0x1a0   : > { %v1235_v49 = vsel %vm1232_vm3, %v1234_v46, %v1230_v50  ;;  %v1299_v43 = vadd.f32 0.4994258, %v1298_v61  ;;  %v1336_v56 = vmul.f32 %v1335_v12, %v4814_v41  ;;  %v5265_v27 = vmul.f32 %v1530_v34, %v5013_v3 }
 0x1a1   : > { %v5268_v16 = vmul.f32 0.5, %v5099_v14  ;;  %v1684_v51 = vadd.f32 0.0036580483, %v1683_v47  ;;  %v1236_v54 = vmul.f32 %v1235_v49, %v4982_v32  ;;  %v5271_v59 = vadd.f32 1.1283791, %v1569_v9  ;;  %v7487_v49 = vld [vmem:[#allocation22_spill] sm:$0xff] }
 0x1a2   : > { %v4016_v30 = vpop.eup %4015  ;;  %v603_v40 = vmul.f32 0.5, %v7485_v52  ;;  %v1300_v60 = vmul.f32 %v1299_v43, %v4791_v44  ;;  %v1337_v5 = vadd.f32 0.112945676, %v1336_v56  ;;  %v1607_v63 = vmul.f32 %v1606_v24, %v5122_v35 }
 0x1a3   : > { %7484 = vst [vmem:[#allocation20_spill] sm:$0xff] %v5268_v16  ;;  %v1647_v3 = vmul.f32 %v1646_v13, %v5159_v29  ;;  %v3846_v4 = vclamps-f32 %v1236_v54, 1.0  ;;  %v1263_v14 = vmul.f32 %v4016_v30, %v5244_v45  ;;  %v1723_v6 = vmul.f32 %v1722_v55, %v5230_v7  ;;  %v325_v54 = vld [vmem:[%s4475_s11 + $0xf0] sm:$0xff] }
 0x1a4   : > { %v5280_v32 = vmul.f32 0.70710677, %v5261_v57  ;;  %v5282_v34 = vadd.f32 1.0, %v1300_v60  ;;  %v1338_v9 = vmul.f32 %v1337_v5, %v4814_v41  ;;  %v1685_v47 = vmul.f32 %v1684_v51, %v5217_v39  ;;  %471 = vmatmul.f32.gmra.mxu0 %v325_v54  ;;  %584 = vmatmul.f32.gmra.mxu1 %v325_v54 }
 0x1a5   : > { %v3291_v44 = vadd.f32 1.0, %v3846_v4  ;;  %v1264_v1 = vsub.f32 1.0, %v1263_v14  ;;  %v5287_v36 = vadd.f32 %v534_v48, %v4511_v62  ;;  %v1271_v24 = vand.u32 2147483647, %v5244_v45 }
 0x1a6   : > { %7486 = vst [vmem:[#allocation23_spill] sm:$0xff] %v5280_v32  ;;  %v1273_v46 = vand.u32 2147483648, %v5244_v45  ;;  %4017 = vrcp.f32 %v5282_v34  ;;  %v1372_v61 = vmul.f32 3.8918573e-05, %v4897_v8  ;;  %vm1268_vm4 = vweird.f32 %v4016_v30 }
 0x1a7   : > { %v3355_v12 = vmul.f32 %v3291_v44, %v603_v40  ;;  %v1265_v13 = vmul.f32 %v4016_v30, %v1264_v1  ;;  %v1412_v55 = vmul.f32 3.8918573e-05, %v4917_v26  ;;  %v1724_v50 = vadd.f32 0.0036580483, %v1723_v6 }
 0x1a8   : > { %v604_v43 = vmul.f32 0.5, %v7487_v49  ;;  %v1759_v56 = vmul.f32 %v5280_v32, %v5280_v32  ;;  %v1339_v51 = vadd.f32 0.4994258, %v1338_v9  ;;  %v1608_v52 = vadd.f32 0.18741608, %v1607_v63  ;;  %v424_v9 = vpop.f32.mrf.mxu0  ;;  %v7489_v49 = vld [vmem:[#allocation26_spill] sm:$0xff] }
 0x1a9   : > { %v1648_v48 = vadd.f32 0.18741608, %v1647_v3  ;;  %3477 = vmatmul.f32.gmra.mxu2 %v3355_v12  ;;  %v1266_v60 = vadd.f32 %v4016_v30, %v1265_v13  ;;  %vm1267_vm5 = vweird.f32 %v5244_v45  ;;  %v1274_v40 = vor.u32 1.1754944e-38, %v1273_v46 }
 0x1aa   : > { %vm1269_vm6 = vmor %vm1267_vm5, %vm1268_vm4  ;;  %v5300_v5 = vmul.f32 0.70710677, %v5287_v36  ;;  %v1340_v4 = vmul.f32 %v1339_v51, %v4814_v41  ;;  %v1373_v14 = vadd.f32 0.001143296, %v1372_v61  ;;  %v1686_v6 = vadd.f32 0.05243302, %v1685_v47 }
 0x1ab   : > { %v1270_v44 = vsel %vm1269_vm6, %v4016_v30, %v1266_v60  ;;  %vm1272_vm7 = vcmp.eq.f32.partialorder %v1271_v24, 8.507059e+37  ;;  %v1413_v63 = vadd.f32 0.001143296, %v1412_v55  ;;  %v1725_v1 = vmul.f32 %v1724_v50, %v5230_v7  ;;  %v7490_v51 = vld [vmem:[#allocation24_spill] sm:$0xff] }
 0x1ac   : > { %7488 = vst [vmem:[#allocation21_spill] sm:$0xff] %v5300_v5  ;;  %v4018_v3 = vpop.eup %4017  ;;  %v1275_v12 = vsel %vm1272_vm7, %v1274_v40, %v1270_v44  ;;  %v5304_v45 = vmin.f32 %v1759_v56, 16.0  ;;  %v5306_v13 = vadd.f32 1.0, %v1340_v4  ;;  %v5309_v46 = vmul.f32 %v1608_v52, %v5122_v35  ;;  %v537_v52 = vpop.f32.mrf.mxu1 }
 0x1ad   : > { %v1276_v41 = vmul.f32 %v1275_v12, %v7489_v49  ;;  %v5313_v61 = vmul.f32 0.5, %v7490_v51  ;;  %v1303_v30 = vmul.f32 %v4018_v3, %v5282_v34  ;;  %v1799_v47 = vmul.f32 %v5300_v5, %v5300_v5 }
 0x1ae   : > { %4019 = vrcp.f32 %v5306_v13  ;;  %v5320_v24 = vadd.f32 %v424_v9, %v4505_v53  ;;  %v1374_v55 = vmul.f32 %v1373_v14, %v4897_v8  ;;  %v5324_v50 = vmul.f32 %v1648_v48, %v5159_v29 }
 0x1af   : > { %v3847_v56 = vclamps-f32 %v1276_v41, 1.0  ;;  %v1304_v54 = vsub.f32 1.0, %v1303_v30  ;;  %v1414_v60 = vmul.f32 %v1413_v63, %v4917_v26  ;;  %v5328_v40 = vmul.f32 %v1686_v6, %v5217_v39 }
 0x1b0   : > { %v1726_v4 = vadd.f32 0.05243302, %v1725_v1  ;;  %v1761_v44 = vmul.f32 2.1237322e-06, %v5304_v45  ;;  %v1313_v12 = vand.u32 2147483648, %v5282_v34  ;;  %vm1308_vm8 = vweird.f32 %v4018_v3 }
 0x1b1   : > { %v3292_v9 = vadd.f32 1.0, %v3847_v56  ;;  %v1305_v49 = vmul.f32 %v4018_v3, %v1304_v54  ;;  %v1311_v14 = vand.u32 2147483647, %v5282_v34  ;;  %v5333_v48 = vmin.f32 %v1799_v47, 16.0 }
 0x1b2   : > { %v5336_v41 = vmul.f32 0.70710677, %v5320_v24  ;;  %v5339_v63 = vadd.f32 %v537_v52, %v4511_v62  ;;  %v1375_v6 = vadd.f32 0.014752088, %v1374_v55  ;;  %vm1307_vm9 = vweird.f32 %v5282_v34 }
 0x1b3   : > { %v3356_v51 = vmul.f32 %v3292_v9, %v604_v43  ;;  %v1306_v1 = vadd.f32 %v4018_v3, %v1305_v49  ;;  %v1415_v30 = vadd.f32 0.014752088, %v1414_v60  ;;  %v1762_v56 = vadd.f32 0.00028619796, %v1761_v44  ;;  %vm1309_vm10 = vmor %vm1307_vm9, %vm1308_vm8 }
 0x1b4   : > { %7491 = vst [vmem:[#allocation22_spill] sm:$0xff] %v5336_v41  ;;  %v4020_v16 = vpop.eup %4019  ;;  %v1314_v54 = vor.u32 1.1754944e-38, %v1313_v12  ;;  %v1376_v2 = vmul.f32 %v1375_v6, %v4897_v8  ;;  %v1452_v47 = vmul.f32 3.8918573e-05, %v4952_v33  ;;  %vm1312_vm11 = vcmp.eq.f32.partialorder %v1311_v14, 8.507059e+37 }
 0x1b5   : > { %3590 = vmatmul.f32.gmra.mxu3 %v3356_v51  ;;  %v1310_v5 = vsel %vm1309_vm10, %v4018_v3, %v1306_v1  ;;  %v1343_v52 = vmul.f32 %v4020_v16, %v5306_v13  ;;  %v1416_v55 = vmul.f32 %v1415_v30, %v4917_v26  ;;  %v1801_v43 = vmul.f32 2.1237322e-06, %v5333_v48 }
 0x1b6   : > { %v1315_v9 = vsel %vm1312_vm11, %v1314_v54, %v1310_v5  ;;  %v1839_v34 = vmul.f32 %v5336_v41, %v5336_v41  ;;  %v5350_v60 = vmul.f32 0.70710677, %v5339_v63  ;;  %v1377_v49 = vadd.f32 0.112945676, %v1376_v2 }
 0x1b7   : > { %v1316_v44 = vmul.f32 %v1315_v9, %v5133_v22  ;;  %v1344_v12 = vsub.f32 1.0, %v1343_v52  ;;  %v1417_v6 = vadd.f32 0.112945676, %v1416_v55  ;;  %vm1348_vm12 = vweird.f32 %v4020_v16 }
 0x1b8   : > { %v1351_v3 = vand.u32 2147483647, %v5306_v13  ;;  %v1353_v14 = vand.u32 2147483648, %v5306_v13  ;;  %v1453_v51 = vadd.f32 0.001143296, %v1452_v47  ;;  %v1378_v5 = vmul.f32 %v1377_v49, %v4897_v8 }
 0x1b9   : > { %v3848_v1 = vclamps-f32 %v1316_v44, 1.0  ;;  %v1345_v30 = vmul.f32 %v4020_v16, %v1344_v12  ;;  %v1418_v54 = vmul.f32 %v1417_v6, %v4917_v26  ;;  %v1763_v41 = vmul.f32 %v1762_v56, %v5304_v45 }
 0x1ba   : > { %v1802_v32 = vadd.f32 0.00028619796, %v1801_v43  ;;  %vm1347_vm13 = vweird.f32 %v5306_v13  ;;  %v1454_v22 = vmul.f32 %v1453_v51, %v4952_v33  ;;  %v1379_v55 = vadd.f32 0.4994258, %v1378_v5 }
 0x1bb   : > { %v3293_v2 = vadd.f32 1.0, %v3848_v1  ;;  %v1346_v52 = vadd.f32 %v4020_v16, %v1345_v30  ;;  %v1419_v9 = vadd.f32 0.4994258, %v1418_v54  ;;  %vm1349_vm14 = vmor %vm1347_vm13, %vm1348_vm12  ;;  %vm1352_vm15 = vcmp.eq.f32.partialorder %v1351_v3, 8.507059e+37 }
 0x1bc   : > { %v1354_v47 = vor.u32 1.1754944e-38, %v1353_v14  ;;  %v5361_v44 = vmin.f32 %v1839_v34, 16.0  ;;  %v1879_v12 = vmul.f32 %v5350_v60, %v5350_v60  ;;  %v1380_v13 = vmul.f32 %v1379_v55, %v4897_v8 }
 0x1bd   : > { %v3357_v56 = vmul.f32 %v3293_v2, %v5313_v61  ;;  %v1350_v43 = vsel %vm1349_vm14, %v4020_v16, %v1346_v52  ;;  %v1420_v49 = vmul.f32 %v1419_v9, %v4917_v26  ;;  %v1727_v6 = vmul.f32 %v1726_v4, %v5230_v7  ;;  %v7492_v2 = vld [vmem:[#allocation25_spill] sm:$0xff] }
 0x1be   : > { %v1764_v51 = vadd.f32 0.0036580483, %v1763_v41  ;;  %v1355_v1 = vsel %vm1352_vm15, %v1354_v47, %v1350_v43  ;;  %v1492_v3 = vmul.f32 3.8918573e-05, %v5009_v23  ;;  %v5371_v14 = vadd.f32 1.0, %v1380_v13  ;;  %v326_v41 = vld [vmem:[%s4475_s11 + $0xf8] sm:$0xff] }
 0x1bf   : > { %3480 = vmatmul.f32.gmra.mxu2 %v3357_v56  ;;  %v1356_v34 = vmul.f32 %v1355_v1, %v5137_v17  ;;  %v5373_v30 = vadd.f32 1.0, %v1420_v49  ;;  %v1455_v61 = vadd.f32 0.014752088, %v1454_v22  ;;  %v5376_v16 = vmul.f32 0.5, %v5176_v58  ;;  %474 = vmatmul.f32.gmra.mxu0 %v326_v41  ;;  %s4255_s11 = scalar_lea.hbm %s4254_s22, 256 }
 0x1c0   : > { %v1803_v8 = vmul.f32 %v1802_v32, %v5333_v48  ;;  %v1841_v26 = vmul.f32 2.1237322e-06, %v5361_v44  ;;  %v5380_v4 = vmin.f32 %v1879_v12, 16.0  ;;  %v1610_v5 = vadd.f32 1.1283791, %v5309_v46  ;;  %587 = vmatmul.f32.gmra.mxu1 %v326_v41  ;;  %v427_v32 = vpop.f32.mrf.mxu0  ;;  %p4256_p1 = scmp.ne.s32.totalorder %s4254_s22, %s4255_s11  ;;  %p4261_p9 = scmp.lt.s32.totalorder %s4259_s16, %s4255_s11 }
 0x1c1   : > { %v1650_v54 = vadd.f32 1.1283791, %v5324_v50  ;;  %v3849_v17 = vclamps-f32 %v1356_v34, 1.0  ;;  %4021 = vrcp.f32 %v5371_v14  ;;  %v1688_v22 = vadd.f32 0.18741608, %v5328_v40  ;;  %v7493_v50 = vld [vmem:[#allocation16_spill] sm:$0xff] }
 0x1c2   : > { %v1728_v58 = vadd.f32 0.18741608, %v1727_v6  ;;  %v606_v52 = vmul.f32 0.5, %v7492_v2  ;;  %4023 = vrcp.f32 %v5373_v30  ;;  %v1765_v55 = vmul.f32 %v1764_v51, %v5304_v45  ;;  %p4257_p4 = pnand %p4256_p1, %p4439_p3  ;;  %p4262_p2 = por %p4261_p9, %p4260_p11 }
 0x1c3   : > { %v3294_v9 = vadd.f32 1.0, %v3849_v17  ;;  %v1456_v46 = vmul.f32 %v1455_v61, %v4952_v33  ;;  %v1493_v47 = vadd.f32 0.001143296, %v1492_v3  ;;  %v5393_v12 = vmul.f32 %v5271_v59, %v7493_v50 }
 0x1c4   : > { %v1804_v56 = vadd.f32 0.0036580483, %v1803_v8  ;;  %v1842_v43 = vadd.f32 0.00028619796, %v1841_v26  ;;  %v1881_v40 = vmul.f32 2.1237322e-06, %v5380_v4  ;;  %v5397_v13 = vmul.f32 %v1610_v5, %v5095_v0  ;;  %p4258_p8 = pneg %p4257_p4 }
 0x1c5   : > { %v5400_v49 = vmul.f32 0.5, %v5196_v20  ;;  %v3358_v6 = vmul.f32 %v3294_v9, %v606_v52  ;;  %v5403_v51 = vadd.f32 %v427_v32, %v4505_v53  ;;  %v5406_v1 = vmul.f32 %v1650_v54, %v5113_v19 }
 0x1c6   : > { %v1689_v59 = vmul.f32 %v1688_v22, %v5217_v39  ;;  %v1729_v3 = vmul.f32 %v1728_v58, %v5230_v7  ;;  %v5411_v34 = vmul.f32 0.5, %v5261_v57  ;;  %v1766_v0 = vadd.f32 0.05243302, %v1765_v55  ;;  %p4263_p10 = pnand %p4262_p2, %p4258_p8 }
 0x1c7   : > { %7494 = vst [vmem:[#allocation26_spill] sm:$0xff] %v5400_v49  ;;  %v4022_v61 = vpop.eup %4021  ;;  %3593 = vmatmul.f32.gmra.mxu3 %v3358_v6  ;;  %v1457_v8 = vadd.f32 0.112945676, %v1456_v46  ;;  %v1494_v20 = vmul.f32 %v1493_v47, %v5009_v23  ;;  %v1532_v26 = vmul.f32 3.8918573e-05, %v5048_v37  ;;  %v1805_v5 = vmul.f32 %v1804_v56, %v5333_v48 }
 0x1c8   : > { %7495 = vst [vmem:[#allocation24_spill] sm:$0xff] %v5411_v34  ;;  %v4024_v41 = vpop.eup %4023  ;;  %v1843_v19 = vmul.f32 %v1842_v43, %v5361_v44  ;;  %v1882_v54 = vadd.f32 0.00028619796, %v1881_v40  ;;  %v1383_v17 = vmul.f32 %v4022_v61, %v5371_v14  ;;  %v1391_v22 = vand.u32 2147483647, %v5371_v14 }
 0x1c9   : > { %v1423_v57 = vmul.f32 %v4024_v41, %v5373_v30  ;;  %v5421_v58 = vmul.f32 0.70710677, %v5403_v51  ;;  %v1458_v2 = vmul.f32 %v1457_v8, %v4952_v33  ;;  %v1393_v32 = vand.u32 2147483648, %v5371_v14 }
 0x1ca   : > { %v1384_v52 = vsub.f32 1.0, %v1383_v17  ;;  %v1495_v55 = vadd.f32 0.014752088, %v1494_v20  ;;  %v1533_v9 = vadd.f32 0.001143296, %v1532_v26  ;;  %v1433_v50 = vand.u32 2147483648, %v5373_v30 }
 0x1cb   : > { %v1424_v46 = vsub.f32 1.0, %v1423_v57  ;;  %v1431_v47 = vand.u32 2147483647, %v5373_v30  ;;  %v1459_v56 = vadd.f32 0.4994258, %v1458_v2  ;;  %vm1388_vm0 = vweird.f32 %v4022_v61  ;;  %v540_v2 = vpop.f32.mrf.mxu1 }
 0x1cc   : > { %v1385_v43 = vmul.f32 %v4022_v61, %v1384_v52  ;;  %v1496_v40 = vmul.f32 %v1495_v55, %v5009_v23  ;;  %v1534_v6 = vmul.f32 %v1533_v9, %v5048_v37  ;;  %vm1387_vm1 = vweird.f32 %v5371_v14 }
 0x1cd   : > { %v1425_v8 = vmul.f32 %v4024_v41, %v1424_v46  ;;  %vm1428_vm2 = vweird.f32 %v4024_v41  ;;  %v1460_v17 = vmul.f32 %v1459_v56, %v4952_v33  ;;  %vm1392_vm3 = vcmp.eq.f32.partialorder %v1391_v22, 8.507059e+37  ;;  %vm1389_vm4 = vmor %vm1387_vm1, %vm1388_vm0 }
 0x1ce   : > { %v1386_v20 = vadd.f32 %v4022_v61, %v1385_v43  ;;  %v1497_v26 = vadd.f32 0.112945676, %v1496_v40  ;;  %v1535_v57 = vadd.f32 0.014752088, %v1534_v6  ;;  %v1394_v34 = vor.u32 1.1754944e-38, %v1393_v32 }
 0x1cf   : > { %v1426_v49 = vadd.f32 %v4024_v41, %v1425_v8  ;;  %vm1427_vm5 = vweird.f32 %v5373_v30  ;;  %v5432_v52 = vadd.f32 1.0, %v1460_v17  ;;  %vm1432_vm7 = vcmp.eq.f32.partialorder %v1431_v47, 8.507059e+37 }
 0x1d0   : > { %v1390_v55 = vsel %vm1389_vm4, %v4022_v61, %v1386_v20  ;;  %vm1429_vm6 = vmor %vm1427_vm5, %vm1428_vm2  ;;  %v1434_v14 = vor.u32 1.1754944e-38, %v1433_v50  ;;  %v1498_v9 = vmul.f32 %v1497_v26, %v5009_v23  ;;  %v1536_v22 = vmul.f32 %v1535_v57, %v5048_v37 }
 0x1d1   : > { %v1395_v46 = vsel %vm1392_vm3, %v1394_v34, %v1390_v55  ;;  %v1430_v33 = vsel %vm1429_vm6, %v4024_v41, %v1426_v49  ;;  %4025 = vrcp.f32 %v5432_v52  ;;  %v1844_v56 = vadd.f32 0.0036580483, %v1843_v19  ;;  %v7496_v55 = vld [vmem:[#allocation15_spill] sm:$0xff] }
 0x1d2   : > { %v1396_v32 = vmul.f32 %v1395_v46, %v5144_v15  ;;  %v1435_v43 = vsel %vm1432_vm7, %v1434_v14, %v1430_v33  ;;  %v5439_v30 = vadd.f32 %v540_v2, %v4511_v62  ;;  %v1690_v40 = vadd.f32 1.1283791, %v1689_v59 }
 0x1d3   : > { %v5442_v61 = vmul.f32 0.5, %v5287_v36  ;;  %v1436_v47 = vmul.f32 %v1435_v43, %v5156_v21  ;;  %v1919_v49 = vmul.f32 %v5421_v58, %v5421_v58  ;;  %v1730_v34 = vadd.f32 1.1283791, %v1729_v3 }
 0x1d4   : > { %v1767_v41 = vmul.f32 %v1766_v0, %v5304_v45  ;;  %v3850_v50 = vclamps-f32 %v1396_v32, 1.0  ;;  %v1499_v19 = vadd.f32 0.4994258, %v1498_v9  ;;  %v1806_v6 = vadd.f32 0.05243302, %v1805_v5 }
 0x1d5   : > { %v1883_v15 = vmul.f32 %v1882_v54, %v5380_v4  ;;  %v3851_v8 = vclamps-f32 %v1436_v47, 1.0  ;;  %v1537_v17 = vadd.f32 0.112945676, %v1536_v22  ;;  %v1845_v59 = vmul.f32 %v1844_v56, %v5361_v44 }
 0x1d6   : > { %v3295_v20 = vadd.f32 1.0, %v3850_v50  ;;  %v5451_v36 = vmul.f32 0.70710677, %v5439_v30  ;;  %v1500_v21 = vmul.f32 %v1499_v19, %v5009_v23  ;;  %v5455_v3 = vmul.f32 %v1690_v40, %v5193_v18  ;;  %v430_v18 = vpop.f32.mrf.mxu0 }
 0x1d7   : > { %v4026_v26 = vpop.eup %4025  ;;  %v3296_v0 = vadd.f32 1.0, %v3851_v8  ;;  %v5457_v57 = vmin.f32 %v1919_v49, 16.0  ;;  %v1572_v5 = vmul.f32 3.8918573e-05, %v5069_v31  ;;  %v5461_v54 = vmul.f32 %v1730_v34, %v5206_v42 }
 0x1d8   : > { %v1768_v2 = vadd.f32 0.18741608, %v1767_v41  ;;  %v3359_v14 = vmul.f32 %v3295_v20, %v7496_v55  ;;  %v1463_v9 = vmul.f32 %v4026_v26, %v5432_v52  ;;  %v1807_v46 = vmul.f32 %v1806_v6, %v5333_v48 }
 0x1d9   : > { %v3360_v23 = vmul.f32 %v3296_v0, %v5120_v11  ;;  %v5467_v33 = vadd.f32 1.0, %v1500_v21  ;;  %v1538_v22 = vmul.f32 %v1537_v17, %v5048_v37  ;;  %v1846_v56 = vadd.f32 0.05243302, %v1845_v59 }
 0x1da   : > { %v1884_v32 = vadd.f32 0.0036580483, %v1883_v15  ;;  %3483 = vmatmul.f32.gmra.mxu2 %v3359_v14  ;;  %v1959_v42 = vmul.f32 %v5451_v36, %v5451_v36  ;;  %v1464_v43 = vsub.f32 1.0, %v1463_v9  ;;  %v1921_v40 = vmul.f32 2.1237322e-06, %v5457_v57  ;;  %v543_v14 = vpop.f32.mrf.mxu1 }
 0x1db   : > { %3596 = vmatmul.f32.gmra.mxu3 %v3360_v23  ;;  %v1473_v47 = vand.u32 2147483648, %v5432_v52  ;;  %4027 = vrcp.f32 %v5467_v33  ;;  %v1573_v11 = vadd.f32 0.001143296, %v1572_v5  ;;  %vm1468_vm8 = vweird.f32 %v4026_v26 }
 0x1dc   : > { %v1465_v49 = vmul.f32 %v4026_v26, %v1464_v43  ;;  %v1471_v34 = vand.u32 2147483647, %v5432_v52  ;;  %v5477_v41 = vadd.f32 %v430_v18, %v4505_v53  ;;  %v1769_v50 = vmul.f32 %v1768_v2, %v5304_v45 }
 0x1dd   : > { %v1808_v19 = vadd.f32 0.18741608, %v1807_v46  ;;  %v5481_v6 = vmul.f32 0.5, %v5320_v24  ;;  %v1539_v15 = vadd.f32 0.4994258, %v1538_v22  ;;  %v1847_v8 = vmul.f32 %v1846_v56, %v5361_v44 }
 0x1de   : > { %v1885_v17 = vmul.f32 %v1884_v32, %v5380_v4  ;;  %v1466_v59 = vadd.f32 %v4026_v26, %v1465_v49  ;;  %vm1467_vm9 = vweird.f32 %v5432_v52  ;;  %v5486_v20 = vmin.f32 %v1959_v42, 16.0 }
 0x1df   : > { %vm1469_vm10 = vmor %vm1467_vm9, %vm1468_vm8  ;;  %v1474_v21 = vor.u32 1.1754944e-38, %v1473_v47  ;;  %v1540_v0 = vmul.f32 %v1539_v15, %v5048_v37  ;;  %v1574_v5 = vmul.f32 %v1573_v11, %v5069_v31  ;;  %v1922_v2 = vadd.f32 0.00028619796, %v1921_v40 }
 0x1e0   : > { %v1470_v55 = vsel %vm1469_vm10, %v4026_v26, %v1466_v59  ;;  %vm1472_vm11 = vcmp.eq.f32.partialorder %v1471_v34, 8.507059e+37  ;;  %v5491_v24 = vmul.f32 0.70710677, %v5477_v41  ;;  %v1612_v18 = vmul.f32 3.8918573e-05, %v5122_v35 }
 0x1e1   : > { %v4028_v9 = vpop.eup %4027  ;;  %v1475_v46 = vsel %vm1472_vm11, %v1474_v21, %v1470_v55  ;;  %v5493_v23 = vadd.f32 1.0, %v1540_v0  ;;  %v1575_v52 = vadd.f32 0.014752088, %v1574_v5  ;;  %v5496_v22 = vadd.f32 1.1283791, %v1769_v50 }
 0x1e2   : > { %v5499_v37 = vmul.f32 %v1808_v19, %v5333_v48  ;;  %v1476_v56 = vmul.f32 %v1475_v46, %v5226_v10  ;;  %v1503_v26 = vmul.f32 %v4028_v9, %v5467_v33  ;;  %v1886_v32 = vadd.f32 0.05243302, %v1885_v17 }
 0x1e3   : > { %v1961_v42 = vmul.f32 2.1237322e-06, %v5486_v20  ;;  %v5505_v43 = vadd.f32 %v543_v14, %v4511_v62  ;;  %4029 = vrcp.f32 %v5493_v23  ;;  %v5508_v40 = vadd.f32 0.18741608, %v1847_v8 }
 0x1e4   : > { %v3852_v47 = vclamps-f32 %v1476_v56, 1.0  ;;  %v1504_v11 = vsub.f32 1.0, %v1503_v26  ;;  %v1999_v49 = vmul.f32 %v5491_v24, %v5491_v24  ;;  %v1923_v34 = vmul.f32 %v1922_v2, %v5457_v57 }
 0x1e5   : > { %v1513_v10 = vand.u32 2147483648, %v5467_v33  ;;  %v1576_v50 = vmul.f32 %v1575_v52, %v5069_v31  ;;  %v1613_v19 = vadd.f32 0.001143296, %v1612_v18  ;;  %vm1508_vm12 = vweird.f32 %v4028_v9 }
 0x1e6   : > { %v3297_v15 = vadd.f32 1.0, %v3852_v47  ;;  %v1505_v17 = vmul.f32 %v4028_v9, %v1504_v11  ;;  %v1511_v59 = vand.u32 2147483647, %v5467_v33  ;;  %v1887_v8 = vmul.f32 %v1886_v32, %v5380_v4 }
 0x1e7   : > { %v1962_v21 = vadd.f32 0.00028619796, %v1961_v42  ;;  %v5518_v0 = vmul.f32 0.70710677, %v5505_v43  ;;  %v1577_v5 = vadd.f32 0.112945676, %v1576_v50  ;;  %vm1507_vm13 = vweird.f32 %v5467_v33 }
 0x1e8   : > { %v3361_v55 = vmul.f32 %v3297_v15, %v5140_v25  ;;  %v1506_v2 = vadd.f32 %v4028_v9, %v1505_v17  ;;  %v5522_v14 = vmin.f32 %v1999_v49, 16.0  ;;  %v1924_v52 = vadd.f32 0.0036580483, %v1923_v34  ;;  %vm1509_vm14 = vmor %vm1507_vm13, %vm1508_vm12 }
 0x1e9   : > { %v4030_v46 = vpop.eup %4029  ;;  %v1514_v18 = vor.u32 1.1754944e-38, %v1513_v10  ;;  %v1578_v56 = vmul.f32 %v1577_v5, %v5069_v31  ;;  %v1614_v26 = vmul.f32 %v1613_v19, %v5122_v35  ;;  %vm1512_vm15 = vcmp.eq.f32.partialorder %v1511_v59, 8.507059e+37 }
 0x1ea   : > { %3486 = vmatmul.f32.gmra.mxu2 %v3361_v55  ;;  %v1510_v32 = vsel %vm1509_vm14, %v4028_v9, %v1506_v2  ;;  %v1543_v42 = vmul.f32 %v4030_v46, %v5493_v23  ;;  %v1652_v25 = vmul.f32 3.8918573e-05, %v5159_v29  ;;  %v1963_v47 = vmul.f32 %v1962_v21, %v5486_v20 }
 0x1eb   : > { %v1515_v33 = vsel %vm1512_vm15, %v1514_v18, %v1510_v32  ;;  %v2039_v11 = vmul.f32 %v5518_v0, %v5518_v0  ;;  %v1579_v49 = vadd.f32 0.4994258, %v1578_v56  ;;  %v1888_v34 = vadd.f32 0.18741608, %v1887_v8 }
 0x1ec   : > { %v1516_v10 = vmul.f32 %v1515_v33, %v5250_v38  ;;  %v2001_v50 = vmul.f32 2.1237322e-06, %v5522_v14  ;;  %v1544_v19 = vsub.f32 1.0, %v1543_v42  ;;  %v1551_v9 = vand.u32 2147483647, %v5493_v23 }
 0x1ed   : > { %v1553_v15 = vand.u32 2147483648, %v5493_v23  ;;  %v1580_v17 = vmul.f32 %v1579_v49, %v5069_v31  ;;  %v1615_v59 = vadd.f32 0.014752088, %v1614_v26  ;;  %vm1548_vm0 = vweird.f32 %v4030_v46 }
 0x1ee   : > { %v3853_v5 = vclamps-f32 %v1516_v10, 1.0  ;;  %v1545_v21 = vmul.f32 %v4030_v46, %v1544_v19  ;;  %v1653_v55 = vadd.f32 0.001143296, %v1652_v25  ;;  %v1925_v2 = vmul.f32 %v1924_v52, %v5457_v57 }
 0x1ef   : > { %v1964_v18 = vadd.f32 0.0036580483, %v1963_v47  ;;  %v5537_v8 = vmin.f32 %v2039_v11, 16.0  ;;  %v5539_v38 = vadd.f32 1.0, %v1580_v17  ;;  %v2002_v32 = vadd.f32 0.00028619796, %v2001_v50  ;;  %v433_v50 = vpop.f32.mrf.mxu0 }
 0x1f0   : > { %v3298_v56 = vadd.f32 1.0, %v3853_v5  ;;  %v1546_v42 = vadd.f32 %v4030_v46, %v1545_v21  ;;  %vm1547_vm1 = vweird.f32 %v5493_v23  ;;  %vm1552_vm3 = vcmp.eq.f32.partialorder %v1551_v9, 8.507059e+37 }
 0x1f1   : > { %vm1549_vm2 = vmor %vm1547_vm1, %vm1548_vm0  ;;  %v1554_v31 = vor.u32 1.1754944e-38, %v1553_v15  ;;  %4031 = vrcp.f32 %v5539_v38  ;;  %v1616_v26 = vmul.f32 %v1615_v59, %v5122_v35  ;;  %v1654_v47 = vmul.f32 %v1653_v55, %v5159_v29  ;;  %v7497_v15 = vld [vmem:[#allocation23_spill] sm:$0xff] }
 0x1f2   : > { %v3362_v25 = vmul.f32 %v3298_v56, %v5147_v28  ;;  %v1550_v52 = vsel %vm1549_vm2, %v4030_v46, %v1546_v42  ;;  %v1692_v33 = vmul.f32 3.8918573e-05, %v5217_v39  ;;  %v1810_v11 = vadd.f32 1.1283791, %v5499_v37 }
 0x1f3   : > { %v1849_v49 = vmul.f32 %v5508_v40, %v5361_v44  ;;  %v1889_v23 = vmul.f32 %v1888_v34, %v5380_v4  ;;  %v1555_v10 = vsel %vm1552_vm3, %v1554_v31, %v1550_v52  ;;  %v5552_v19 = vmul.f32 0.5, %v5339_v63 }
 0x1f4   : > { %v1926_v9 = vadd.f32 0.05243302, %v1925_v2  ;;  %v1965_v28 = vmul.f32 %v1964_v18, %v5486_v20  ;;  %3599 = vmatmul.f32.gmra.mxu3 %v3362_v25  ;;  %v1556_v46 = vmul.f32 %v1555_v10, %v5265_v27  ;;  %v5558_v17 = vmul.f32 %v5496_v22, %v7497_v15  ;;  %v7498_v2 = vld [vmem:[#allocation21_spill] sm:$0xff] }
 0x1f5   : > { %v2003_v37 = vmul.f32 %v2002_v32, %v5522_v14  ;;  %v2041_v40 = vmul.f32 2.1237322e-06, %v5537_v8  ;;  %v1617_v34 = vadd.f32 0.112945676, %v1616_v26  ;;  %v5563_v5 = vadd.f32 %v433_v50, %v4505_v53 }
 0x1f6   : > { %v3854_v59 = vclamps-f32 %v1556_v46, 1.0  ;;  %v1655_v63 = vadd.f32 0.014752088, %v1654_v47  ;;  %v1693_v21 = vadd.f32 0.001143296, %v1692_v33  ;;  %v5566_v18 = vmul.f32 %v1810_v11, %v7498_v2  ;;  %v7499_v33 = vld [vmem:[#allocation17_spill] sm:$0xff] }
 0x1f7   : > { %v4032_v55 = vpop.eup %4031  ;;  %v1850_v27 = vadd.f32 1.1283791, %v1849_v49  ;;  %v1890_v56 = vadd.f32 1.1283791, %v1889_v23  ;;  %v1618_v22 = vmul.f32 %v1617_v34, %v5122_v35  ;;  %v1927_v42 = vmul.f32 %v1926_v9, %v5457_v57  ;;  %v546_v49 = vpop.f32.mrf.mxu1 }
 0x1f8   : > { %v1966_v32 = vadd.f32 0.05243302, %v1965_v28  ;;  %v3299_v31 = vadd.f32 1.0, %v3854_v59  ;;  %v1583_v26 = vmul.f32 %v4032_v55, %v5539_v38  ;;  %v2004_v25 = vadd.f32 0.0036580483, %v2003_v37 }
 0x1f9   : > { %v2042_v52 = vadd.f32 0.00028619796, %v2041_v40  ;;  %v1619_v10 = vadd.f32 0.4994258, %v1618_v22  ;;  %v1656_v47 = vmul.f32 %v1655_v63, %v5159_v29  ;;  %v5574_v11 = vmul.f32 0.70710677, %v5563_v5 }
 0x1fa   : > { %v3363_v50 = vmul.f32 %v3299_v31, %v7499_v33  ;;  %v1584_v46 = vsub.f32 1.0, %v1583_v26  ;;  %v1694_v23 = vmul.f32 %v1693_v21, %v5217_v39  ;;  %v1593_v9 = vand.u32 2147483648, %v5539_v38 }
 0x1fb   : > { %v1620_v28 = vmul.f32 %v1619_v10, %v5122_v35  ;;  %v1657_v15 = vadd.f32 0.112945676, %v1656_v47  ;;  %v1732_v37 = vmul.f32 3.8918573e-05, %v5230_v7  ;;  %v1967_v40 = vmul.f32 %v1966_v32, %v5486_v20 }
 0x1fc   : > { %3489 = vmatmul.f32.gmra.mxu2 %v3363_v50  ;;  %v1585_v34 = vmul.f32 %v4032_v55, %v1584_v46  ;;  %vm1588_vm4 = vweird.f32 %v4032_v55  ;;  %v1591_v59 = vand.u32 2147483647, %v5539_v38  ;;  %v2043_v63 = vmul.f32 %v2042_v52, %v5537_v8 }
 0x1fd   : > { %v5584_v2 = vadd.f32 %v546_v49, %v4511_v62  ;;  %v5586_v21 = vadd.f32 1.0, %v1620_v28  ;;  %v1658_v22 = vmul.f32 %v1657_v15, %v5159_v29  ;;  %v2005_v35 = vmul.f32 %v2004_v25, %v5522_v14 }
 0x1fe   : > { %v1586_v31 = vadd.f32 %v4032_v55, %v1585_v34  ;;  %vm1587_vm5 = vweird.f32 %v5539_v38  ;;  %v1695_v32 = vadd.f32 0.014752088, %v1694_v23  ;;  %v1594_v26 = vor.u32 1.1754944e-38, %v1593_v9  ;;  %v7501_v34 = vld [vmem:[#allocation22_spill] sm:$0xff] }
 0x1ff   : > { %vm1589_vm6 = vmor %vm1587_vm5, %vm1588_vm4  ;;  %v2079_v10 = vmul.f32 %v5574_v11, %v5574_v11  ;;  %4033 = vrcp.f32 %v5586_v21  ;;  %v1733_v52 = vadd.f32 0.001143296, %v1732_v37  ;;  %v1928_v47 = vadd.f32 0.18741608, %v1927_v42 }
 0x200   : > { %v1590_v33 = vsel %vm1589_vm6, %v4032_v55, %v1586_v31  ;;  %vm1592_vm7 = vcmp.eq.f32.partialorder %v1591_v59, 8.507059e+37  ;;  %v1659_v50 = vadd.f32 0.4994258, %v1658_v22  ;;  %v1968_v46 = vadd.f32 0.18741608, %v1967_v40 }
 0x201   : > { %v2044_v49 = vadd.f32 0.0036580483, %v2043_v63  ;;  %v1595_v28 = vsel %vm1592_vm7, %v1594_v26, %v1590_v33  ;;  %v5595_v25 = vmul.f32 0.70710677, %v5584_v2  ;;  %v5598_v38 = vmul.f32 0.5, %v5403_v51 }
 0x202   : > { %v1596_v23 = vmul.f32 %v1595_v28, %v5393_v12  ;;  %v1660_v9 = vmul.f32 %v1659_v50, %v5159_v29  ;;  %v1696_v15 = vmul.f32 %v1695_v32, %v5217_v39  ;;  %v5604_v42 = vmul.f32 0.5, %v5439_v30  ;;  %v7504_v50 = vld [vmem:[#allocation18_spill] sm:$0xff] }
 0x203   : > { %v2006_v55 = vadd.f32 0.05243302, %v2005_v35  ;;  %v5606_v37 = vmin.f32 %v2079_v10, 16.0  ;;  %v1734_v40 = vmul.f32 %v1733_v52, %v5230_v7  ;;  %v5610_v59 = vmul.f32 %v1850_v27, %v7501_v34 }
 0x204   : > { %7500 = vst [vmem:[#allocation25_spill] sm:$0xff] %v5604_v42  ;;  %v1929_v51 = vmul.f32 %v1928_v47, %v5457_v57  ;;  %v3855_v63 = vclamps-f32 %v1596_v23, 1.0  ;;  %v5613_v22 = vadd.f32 1.0, %v1660_v9  ;;  %v5616_v29 = vmul.f32 %v1890_v56, %v5350_v60 }
 0x205   : > { %v4034_v12 = vpop.eup %4033  ;;  %v1969_v30 = vmul.f32 %v1968_v46, %v5486_v20  ;;  %v2045_v35 = vmul.f32 %v2044_v49, %v5537_v8  ;;  %v2119_v31 = vmul.f32 %v5595_v25, %v5595_v25  ;;  %v5623_v32 = vmul.f32 0.5, %v5477_v41  ;;  %v436_v41 = vpop.f32.mrf.mxu0 }
 0x206   : > { %v3300_v27 = vadd.f32 1.0, %v3855_v63  ;;  %v1623_v26 = vmul.f32 %v4034_v12, %v5586_v21  ;;  %v1697_v10 = vadd.f32 0.112945676, %v1696_v15  ;;  %v2007_v52 = vmul.f32 %v2006_v55, %v5522_v14 }
 0x207   : > { %7502 = vst [vmem:[#allocation16_spill] sm:$0xff] %v5623_v32  ;;  %v2081_v47 = vmul.f32 2.1237322e-06, %v5606_v37  ;;  %4035 = vrcp.f32 %v5613_v22  ;;  %v1735_v60 = vadd.f32 0.014752088, %v1734_v40  ;;  %v5630_v33 = vmul.f32 0.5, %v5505_v43 }
 0x208   : > { %v1930_v56 = vadd.f32 1.1283791, %v1929_v51  ;;  %v3364_v46 = vmul.f32 %v3300_v27, %v7504_v50  ;;  %v1624_v49 = vsub.f32 1.0, %v1623_v26  ;;  %v5633_v28 = vadd.f32 1.1283791, %v1969_v30 }
 0x209   : > { %7503 = vst [vmem:[#allocation15_spill] sm:$0xff] %v5630_v33  ;;  %v2046_v23 = vadd.f32 0.05243302, %v2045_v35  ;;  %v5635_v9 = vmin.f32 %v2119_v31, 16.0  ;;  %v1633_v15 = vand.u32 2147483648, %v5586_v21  ;;  %vm1628_vm8 = vweird.f32 %v4034_v12 }
 0x20a   : > { %3602 = vmatmul.f32.gmra.mxu3 %v3364_v46  ;;  %v1625_v55 = vmul.f32 %v4034_v12, %v1624_v49  ;;  %v1631_v40 = vand.u32 2147483647, %v5586_v21  ;;  %v1698_v34 = vmul.f32 %v1697_v10, %v5217_v39  ;;  %v2008_v43 = vadd.f32 0.18741608, %v2007_v52 }
 0x20b   : > { %v2082_v51 = vadd.f32 0.00028619796, %v2081_v47  ;;  %v5641_v63 = vadd.f32 %v436_v41, %v4505_v53  ;;  %v1736_v30 = vmul.f32 %v1735_v60, %v5230_v7  ;;  %vm1627_vm9 = vweird.f32 %v5586_v21  ;;  %v549_v60 = vpop.f32.mrf.mxu1 }
 0x20c   : > { %v1626_v27 = vadd.f32 %v4034_v12, %v1625_v55  ;;  %v1699_v35 = vadd.f32 0.4994258, %v1698_v34  ;;  %v1772_v31 = vmul.f32 3.8918573e-05, %v5304_v45  ;;  %v5647_v50 = vmul.f32 %v1930_v56, %v5421_v58  ;;  %vm1629_vm10 = vmor %vm1627_vm9, %vm1628_vm8 }
 0x20d   : > { %v4036_v26 = vpop.eup %4035  ;;  %v2121_v46 = vmul.f32 2.1237322e-06, %v5635_v9  ;;  %v1634_v10 = vor.u32 1.1754944e-38, %v1633_v15  ;;  %v1737_v52 = vadd.f32 0.112945676, %v1736_v30  ;;  %vm1632_vm11 = vcmp.eq.f32.partialorder %v1631_v40, 8.507059e+37 }
 0x20e   : > { %v1630_v47 = vsel %vm1629_vm10, %v4034_v12, %v1626_v27  ;;  %v1663_v49 = vmul.f32 %v4036_v26, %v5613_v22  ;;  %v1700_v41 = vmul.f32 %v1699_v35, %v5217_v39  ;;  %v2083_v21 = vmul.f32 %v2082_v51, %v5606_v37 }
 0x20f   : > { %v1635_v55 = vsel %vm1632_vm11, %v1634_v10, %v1630_v47  ;;  %v5654_v34 = vmul.f32 0.70710677, %v5641_v63  ;;  %v1738_v58 = vmul.f32 %v1737_v52, %v5230_v7  ;;  %v1773_v12 = vadd.f32 0.001143296, %v1772_v31 }
 0x210   : > { %v1636_v56 = vmul.f32 %v1635_v55, %v5397_v13  ;;  %v1664_v33 = vsub.f32 1.0, %v1663_v49  ;;  %v5658_v15 = vadd.f32 1.0, %v1700_v41  ;;  %v1671_v40 = vand.u32 2147483647, %v5613_v22 }
 0x211   : > { %v1673_v30 = vand.u32 2147483648, %v5613_v22  ;;  %v5663_v39 = vadd.f32 %v549_v60, %v4511_v62  ;;  %v1739_v51 = vadd.f32 0.4994258, %v1738_v58  ;;  %vm1668_vm12 = vweird.f32 %v4036_v26 }
 0x212   : > { %v3856_v27 = vclamps-f32 %v1636_v56, 1.0  ;;  %v1665_v35 = vmul.f32 %v4036_v26, %v1664_v33  ;;  %4037 = vrcp.f32 %v5658_v15  ;;  %v2047_v10 = vmul.f32 %v2046_v23, %v5537_v8  ;;  %v7505_v23 = vld [vmem:[#allocation19_spill] sm:$0xff] }
 0x213   : > { %v2122_v13 = vadd.f32 0.00028619796, %v2121_v46  ;;  %vm1667_vm13 = vweird.f32 %v5613_v22  ;;  %v2159_v31 = vmul.f32 %v5654_v34, %v5654_v34  ;;  %v1740_v49 = vmul.f32 %v1739_v51, %v5230_v7 }
 0x214   : > { %v3301_v52 = vadd.f32 1.0, %v3856_v27  ;;  %v1666_v47 = vadd.f32 %v4036_v26, %v1665_v35  ;;  %v1774_v60 = vmul.f32 %v1773_v12, %v5304_v45  ;;  %v2009_v41 = vmul.f32 %v2008_v43, %v5522_v14  ;;  %vm1669_vm14 = vmor %vm1667_vm13, %vm1668_vm12  ;;  %v439_v12 = vpop.f32.mrf.mxu0 }
 0x215   : > { %v2084_v33 = vadd.f32 0.0036580483, %v2083_v21  ;;  %v1674_v55 = vor.u32 1.1754944e-38, %v1673_v30  ;;  %v5674_v58 = vmul.f32 0.70710677, %v5663_v39  ;;  %vm1672_vm15 = vcmp.eq.f32.partialorder %v1671_v40, 8.507059e+37 }
 0x216   : > { %v3365_v46 = vmul.f32 %v3301_v52, %v7505_v23  ;;  %v1670_v22 = vsel %vm1669_vm14, %v4036_v26, %v1666_v47  ;;  %v5677_v56 = vadd.f32 1.0, %v1740_v49  ;;  %v2048_v27 = vadd.f32 0.18741608, %v2047_v10 }
 0x217   : > { %v2123_v35 = vmul.f32 %v2122_v13, %v5635_v9  ;;  %v1675_v7 = vsel %vm1672_vm15, %v1674_v55, %v1670_v22  ;;  %v5680_v51 = vmin.f32 %v2159_v31, 16.0  ;;  %v5684_v21 = vmul.f32 %v5633_v28, %v5451_v36 }
 0x218   : > { %v4038_v43 = vpop.eup %4037  ;;  %3492 = vmatmul.f32.gmra.mxu2 %v3365_v46  ;;  %v1676_v30 = vmul.f32 %v1675_v7, %v5406_v1  ;;  %4039 = vrcp.f32 %v5677_v56  ;;  %v1775_v26 = vadd.f32 0.014752088, %v1774_v60  ;;  %v5689_v40 = vmul.f32 0.5, %v5563_v5 }
 0x219   : > { %7506 = vst [vmem:[#allocation23_spill] sm:$0xff] %v5684_v21  ;;  %v2085_v10 = vmul.f32 %v2084_v33, %v5606_v37  ;;  %v1703_v13 = vmul.f32 %v4038_v43, %v5658_v15  ;;  %v1812_v31 = vmul.f32 3.8918573e-05, %v5333_v48  ;;  %v5694_v52 = vadd.f32 1.1283791, %v2009_v41 }
 0x21a   : > { %7507 = vst [vmem:[#allocation21_spill] sm:$0xff] %v5689_v40  ;;  %v3857_v47 = vclamps-f32 %v1676_v30, 1.0  ;;  %v2199_v36 = vmul.f32 %v5674_v58, %v5674_v58  ;;  %v5699_v1 = vadd.f32 %v439_v12, %v4505_v53  ;;  %v5702_v28 = vmul.f32 %v2048_v27, %v5537_v8  ;;  %v7508_v30 = vld [vmem:[#allocation20_spill] sm:$0xff] }
 0x21b   : > { %v2124_v5 = vadd.f32 0.0036580483, %v2123_v35  ;;  %v2161_v49 = vmul.f32 2.1237322e-06, %v5680_v51  ;;  %v1704_v60 = vsub.f32 1.0, %v1703_v13  ;;  %v1713_v41 = vand.u32 2147483648, %v5658_v15 }
 0x21c   : > { %v3302_v33 = vadd.f32 1.0, %v3857_v47  ;;  %v1711_v55 = vand.u32 2147483647, %v5658_v15  ;;  %v1776_v23 = vmul.f32 %v1775_v26, %v5304_v45  ;;  %v2086_v46 = vadd.f32 0.05243302, %v2085_v10 }
 0x21d   : > { %v1705_v22 = vmul.f32 %v4038_v43, %v1704_v60  ;;  %vm1708_vm0 = vweird.f32 %v4038_v43  ;;  %v1813_v7 = vadd.f32 0.001143296, %v1812_v31  ;;  %v5709_v27 = vmin.f32 %v2199_v36, 16.0 }
 0x21e   : > { %v4040_v12 = vpop.eup %4039  ;;  %v3366_v40 = vmul.f32 %v3302_v33, %v7508_v30  ;;  %v5712_v35 = vmul.f32 0.70710677, %v5699_v1  ;;  %v1777_v13 = vadd.f32 0.112945676, %v1776_v23  ;;  %v2162_v47 = vadd.f32 0.00028619796, %v2161_v49 }
 0x21f   : > { %v1706_v32 = vadd.f32 %v4038_v43, %v1705_v22  ;;  %vm1707_vm1 = vweird.f32 %v5658_v15  ;;  %v1743_v42 = vmul.f32 %v4040_v12, %v5677_v56  ;;  %vm1712_vm3 = vcmp.eq.f32.partialorder %v1711_v55, 8.507059e+37 }
 0x220   : > { %3605 = vmatmul.f32.gmra.mxu3 %v3366_v40  ;;  %vm1709_vm2 = vmor %vm1707_vm1, %vm1708_vm0  ;;  %v1714_v26 = vor.u32 1.1754944e-38, %v1713_v41  ;;  %v1751_v10 = vand.u32 2147483647, %v5677_v56  ;;  %v1778_v31 = vmul.f32 %v1777_v13, %v5304_v45  ;;  %v1753_v33 = vand.u32 2147483648, %v5677_v56  ;;  %v552_v41 = vpop.f32.mrf.mxu1 }
 0x221   : > { %v1710_v36 = vsel %vm1709_vm2, %v4038_v43, %v1706_v32  ;;  %v1744_v60 = vsub.f32 1.0, %v1743_v42  ;;  %v1814_v23 = vmul.f32 %v1813_v7, %v5333_v48  ;;  %vm1748_vm4 = vweird.f32 %v4040_v12 }
 0x222   : > { %v1715_v49 = vsel %vm1712_vm3, %v1714_v26, %v1710_v36  ;;  %v2239_v15 = vmul.f32 %v5712_v35, %v5712_v35  ;;  %v1779_v22 = vadd.f32 0.4994258, %v1778_v31  ;;  %v1852_v21 = vmul.f32 3.8918573e-05, %v5361_v44 }
 0x223   : > { %v1716_v40 = vmul.f32 %v1715_v49, %v5455_v3  ;;  %v1745_v55 = vmul.f32 %v4040_v12, %v1744_v60  ;;  %v1815_v30 = vadd.f32 0.014752088, %v1814_v23  ;;  %vm1747_vm5 = vweird.f32 %v5677_v56 }
 0x224   : > { %vm5725_vm6 = vcmp.eq.f32.partialorder %v1751_v10, 8.507059e+37  ;;  %v1780_v32 = vmul.f32 %v1779_v22, %v5304_v45  ;;  %v1892_v43 = vmul.f32 3.8918573e-05, %v5380_v4  ;;  %v1853_v3 = vadd.f32 0.001143296, %v1852_v21  ;;  %vm1749_vm7 = vmor %vm1747_vm5, %vm1748_vm4 }
 0x225   : > { %v3858_v7 = vclamps-f32 %v1716_v40, 1.0  ;;  %v1746_v13 = vadd.f32 %v4040_v12, %v1745_v55  ;;  %v1816_v26 = vmul.f32 %v1815_v30, %v5333_v48  ;;  %v1754_v31 = vor.u32 1.1754944e-38, %v1753_v33 }
 0x226   : > { %v5733_v36 = vmin.f32 %v2239_v15, 16.0  ;;  %v5736_v56 = vadd.f32 %v552_v41, %v4511_v62  ;;  %v5738_v10 = vadd.f32 1.0, %v1780_v32  ;;  %v1854_v49 = vmul.f32 %v1853_v3, %v5361_v44 }
 0x227   : > { %v3303_v60 = vadd.f32 1.0, %v3858_v7  ;;  %v1750_v23 = vsel %vm1749_vm7, %v4040_v12, %v1746_v13  ;;  %v1817_v45 = vadd.f32 0.112945676, %v1816_v26  ;;  %v2125_v22 = vmul.f32 %v2124_v5, %v5635_v9 }
 0x228   : > { %v1755_v21 = vsel %vm5725_vm6, %v1754_v31, %v1750_v23  ;;  %4041 = vrcp.f32 %v5738_v10  ;;  %v1893_v33 = vadd.f32 0.001143296, %v1892_v43  ;;  %v2163_v15 = vmul.f32 %v2162_v47, %v5680_v51  ;;  %v442_v31 = vpop.f32.mrf.mxu0 }
 0x229   : > { %v2201_v40 = vmul.f32 2.1237322e-06, %v5709_v27  ;;  %v3367_v55 = vmul.f32 %v3303_v60, %v5376_v16  ;;  %v1756_v41 = vmul.f32 %v1755_v21, %v5461_v54  ;;  %v2050_v12 = vadd.f32 1.1283791, %v5702_v28 }
 0x22a   : > { %v2087_v30 = vmul.f32 %v2086_v46, %v5606_v37  ;;  %v5752_v5 = vmul.f32 0.70710677, %v5736_v56  ;;  %v1818_v42 = vmul.f32 %v1817_v45, %v5333_v48  ;;  %v5756_v32 = vmul.f32 0.5, %v5584_v2 }
 0x22b   : > { %3495 = vmatmul.f32.gmra.mxu2 %v3367_v55  ;;  %v3859_v47 = vclamps-f32 %v1756_v41, 1.0  ;;  %v2241_v43 = vmul.f32 2.1237322e-06, %v5733_v36  ;;  %v1855_v7 = vadd.f32 0.014752088, %v1854_v49  ;;  %v5761_v16 = vmul.f32 %v5694_v52, %v5491_v24 }
 0x22c   : > { %7511 = vst [vmem:[#allocation17_spill] sm:$0xff] %v5756_v32  ;;  %v2126_v54 = vadd.f32 0.05243302, %v2125_v22  ;;  %v1819_v28 = vadd.f32 0.4994258, %v1818_v42  ;;  %v1894_v46 = vmul.f32 %v1893_v33, %v5380_v4  ;;  %v5766_v23 = vmul.f32 %v2050_v12, %v5518_v0  ;;  %v7513_v22 = vld [vmem:[#allocation26_spill] sm:$0xff] }
 0x22d   : > { %v2164_v13 = vadd.f32 0.0036580483, %v2163_v15  ;;  %v2202_v26 = vadd.f32 0.00028619796, %v2201_v40  ;;  %v3304_v3 = vadd.f32 1.0, %v3859_v47  ;;  %v1856_v2 = vmul.f32 %v1855_v7, %v5361_v44 }
 0x22e   : > { %v4042_v60 = vpop.eup %4041  ;;  %v2088_v45 = vadd.f32 0.18741608, %v2087_v30  ;;  %v2279_v49 = vmul.f32 %v5752_v5, %v5752_v5  ;;  %v1820_v24 = vmul.f32 %v1819_v28, %v5333_v48  ;;  %v5772_v52 = vmul.f32 0.5, %v5641_v63  ;;  %v555_v30 = vpop.f32.mrf.mxu1 }
 0x22f   : > { %v3368_v21 = vmul.f32 %v3304_v3, %v7513_v22  ;;  %v2242_v33 = vadd.f32 0.00028619796, %v2241_v43  ;;  %v1783_v15 = vmul.f32 %v4042_v60, %v5738_v10  ;;  %v2127_v40 = vmul.f32 %v2126_v54, %v5635_v9 }
 0x230   : > { %7512 = vst [vmem:[#allocation22_spill] sm:$0xff] %v5772_v52  ;;  %v5777_v55 = vadd.f32 1.0, %v1820_v24  ;;  %v5780_v0 = vadd.f32 %v442_v31, %v4505_v53  ;;  %v1895_v41 = vadd.f32 0.014752088, %v1894_v46  ;;  %v2165_v12 = vmul.f32 %v2164_v13, %v5680_v51 }
 0x231   : > { %v2203_v48 = vmul.f32 %v2202_v26, %v5709_v27  ;;  %3608 = vmatmul.f32.gmra.mxu3 %v3368_v21  ;;  %v1784_v63 = vsub.f32 1.0, %v1783_v15  ;;  %v1857_v42 = vadd.f32 0.112945676, %v1856_v2  ;;  %v2089_v47 = vmul.f32 %v2088_v45, %v5606_v37 }
 0x232   : > { %v5785_v43 = vmin.f32 %v2279_v49, 16.0  ;;  %v1793_v7 = vand.u32 2147483648, %v5738_v10  ;;  %4043 = vrcp.f32 %v5777_v55  ;;  %v2243_v54 = vmul.f32 %v2242_v33, %v5733_v36 }
 0x233   : > { %v1785_v28 = vmul.f32 %v4042_v60, %v1784_v63  ;;  %vm1788_vm8 = vweird.f32 %v4042_v60  ;;  %v1791_v46 = vand.u32 2147483647, %v5738_v10  ;;  %v5792_v13 = vmul.f32 0.70710677, %v5780_v0 }
 0x234   : > { %v5795_v26 = vadd.f32 %v555_v30, %v4511_v62  ;;  %v1858_v3 = vmul.f32 %v1857_v42, %v5361_v44  ;;  %v1896_v31 = vmul.f32 %v1895_v41, %v5380_v4  ;;  %v2166_v2 = vadd.f32 0.05243302, %v2165_v12 }
 0x235   : > { %7514 = vst [vmem:[#allocation18_spill] sm:$0xff] %v5792_v13  ;;  %v2204_v45 = vadd.f32 0.0036580483, %v2203_v48  ;;  %v1786_v49 = vadd.f32 %v4042_v60, %v1785_v28  ;;  %vm1787_vm9 = vweird.f32 %v5738_v10  ;;  %v5801_v24 = vmul.f32 0.5, %v5663_v39 }
 0x236   : > { %v2281_v22 = vmul.f32 2.1237322e-06, %v5785_v43  ;;  %vm1789_vm10 = vmor %vm1787_vm9, %vm1788_vm8  ;;  %v1794_v21 = vor.u32 1.1754944e-38, %v1793_v7  ;;  %v1859_v33 = vadd.f32 0.4994258, %v1858_v3  ;;  %vm1792_vm11 = vcmp.eq.f32.partialorder %v1791_v46, 8.507059e+37 }
 0x237   : > { %7515 = vst [vmem:[#allocation19_spill] sm:$0xff] %v5801_v24  ;;  %v2244_v15 = vadd.f32 0.0036580483, %v2243_v54  ;;  %v1790_v63 = vsel %vm1789_vm10, %v4042_v60, %v1786_v49  ;;  %v1897_v30 = vadd.f32 0.112945676, %v1896_v31  ;;  %v2319_v41 = vmul.f32 %v5792_v13, %v5792_v13  ;;  %v445_v24 = vpop.f32.mrf.mxu0 }
 0x238   : > { %v4044_v42 = vpop.eup %4043  ;;  %v1795_v52 = vsel %vm1792_vm11, %v1794_v21, %v1790_v63  ;;  %v5807_v12 = vmul.f32 0.70710677, %v5795_v26  ;;  %v1860_v39 = vmul.f32 %v1859_v33, %v5361_v44  ;;  %v2128_v10 = vadd.f32 0.18741608, %v2127_v40 }
 0x239   : > { %v2205_v48 = vmul.f32 %v2204_v45, %v5709_v27  ;;  %v1796_v7 = vmul.f32 %v1795_v52, %v5558_v17  ;;  %v1823_v54 = vmul.f32 %v4044_v42, %v5777_v55  ;;  %v2167_v60 = vmul.f32 %v2166_v2, %v5680_v51 }
 0x23a   : > { %7516 = vst [vmem:[#allocation20_spill] sm:$0xff] %v5807_v12  ;;  %v2282_v28 = vadd.f32 0.00028619796, %v2281_v22  ;;  %v5814_v46 = vadd.f32 1.0, %v1860_v39  ;;  %v1898_v3 = vmul.f32 %v1897_v30, %v5380_v4  ;;  %v2245_v31 = vmul.f32 %v2244_v15, %v5733_v36 }
 0x23b   : > { %v3860_v49 = vclamps-f32 %v1796_v7, 1.0  ;;  %v1824_v21 = vsub.f32 1.0, %v1823_v54  ;;  %v1833_v44 = vand.u32 2147483648, %v5777_v55  ;;  %v5819_v40 = vmin.f32 %v2319_v41, 16.0  ;;  %v7517_v41 = vld [vmem:[#allocation24_spill] sm:$0xff] }
 0x23c   : > { %v2359_v17 = vmul.f32 %v5807_v12, %v5807_v12  ;;  %4045 = vrcp.f32 %v5814_v46  ;;  %v1932_v52 = vmul.f32 3.8918573e-05, %v5457_v57  ;;  %vm1828_vm12 = vweird.f32 %v4044_v42 }
 0x23d   : > { %v3305_v2 = vadd.f32 1.0, %v3860_v49  ;;  %v1825_v45 = vmul.f32 %v4044_v42, %v1824_v21  ;;  %v1831_v22 = vand.u32 2147483647, %v5777_v55  ;;  %v5826_v33 = vadd.f32 1.1283791, %v2089_v47 }
 0x23e   : > { %v2206_v15 = vadd.f32 0.05243302, %v2205_v48  ;;  %v2283_v63 = vmul.f32 %v2282_v28, %v5785_v43  ;;  %v1899_v30 = vadd.f32 0.4994258, %v1898_v3  ;;  %vm1827_vm13 = vweird.f32 %v5777_v55 }
 0x23f   : > { %v3369_v39 = vmul.f32 %v3305_v2, %v7517_v41  ;;  %v1826_v7 = vadd.f32 %v4044_v42, %v1825_v45  ;;  %v1834_v54 = vor.u32 1.1754944e-38, %v1833_v44  ;;  %vm1829_vm14 = vmor %vm1827_vm13, %vm1828_vm12  ;;  %v2321_v49 = vmul.f32 2.1237322e-06, %v5819_v40 }
 0x240   : > { %v5832_v21 = vmin.f32 %v2359_v17, 16.0  ;;  %v1900_v32 = vmul.f32 %v1899_v30, %v5380_v4  ;;  %v1933_v47 = vadd.f32 0.001143296, %v1932_v52  ;;  %v2168_v12 = vadd.f32 0.18741608, %v2167_v60 }
 0x241   : > { %v2246_v48 = vadd.f32 0.05243302, %v2245_v31  ;;  %3498 = vmatmul.f32.gmra.mxu2 %v3369_v39  ;;  %v1830_v28 = vsel %vm1829_vm14, %v4044_v42, %v1826_v7  ;;  %vm1832_vm15 = vcmp.eq.f32.partialorder %v1831_v22, 8.507059e+37  ;;  %v2284_v2 = vadd.f32 0.0036580483, %v2283_v63 }
 0x242   : > { %v4046_v3 = vpop.eup %4045  ;;  %v1835_v45 = vsel %vm1832_vm15, %v1834_v54, %v1830_v28  ;;  %v5835_v41 = vadd.f32 1.0, %v1900_v32  ;;  %v5838_v55 = vadd.f32 %v445_v24, %v4505_v53  ;;  %v5841_v44 = vmul.f32 %v2128_v10, %v5635_v9 }
 0x243   : > { %v2207_v17 = vmul.f32 %v2206_v15, %v5709_v27  ;;  %v1836_v4 = vmul.f32 %v1835_v45, %v5566_v18  ;;  %v1863_v60 = vmul.f32 %v4046_v3, %v5814_v46  ;;  %v2322_v31 = vadd.f32 0.00028619796, %v2321_v49 }
 0x244   : > { %v2361_v42 = vmul.f32 2.1237322e-06, %v5832_v21  ;;  %4047 = vrcp.f32 %v5835_v41  ;;  %v1934_v32 = vmul.f32 %v1933_v47, %v5457_v57  ;;  %v5850_v52 = vmul.f32 %v2168_v12, %v5680_v51 }
 0x245   : > { %v3861_v24 = vclamps-f32 %v1836_v4, 1.0  ;;  %v1864_v22 = vsub.f32 1.0, %v1863_v60  ;;  %v1972_v10 = vmul.f32 3.8918573e-05, %v5486_v20  ;;  %v2247_v15 = vmul.f32 %v2246_v48, %v5733_v36 }
 0x246   : > { %v2285_v18 = vmul.f32 %v2284_v2, %v5785_v43  ;;  %v1873_v63 = vand.u32 2147483648, %v5814_v46  ;;  %v5857_v30 = vmul.f32 0.70710677, %v5838_v55  ;;  %vm1868_vm0 = vweird.f32 %v4046_v3 }
 0x247   : > { %v3306_v39 = vadd.f32 1.0, %v3861_v24  ;;  %v1865_v7 = vmul.f32 %v4046_v3, %v1864_v22  ;;  %v1871_v54 = vand.u32 2147483647, %v5814_v46  ;;  %v5860_v12 = vadd.f32 0.18741608, %v2207_v17 }
 0x248   : > { %7518 = vst [vmem:[#allocation26_spill] sm:$0xff] %v5857_v30  ;;  %v2323_v49 = vmul.f32 %v2322_v31, %v5819_v40  ;;  %v2362_v47 = vadd.f32 0.00028619796, %v2361_v42  ;;  %v1935_v28 = vadd.f32 0.014752088, %v1934_v32  ;;  %vm1867_vm1 = vweird.f32 %v5814_v46 }
 0x249   : > { %v3370_v48 = vmul.f32 %v3306_v39, %v5442_v61  ;;  %v1866_v45 = vadd.f32 %v4046_v3, %v1865_v7  ;;  %v1973_v2 = vadd.f32 0.001143296, %v1972_v10  ;;  %v2248_v60 = vadd.f32 0.18741608, %v2247_v15  ;;  %vm1869_vm2 = vmor %vm1867_vm1, %vm1868_vm0  ;;  %v558_v39 = vpop.f32.mrf.mxu1 }
 0x24a   : > { %v4048_v4 = vpop.eup %4047  ;;  %v1874_v24 = vor.u32 1.1754944e-38, %v1873_v63  ;;  %v2399_v22 = vmul.f32 %v5857_v30, %v5857_v30  ;;  %v1936_v17 = vmul.f32 %v1935_v28, %v5457_v57  ;;  %v2286_v13 = vadd.f32 0.05243302, %v2285_v18 }
 0x24b   : > { %3611 = vmatmul.f32.gmra.mxu3 %v3370_v48  ;;  %v1870_v31 = vsel %vm1869_vm2, %v4046_v3, %v1866_v45  ;;  %vm1872_vm3 = vcmp.eq.f32.partialorder %v1871_v54, 8.507059e+37  ;;  %v1903_v42 = vmul.f32 %v4048_v4, %v5835_v41  ;;  %v2324_v61 = vadd.f32 0.0036580483, %v2323_v49 }
 0x24c   : > { %v2363_v32 = vmul.f32 %v2362_v47, %v5832_v21  ;;  %v1875_v46 = vsel %vm1872_vm3, %v1874_v24, %v1870_v31  ;;  %v1911_v10 = vand.u32 2147483647, %v5835_v41  ;;  %v1937_v7 = vadd.f32 0.112945676, %v1936_v17 }
 0x24d   : > { %v1876_v15 = vmul.f32 %v1875_v46, %v5610_v59  ;;  %v1904_v63 = vsub.f32 1.0, %v1903_v42  ;;  %v1974_v30 = vmul.f32 %v1973_v2, %v5486_v20  ;;  %vm1908_vm4 = vweird.f32 %v4048_v4 }
 0x24e   : > { %v1913_v18 = vand.u32 2147483648, %v5835_v41  ;;  %v5874_v3 = vmin.f32 %v2399_v22, 16.0  ;;  %v2012_v54 = vmul.f32 3.8918573e-05, %v5522_v14  ;;  %v1938_v47 = vmul.f32 %v1937_v7, %v5457_v57 }
 0x24f   : > { %v3862_v49 = vclamps-f32 %v1876_v15, 1.0  ;;  %v1905_v28 = vmul.f32 %v4048_v4, %v1904_v63  ;;  %v1975_v48 = vadd.f32 0.014752088, %v1974_v30  ;;  %vm1907_vm5 = vweird.f32 %v5835_v41 }
 0x250   : > { %v5880_v59 = vadd.f32 %v558_v39, %v4511_v62  ;;  %v2013_v45 = vadd.f32 0.001143296, %v2012_v54  ;;  %v2052_v2 = vmul.f32 3.8918573e-05, %v5537_v8  ;;  %v1939_v31 = vadd.f32 0.4994258, %v1938_v47  ;;  %vm1909_vm6 = vmor %vm1907_vm5, %vm1908_vm4 }
 0x251   : > { %v3307_v24 = vadd.f32 1.0, %v3862_v49  ;;  %v1906_v17 = vadd.f32 %v4048_v4, %v1905_v28  ;;  %v1976_v22 = vmul.f32 %v1975_v48, %v5486_v20  ;;  %vm1912_vm7 = vcmp.eq.f32.partialorder %v1911_v10, 8.507059e+37 }
 0x252   : > { %v1914_v42 = vor.u32 1.1754944e-38, %v1913_v18  ;;  %v2401_v46 = vmul.f32 2.1237322e-06, %v5874_v3  ;;  %v2014_v30 = vmul.f32 %v2013_v45, %v5522_v14  ;;  %v1940_v63 = vmul.f32 %v1939_v31, %v5457_v57 }
 0x253   : > { %v3371_v41 = vmul.f32 %v3307_v24, %v5481_v6  ;;  %v1910_v15 = vsel %vm1909_vm6, %v4048_v4, %v1906_v17  ;;  %v1977_v39 = vadd.f32 0.112945676, %v1976_v22  ;;  %v2287_v7 = vmul.f32 %v2286_v13, %v5785_v43 }
 0x254   : > { %v1915_v54 = vsel %vm1912_vm7, %v1914_v42, %v1910_v15  ;;  %v5891_v49 = vmul.f32 0.70710677, %v5880_v59  ;;  %v2053_v28 = vadd.f32 0.001143296, %v2052_v2  ;;  %v5894_v18 = vadd.f32 1.0, %v1940_v63 }
 0x255   : > { %3501 = vmatmul.f32.gmra.mxu2 %v3371_v41  ;;  %v1916_v10 = vmul.f32 %v1915_v54, %v5616_v29  ;;  %v1978_v47 = vmul.f32 %v1977_v39, %v5486_v20  ;;  %v2015_v48 = vadd.f32 0.014752088, %v2014_v30  ;;  %v5899_v6 = vmul.f32 %v5826_v33, %v5574_v11 }
 0x256   : > { %v2130_v57 = vadd.f32 1.1283791, %v5841_v44  ;;  %v2209_v13 = vmul.f32 %v5860_v12, %v5709_v27  ;;  %v2364_v4 = vadd.f32 0.0036580483, %v2363_v32  ;;  %v2325_v45 = vmul.f32 %v2324_v61, %v5819_v40 }
 0x257   : > { %v3863_v2 = vclamps-f32 %v1916_v10, 1.0  ;;  %v2402_v24 = vadd.f32 0.00028619796, %v2401_v46  ;;  %4049 = vrcp.f32 %v5894_v18  ;;  %v2170_v29 = vadd.f32 1.1283791, %v5850_v52 }
 0x258   : > { %v2249_v17 = vmul.f32 %v2248_v60, %v5733_v36  ;;  %v2288_v31 = vadd.f32 0.18741608, %v2287_v7  ;;  %v1979_v22 = vadd.f32 0.4994258, %v1978_v47  ;;  %v2439_v33 = vmul.f32 %v5891_v49, %v5891_v49 }
 0x259   : > { %v3308_v11 = vadd.f32 1.0, %v3863_v2  ;;  %v2016_v44 = vmul.f32 %v2015_v48, %v5522_v14  ;;  %v2054_v12 = vmul.f32 %v2053_v28, %v5537_v8  ;;  %v5913_v61 = vmul.f32 %v2130_v57, %v5595_v25 }
 0x25a   : > { %v2210_v32 = vadd.f32 1.1283791, %v2209_v13  ;;  %v5916_v42 = vmul.f32 0.5, %v5699_v1  ;;  %v1980_v52 = vmul.f32 %v1979_v22, %v5486_v20  ;;  %v2326_v60 = vadd.f32 0.05243302, %v2325_v45  ;;  %v448_v13 = vpop.f32.mrf.mxu0 }
 0x25b   : > { %v2365_v46 = vmul.f32 %v2364_v4, %v5832_v21  ;;  %v3372_v30 = vmul.f32 %v3308_v11, %v5552_v19  ;;  %v2403_v41 = vmul.f32 %v2402_v24, %v5874_v3  ;;  %v2250_v15 = vadd.f32 1.1283791, %v2249_v17 }
 0x25c   : > { %v5923_v63 = vmul.f32 0.5, %v5736_v56  ;;  %v2289_v25 = vmul.f32 %v2288_v31, %v5785_v43  ;;  %v5926_v39 = vadd.f32 1.0, %v1980_v52  ;;  %v5929_v1 = vmul.f32 %v2170_v29, %v5654_v34 }
 0x25d   : > { %v4050_v7 = vpop.eup %4049  ;;  %3614 = vmatmul.f32.gmra.mxu3 %v3372_v30  ;;  %v5931_v20 = vmin.f32 %v2439_v33, 16.0  ;;  %v2017_v54 = vadd.f32 0.112945676, %v2016_v44  ;;  %v2055_v28 = vadd.f32 0.014752088, %v2054_v12  ;;  %v5934_v19 = vmul.f32 %v2210_v32, %v5674_v58 }
 0x25e   : > { %v5937_v10 = vmul.f32 0.5, %v5780_v0  ;;  %v1943_v56 = vmul.f32 %v4050_v7, %v5894_v18  ;;  %4051 = vrcp.f32 %v5926_v39  ;;  %v2327_v47 = vmul.f32 %v2326_v60, %v5819_v40 }
 0x25f   : > { %7519 = vst [vmem:[#allocation24_spill] sm:$0xff] %v5931_v20  ;;  %v5943_v34 = vmul.f32 0.5, %v5795_v26  ;;  %v2366_v48 = vadd.f32 0.05243302, %v2365_v46  ;;  %v2404_v57 = vadd.f32 0.0036580483, %v2403_v41  ;;  %v5946_v4 = vmul.f32 %v2250_v15, %v5712_v35 }
 0x260   : > { %7520 = vst [vmem:[#allocation27_spill] sm:$0xff] %v5937_v10  ;;  %v5948_v58 = vadd.f32 1.1283791, %v2289_v25  ;;  %v1944_v45 = vsub.f32 1.0, %v1943_v56  ;;  %v2018_v0 = vmul.f32 %v2017_v54, %v5522_v14  ;;  %v2441_v2 = vmul.f32 2.1237322e-06, %v5931_v20 }
 0x261   : > { %7521 = vst [vmem:[#allocation28_spill] sm:$0xff] %v5943_v34  ;;  %v1951_v24 = vand.u32 2147483647, %v5894_v18  ;;  %v1953_v29 = vand.u32 2147483648, %v5894_v18  ;;  %v2056_v26 = vmul.f32 %v2055_v28, %v5537_v8  ;;  %vm1948_vm8 = vweird.f32 %v4050_v7  ;;  %v561_v28 = vpop.f32.mrf.mxu1 }
 0x262   : > { %v1945_v17 = vmul.f32 %v4050_v7, %v1944_v45  ;;  %v5956_v31 = vadd.f32 %v448_v13, %v4505_v53  ;;  %v2019_v35 = vadd.f32 0.4994258, %v2018_v0  ;;  %v2328_v22 = vadd.f32 0.18741608, %v2327_v47 }
 0x263   : > { %v2367_v11 = vmul.f32 %v2366_v48, %v5832_v21  ;;  %v2405_v33 = vmul.f32 %v2404_v57, %v5874_v3  ;;  %v2057_v44 = vadd.f32 0.112945676, %v2056_v26  ;;  %vm1947_vm9 = vweird.f32 %v5894_v18 }
 0x264   : > { %v4052_v12 = vpop.eup %4051  ;;  %v1946_v32 = vadd.f32 %v4050_v7, %v1945_v17  ;;  %v2020_v52 = vmul.f32 %v2019_v35, %v5522_v14  ;;  %v2092_v60 = vmul.f32 3.8918573e-05, %v5606_v37  ;;  %v2442_v46 = vadd.f32 0.00028619796, %v2441_v2  ;;  %vm1949_vm10 = vmor %vm1947_vm9, %vm1948_vm8 }
 0x265   : > { %v1954_v30 = vor.u32 1.1754944e-38, %v1953_v29  ;;  %v1983_v41 = vmul.f32 %v4052_v12, %v5926_v39  ;;  %v2058_v15 = vmul.f32 %v2057_v44, %v5537_v8  ;;  %vm1952_vm11 = vcmp.eq.f32.partialorder %v1951_v24, 8.507059e+37 }
 0x266   : > { %v1950_v25 = vsel %vm1949_vm10, %v4050_v7, %v1946_v32  ;;  %v5966_v54 = vmul.f32 0.70710677, %v5956_v31  ;;  %v5968_v56 = vadd.f32 1.0, %v2020_v52  ;;  %v2406_v18 = vadd.f32 0.05243302, %v2405_v33 }
 0x267   : > { %v1955_v47 = vsel %vm1952_vm11, %v1954_v30, %v1950_v25  ;;  %v1984_v14 = vsub.f32 1.0, %v1983_v41  ;;  %v2059_v48 = vadd.f32 0.4994258, %v2058_v15  ;;  %v1993_v13 = vand.u32 2147483648, %v5926_v39 }
 0x268   : > { %v1956_v57 = vmul.f32 %v1955_v47, %v5647_v50  ;;  %4053 = vrcp.f32 %v5968_v56  ;;  %v2093_v45 = vadd.f32 0.001143296, %v2092_v60  ;;  %vm1988_vm12 = vweird.f32 %v4052_v12  ;;  %v451_v47 = vpop.f32.mrf.mxu0 }
 0x269   : > { %v1985_v0 = vmul.f32 %v4052_v12, %v1984_v14  ;;  %v1991_v7 = vand.u32 2147483647, %v5926_v39  ;;  %v5975_v2 = vadd.f32 %v561_v28, %v4511_v62  ;;  %v2368_v24 = vadd.f32 0.18741608, %v2367_v11  ;;  %v7523_v28 = vld [vmem:[#allocation23_spill] sm:$0xff] }
 0x26a   : > { %v3864_v29 = vclamps-f32 %v1956_v57, 1.0  ;;  %v2479_v26 = vmul.f32 %v5966_v54, %v5966_v54  ;;  %v2060_v17 = vmul.f32 %v2059_v48, %v5537_v8  ;;  %v2329_v50 = vmul.f32 %v2328_v22, %v5819_v40 }
 0x26b   : > { %v2443_v35 = vmul.f32 %v2442_v46, %v5931_v20  ;;  %v1986_v33 = vadd.f32 %v4052_v12, %v1985_v0  ;;  %vm1987_vm13 = vweird.f32 %v5926_v39  ;;  %v1994_v32 = vor.u32 1.1754944e-38, %v1993_v13 }
 0x26c   : > { %v3309_v44 = vadd.f32 1.0, %v3864_v29  ;;  %vm1989_vm14 = vmor %vm1987_vm13, %vm1988_vm12  ;;  %v5983_v52 = vadd.f32 1.0, %v2060_v17  ;;  %v2094_v11 = vmul.f32 %v2093_v45, %v5606_v37  ;;  %v2407_v60 = vmul.f32 %v2406_v18, %v5874_v3 }
 0x26d   : > { %v1990_v30 = vsel %vm1989_vm14, %v4052_v12, %v1986_v33  ;;  %vm1992_vm15 = vcmp.eq.f32.partialorder %v1991_v7, 8.507059e+37  ;;  %v5988_v8 = vmul.f32 0.70710677, %v5975_v2  ;;  %v5991_v15 = vmin.f32 %v2479_v26, 16.0 }
 0x26e   : > { %v4054_v22 = vpop.eup %4053  ;;  %v3373_v46 = vmul.f32 %v3309_v44, %v5598_v38  ;;  %v1995_v41 = vsel %vm1992_vm15, %v1994_v32, %v1990_v30  ;;  %4055 = vrcp.f32 %v5983_v52  ;;  %v5994_v39 = vadd.f32 1.1283791, %v2329_v50  ;;  %v7524_v30 = vld [vmem:[#allocation25_spill] sm:$0xff] }
 0x26f   : > { %v5997_v25 = vmul.f32 0.5, %v5838_v55  ;;  %v1996_v18 = vmul.f32 %v1995_v41, %v7523_v28  ;;  %v2023_v12 = vmul.f32 %v4054_v22, %v5968_v56  ;;  %v6003_v14 = vmul.f32 %v5948_v58, %v5752_v5  ;;  %v6013_v55 = vld [vmem:[%s7428_s4] ss:$0 sm:$0xff]  ;;  %v3460_v5 = vpop.f32.mrf.mxu2 }
 0x270   : > { %v6006_v38 = vmul.f32 %v2368_v24, %v5832_v21  ;;  %v6008_v48 = vadd.f32 0.0036580483, %v2443_v35  ;;  %3504 = vmatmul.f32.gmra.mxu2 %v3373_v46  ;;  %v2095_v57 = vadd.f32 0.014752088, %v2094_v11  ;;  %v6015_v13 = vadd.f32 0.18741608, %v2407_v60  ;;  %v564_v35 = vpop.f32.mrf.mxu1 }
 0x271   : > { %7522 = vst [vmem:[#allocation29_spill] sm:$0xff] %v5997_v25  ;;  %v3865_v45 = vclamps-f32 %v1996_v18, 1.0  ;;  %v2024_v0 = vsub.f32 1.0, %v2023_v12  ;;  %v2031_v7 = vand.u32 2147483647, %v5968_v56  ;;  %v2519_v24 = vmul.f32 %v5988_v8, %v5988_v8 }
 0x272   : > { %v6019_v58 = vmul.f32 2.1237322e-06, %v5991_v15  ;;  %v2033_v29 = vand.u32 2147483648, %v5968_v56  ;;  %v6025_v26 = vadd.f32 %v451_v47, %v4505_v53  ;;  %vm2028_vm0 = vweird.f32 %v4054_v22 }
 0x273   : > { %v3310_v17 = vadd.f32 1.0, %v3865_v45  ;;  %v2025_v50 = vmul.f32 %v4054_v22, %v2024_v0  ;;  %v2132_v33 = vmul.f32 3.8918573e-05, %v5635_v9  ;;  %vm2027_vm1 = vweird.f32 %v5968_v56 }
 0x274   : > { %v4056_v44 = vpop.eup %4055  ;;  %v3461_v32 = vadd.f32 %v6013_v55, %v3460_v5  ;;  %v2096_v11 = vmul.f32 %v2095_v57, %v5606_v37  ;;  %v2172_v60 = vmul.f32 3.8918573e-05, %v5680_v51  ;;  %vm2032_vm2 = vcmp.eq.f32.partialorder %v2031_v7, 8.507059e+37  ;;  %vm2029_vm3 = vmor %vm2027_vm1, %vm2028_vm0  ;;  %v3573_v57 = vpop.f32.mrf.mxu3 }
 0x275   : > { %v3374_v46 = vmul.f32 %v3310_v17, %v7524_v30  ;;  %v2026_v41 = vadd.f32 %v4054_v22, %v2025_v50  ;;  %v2063_v28 = vmul.f32 %v4056_v44, %v5983_v52  ;;  %v2034_v18 = vor.u32 1.1754944e-38, %v2033_v29 }
 0x276   : > { %v2071_v12 = vand.u32 2147483647, %v5983_v52  ;;  %v6036_v47 = vmul.f32 0.70710677, %v6025_v26  ;;  %v6039_v56 = vadd.f32 %v564_v35, %v4511_v62  ;;  %v3574_v5 = vadd.f32 %v3573_v57, %v3461_v32 }
 0x277   : > { %3617 = vmatmul.f32.gmra.mxu3 %v3374_v46  ;;  %v2030_v45 = vsel %vm2029_vm3, %v4054_v22, %v2026_v41  ;;  %v2064_v0 = vsub.f32 1.0, %v2063_v28  ;;  %v2097_v17 = vadd.f32 0.112945676, %v2096_v11  ;;  %vm2067_vm4 = vweird.f32 %v5983_v52 }
 0x278   : > { %v2035_v7 = vsel %vm2032_vm2, %v2034_v18, %v2030_v45  ;;  %vm2068_vm5 = vweird.f32 %v4056_v44  ;;  %v2073_v29 = vand.u32 2147483648, %v5983_v52  ;;  %3669 = vst [vmem:[%s6046_s28] sm:$0xff] %v3574_v5  ;;  %v2133_v22 = vadd.f32 0.001143296, %v2132_v33 }
 0x279   : > { %v2036_v50 = vmul.f32 %v2035_v7, %v5761_v16  ;;  %v2065_v30 = vmul.f32 %v4056_v44, %v2064_v0  ;;  %v2098_v35 = vmul.f32 %v2097_v17, %v5606_v37  ;;  %vm6050_vm6 = vcmp.eq.f32.partialorder %v2071_v12, 8.507059e+37  ;;  %vm2069_vm7 = vmor %vm2067_vm4, %vm2068_vm5 }
 0x27a   : > { %v2559_v11 = vmul.f32 %v6036_v47, %v6036_v47  ;;  %v2173_v46 = vadd.f32 0.001143296, %v2172_v60  ;;  %v2212_v41 = vmul.f32 3.8918573e-05, %v5709_v27  ;;  %v2134_v57 = vmul.f32 %v2133_v22, %v5635_v9 }
 0x27b   : > { %v3866_v16 = vclamps-f32 %v2036_v50, 1.0  ;;  %v2066_v28 = vadd.f32 %v4056_v44, %v2065_v30  ;;  %v2099_v18 = vadd.f32 0.4994258, %v2098_v35  ;;  %v2074_v33 = vor.u32 1.1754944e-38, %v2073_v29  ;;  %v7527_v35 = vld [vmem:[#allocation16_spill] sm:$0xff] }
 0x27c   : > { %v6062_v12 = vmul.f32 0.70710677, %v6039_v56  ;;  %v2174_v45 = vmul.f32 %v2173_v46, %v5680_v51  ;;  %v2213_v0 = vadd.f32 0.001143296, %v2212_v41  ;;  %v2135_v7 = vadd.f32 0.014752088, %v2134_v57 }
 0x27d   : > { %v3311_v5 = vadd.f32 1.0, %v3866_v16  ;;  %v2070_v60 = vsel %vm2069_vm7, %v4056_v44, %v2066_v28  ;;  %v2100_v17 = vmul.f32 %v2099_v18, %v5606_v37  ;;  %v2445_v50 = vmul.f32 %v6008_v48, %v5931_v20 }
 0x27e   : > { %v6068_v30 = vmin.f32 %v2519_v24, 16.0  ;;  %v2075_v52 = vsel %vm6050_vm6, %v2074_v33, %v2070_v60  ;;  %v2175_v29 = vadd.f32 0.014752088, %v2174_v45  ;;  %v2136_v44 = vmul.f32 %v2135_v7, %v5635_v9 }
 0x27f   : > { %v3375_v22 = vmul.f32 %v3311_v5, %v7527_v35  ;;  %v2076_v25 = vmul.f32 %v2075_v52, %v5766_v23  ;;  %v6074_v46 = vadd.f32 1.0, %v2100_v17  ;;  %v2482_v37 = vadd.f32 0.00028619796, %v6019_v58  ;;  %v7531_v17 = vld [vmem:[#allocation15_spill] sm:$0xff] }
 0x280   : > { %v6078_v41 = vmin.f32 %v2559_v11, 16.0  ;;  %v2176_v48 = vmul.f32 %v2175_v29, %v5680_v51  ;;  %v2214_v24 = vmul.f32 %v2213_v0, %v5709_v27  ;;  %v2370_v32 = vadd.f32 1.1283791, %v6006_v38  ;;  %v7529_v0 = vld [vmem:[#allocation18_spill] sm:$0xff]  ;;  %v7532_v29 = vld [vmem:[#allocation20_spill] sm:$0xff] }
 0x281   : > { %3507 = vmatmul.f32.gmra.mxu2 %v3375_v22  ;;  %v3867_v16 = vclamps-f32 %v2076_v25, 1.0  ;;  %v2599_v28 = vmul.f32 %v6062_v12, %v6062_v12  ;;  %4057 = vrcp.f32 %v6074_v46  ;;  %v2409_v23 = vmul.f32 %v6015_v13, %v5874_v3 }
 0x282   : > { %v2446_v18 = vadd.f32 0.05243302, %v2445_v50  ;;  %v2521_v58 = vmul.f32 2.1237322e-06, %v6068_v30  ;;  %v2137_v11 = vadd.f32 0.112945676, %v2136_v44  ;;  %v6094_v25 = vmul.f32 %v5994_v39, %v7529_v0 }
 0x283   : > { %v6090_v57 = vmul.f32 0.5, %v5880_v59  ;;  %v3312_v33 = vadd.f32 1.0, %v3867_v16  ;;  %v2177_v45 = vadd.f32 0.112945676, %v2176_v48  ;;  %v2215_v38 = vadd.f32 0.014752088, %v2214_v24 }
 0x284   : > { %7530 = vst [vmem:[#allocation25_spill] sm:$0xff] %v6094_v25  ;;  %v2483_v5 = vmul.f32 %v2482_v37, %v5991_v15  ;;  %v2561_v60 = vmul.f32 2.1237322e-06, %v6078_v41  ;;  %v2138_v13 = vmul.f32 %v2137_v11, %v5635_v9  ;;  %v6100_v50 = vmin.f32 %v2599_v28, 16.0  ;;  %v454_v37 = vpop.f32.mrf.mxu0 }
 0x285   : > { %7528 = vst [vmem:[#allocation23_spill] sm:$0xff] %v6090_v57  ;;  %v3376_v7 = vmul.f32 %v3312_v33, %v7531_v17  ;;  %v2178_v59 = vmul.f32 %v2177_v45, %v5680_v51  ;;  %v2216_v52 = vmul.f32 %v2215_v38, %v5709_v27  ;;  %v6105_v35 = vmul.f32 %v2370_v32, %v7532_v29  ;;  %v3576_v29 = vpop.f32.mrf.mxu3 }
 0x286   : > { %v6107_v22 = vadd.f32 1.1283791, %v2409_v23  ;;  %v2447_v39 = vmul.f32 %v2446_v18, %v5931_v20  ;;  %v2139_v44 = vadd.f32 0.4994258, %v2138_v13  ;;  %v6111_v24 = vmul.f32 0.5, %v5956_v31  ;;  %v567_v23 = vpop.f32.mrf.mxu1 }
 0x287   : > { %7533 = vst [vmem:[#allocation16_spill] sm:$0xff] %v6105_v35  ;;  %v4058_v48 = vpop.eup %4057  ;;  %v2522_v16 = vadd.f32 0.00028619796, %v2521_v58  ;;  %3620 = vmatmul.f32.gmra.mxu3 %v3376_v7  ;;  %v6114_v28 = vadd.f32 %v454_v37, %v4505_v53  ;;  %v2179_v11 = vadd.f32 0.4994258, %v2178_v59  ;;  %v6123_v31 = vadd.f32 %v567_v23, %v4511_v62  ;;  %v3463_v58 = vpop.f32.mrf.mxu2 }
 0x288   : > { %7534 = vst [vmem:[#allocation18_spill] sm:$0xff] %v6111_v24  ;;  %v2484_v33 = vadd.f32 0.0036580483, %v2483_v5  ;;  %v2562_v45 = vadd.f32 0.00028619796, %v2561_v60  ;;  %v2103_v32 = vmul.f32 %v4058_v48, %v6074_v46  ;;  %v2140_v0 = vmul.f32 %v2139_v44, %v5635_v9 }
 0x289   : > { %v2217_v38 = vadd.f32 0.112945676, %v2216_v52  ;;  %v2601_v18 = vmul.f32 2.1237322e-06, %v6100_v50  ;;  %v6120_v13 = vmul.f32 0.70710677, %v6114_v28  ;;  %v3464_v60 = vadd.f32 %v6013_v55, %v3463_v58 }
 0x28a   : > { %v2104_v17 = vsub.f32 1.0, %v2103_v32  ;;  %v2111_v7 = vand.u32 2147483647, %v6074_v46  ;;  %v2113_v5 = vand.u32 2147483648, %v6074_v46  ;;  %v6128_v59 = vadd.f32 1.0, %v2140_v0 }
 0x28b   : > { %v2639_v52 = vmul.f32 %v6120_v13, %v6120_v13  ;;  %v6133_v9 = vmul.f32 0.70710677, %v6123_v31  ;;  %v2180_v44 = vmul.f32 %v2179_v11, %v5680_v51  ;;  %vm2108_vm8 = vweird.f32 %v4058_v48 }
 0x28c   : > { %v2105_v37 = vmul.f32 %v4058_v48, %v2104_v17  ;;  %v3577_v32 = vadd.f32 %v3576_v29, %v3464_v60  ;;  %v2218_v23 = vmul.f32 %v2217_v38, %v5709_v27  ;;  %v2448_v24 = vadd.f32 0.18741608, %v2447_v39 }
 0x28d   : > { %v2485_v58 = vmul.f32 %v2484_v33, %v5991_v15  ;;  %v2523_v0 = vmul.f32 %v2522_v16, %v6068_v30  ;;  %4059 = vrcp.f32 %v6128_v59  ;;  %v2602_v57 = vadd.f32 0.00028619796, %v2601_v18 }
 0x28e   : > { %v2106_v34 = vadd.f32 %v4058_v48, %v2105_v37  ;;  %vm2107_vm9 = vweird.f32 %v6074_v46  ;;  %v6141_v35 = vmin.f32 %v2639_v52, 16.0  ;;  %3670 = vst [vmem:[%s6046_s28 + $0x8] sm:$0xff] %v3577_v32  ;;  %v2563_v51 = vmul.f32 %v2562_v45, %v6078_v41 }
 0x28f   : > { %vm2109_vm10 = vmor %vm2107_vm9, %vm2108_vm8  ;;  %v2114_v11 = vor.u32 1.1754944e-38, %v2113_v5  ;;  %v2679_v39 = vmul.f32 %v6133_v9, %v6133_v9  ;;  %v6147_v38 = vadd.f32 1.0, %v2180_v44  ;;  %vm2112_vm11 = vcmp.eq.f32.partialorder %v2111_v7, 8.507059e+37 }
 0x290   : > { %v2110_v33 = vsel %vm2109_vm10, %v4058_v48, %v2106_v34  ;;  %v2652_v16 = vmul.f32 3.8918573e-05, %v6141_v35  ;;  %v2219_v18 = vadd.f32 0.4994258, %v2218_v23  ;;  %v6151_v17 = vmul.f32 0.5, %v5975_v2 }
 0x291   : > { %v2115_v46 = vsel %vm2112_vm11, %v2114_v11, %v2110_v33  ;;  %v6153_v60 = vmin.f32 %v2679_v39, 16.0  ;;  %4061 = vrcp.f32 %v6147_v38  ;;  %v6157_v45 = vmul.f32 %v2448_v24, %v5931_v20 }
 0x292   : > { %7535 = vst [vmem:[#allocation15_spill] sm:$0xff] %v6151_v17  ;;  %v2603_v5 = vmul.f32 %v2602_v57, %v6100_v50  ;;  %v2116_v52 = vmul.f32 %v2115_v46, %v5899_v6  ;;  %v2653_v34 = vadd.f32 0.001143296, %v2652_v16  ;;  %v2524_v7 = vadd.f32 0.0036580483, %v2523_v0 }
 0x293   : > { %v4060_v48 = vpop.eup %4059  ;;  %v2641_v29 = vmul.f32 2.1237322e-06, %v6141_v35  ;;  %v2692_v2 = vmul.f32 3.8918573e-05, %v6153_v60  ;;  %v2220_v44 = vmul.f32 %v2219_v18, %v5709_v27  ;;  %v2486_v37 = vadd.f32 0.05243302, %v2485_v58 }
 0x294   : > { %v2564_v32 = vadd.f32 0.0036580483, %v2563_v51  ;;  %v3868_v23 = vclamps-f32 %v2116_v52, 1.0  ;;  %v2143_v11 = vmul.f32 %v4060_v48, %v6128_v59  ;;  %v2151_v24 = vand.u32 2147483647, %v6128_v59  ;;  %v7536_v18 = vld [vmem:[#allocation21_spill] sm:$0xff] }
 0x295   : > { %v2153_v57 = vand.u32 2147483648, %v6128_v59  ;;  %v2654_v6 = vmul.f32 %v2653_v34, %v6141_v35  ;;  %v2693_v39 = vadd.f32 0.001143296, %v2692_v2  ;;  %v2604_v33 = vadd.f32 0.0036580483, %v2603_v5 }
 0x296   : > { %v3313_v0 = vadd.f32 1.0, %v3868_v23  ;;  %v2144_v16 = vsub.f32 1.0, %v2143_v11  ;;  %vm2147_vm12 = vweird.f32 %v6128_v59  ;;  %v2642_v17 = vadd.f32 0.00028619796, %v2641_v29 }
 0x297   : > { %v4062_v46 = vpop.eup %4061  ;;  %v2655_v27 = vadd.f32 0.014752088, %v2654_v6  ;;  %v2694_v58 = vmul.f32 %v2693_v39, %v6153_v60  ;;  %v6170_v51 = vadd.f32 1.0, %v2220_v44  ;;  %vm2148_vm13 = vweird.f32 %v4060_v48 }
 0x298   : > { %v3377_v52 = vmul.f32 %v3313_v0, %v7536_v18  ;;  %v2145_v10 = vmul.f32 %v4060_v48, %v2144_v16  ;;  %v2183_v25 = vmul.f32 %v4062_v46, %v6147_v38  ;;  %vm6174_vm14 = vcmp.eq.f32.partialorder %v2151_v24, 8.507059e+37  ;;  %vm2149_vm15 = vmor %vm2147_vm12, %vm2148_vm13 }
 0x299   : > { %v2154_v5 = vor.u32 1.1754944e-38, %v2153_v57  ;;  %v2656_v2 = vmul.f32 %v2655_v27, %v6141_v35  ;;  %v2695_v23 = vadd.f32 0.014752088, %v2694_v58  ;;  %v2681_v11 = vmul.f32 2.1237322e-06, %v6153_v60 }
 0x29a   : > { %3510 = vmatmul.f32.gmra.mxu2 %v3377_v52  ;;  %v2146_v29 = vadd.f32 %v4060_v48, %v2145_v10  ;;  %v2184_v44 = vsub.f32 1.0, %v2183_v25  ;;  %4063 = vrcp.f32 %v6170_v51  ;;  %v2643_v6 = vmul.f32 %v2642_v17, %v6141_v35 }
 0x29b   : > { %v2657_v24 = vadd.f32 0.112945676, %v2656_v2  ;;  %v2696_v39 = vmul.f32 %v2695_v23, %v6153_v60  ;;  %v2193_v57 = vand.u32 2147483648, %v6147_v38  ;;  %vm2188_vm0 = vweird.f32 %v4062_v46 }
 0x29c   : > { %v2150_v0 = vsel %vm2149_vm15, %v4060_v48, %v2146_v29  ;;  %v2185_v16 = vmul.f32 %v4062_v46, %v2184_v44  ;;  %v2191_v10 = vand.u32 2147483647, %v6147_v38  ;;  %v2525_v27 = vmul.f32 %v2524_v7, %v6068_v30 }
 0x29d   : > { %v2565_v25 = vmul.f32 %v2564_v32, %v6078_v41  ;;  %v2155_v59 = vsel %vm6174_vm14, %v2154_v5, %v2150_v0  ;;  %v2658_v58 = vmul.f32 %v2657_v24, %v6141_v35  ;;  %v2682_v18 = vadd.f32 0.00028619796, %v2681_v11 }
 0x29e   : > { %v2156_v17 = vmul.f32 %v2155_v59, %v5913_v61  ;;  %v2186_v52 = vadd.f32 %v4062_v46, %v2185_v16  ;;  %vm2187_vm1 = vweird.f32 %v6147_v38  ;;  %v2605_v48 = vmul.f32 %v2604_v33, %v6100_v50  ;;  %v457_v33 = vpop.f32.mrf.mxu0 }
 0x29f   : > { %v2644_v2 = vadd.f32 0.0036580483, %v2643_v6  ;;  %v2697_v23 = vadd.f32 0.112945676, %v2696_v39  ;;  %vm2189_vm2 = vmor %vm2187_vm1, %vm2188_vm0  ;;  %v2194_v29 = vor.u32 1.1754944e-38, %v2193_v57  ;;  %vm2192_vm3 = vcmp.eq.f32.partialorder %v2191_v10, 8.507059e+37 }
 0x2a0   : > { %v4064_v7 = vpop.eup %4063  ;;  %v3869_v44 = vclamps-f32 %v2156_v17, 1.0  ;;  %v2659_v32 = vadd.f32 0.4994258, %v2658_v58  ;;  %v2190_v20 = vsel %vm2189_vm2, %v4062_v46, %v2186_v52  ;;  %v2487_v34 = vmul.f32 %v2486_v37, %v5991_v15  ;;  %v7539_v10 = vld [vmem:[#allocation17_spill] sm:$0xff] }
 0x2a1   : > { %v2526_v5 = vadd.f32 0.05243302, %v2525_v27  ;;  %v2566_v24 = vadd.f32 0.05243302, %v2565_v25  ;;  %v2195_v61 = vsel %vm2192_vm3, %v2194_v29, %v2190_v20  ;;  %v2223_v38 = vmul.f32 %v4064_v7, %v6170_v51 }
 0x2a2   : > { %v3314_v11 = vadd.f32 1.0, %v3869_v44  ;;  %v2196_v0 = vmul.f32 %v2195_v61, %v5929_v1  ;;  %v2252_v6 = vmul.f32 3.8918573e-05, %v5733_v36  ;;  %v2606_v39 = vadd.f32 0.05243302, %v2605_v48 }
 0x2a3   : > { %v2645_v57 = vmul.f32 %v2644_v2, %v6141_v35  ;;  %v2683_v16 = vmul.f32 %v2682_v18, %v6153_v60  ;;  %v2698_v46 = vmul.f32 %v2697_v23, %v6153_v60  ;;  %v2660_v27 = vmul.f32 %v2659_v32, %v6141_v35  ;;  %v3466_v32 = vpop.f32.mrf.mxu2 }
 0x2a4   : > { %v3378_v37 = vmul.f32 %v3314_v11, %v7539_v10  ;;  %v3870_v20 = vclamps-f32 %v2196_v0, 1.0  ;;  %v2224_v25 = vsub.f32 1.0, %v2223_v38  ;;  %v2450_v1 = vadd.f32 1.1283791, %v6157_v45  ;;  %v570_v45 = vpop.f32.mrf.mxu1  ;;  %v7540_v0 = vld [vmem:[#allocation22_spill] sm:$0xff] }
 0x2a5   : > { %v6205_v59 = vadd.f32 0.18741608, %v2487_v34  ;;  %v2527_v58 = vmul.f32 %v2526_v5, %v6068_v30  ;;  %v6209_v17 = vadd.f32 %v457_v33, %v4505_v53  ;;  %v2233_v48 = vand.u32 2147483648, %v6170_v51 }
 0x2a6   : > { %3623 = vmatmul.f32.gmra.mxu3 %v3378_v37  ;;  %v3315_v52 = vadd.f32 1.0, %v3870_v20  ;;  %v2225_v18 = vmul.f32 %v4064_v7, %v2224_v25  ;;  %v2253_v2 = vadd.f32 0.001143296, %v2252_v6  ;;  %v2567_v23 = vmul.f32 %v2566_v24, %v6078_v41  ;;  %v3579_v25 = vpop.f32.mrf.mxu3 }
 0x2a7   : > { %v2684_v29 = vadd.f32 0.0036580483, %v2683_v16  ;;  %vm2228_vm4 = vweird.f32 %v4064_v7  ;;  %v2231_v44 = vand.u32 2147483647, %v6170_v51  ;;  %v2607_v34 = vmul.f32 %v2606_v39, %v6100_v50 }
 0x2a8   : > { %v2646_v5 = vadd.f32 0.05243302, %v2645_v57  ;;  %v6215_v61 = vadd.f32 1.0, %v2660_v27  ;;  %v2699_v11 = vadd.f32 0.4994258, %v2698_v46  ;;  %v3379_v38 = vmul.f32 %v3315_v52, %v7540_v0 }
 0x2a9   : > { %v2226_v33 = vadd.f32 %v4064_v7, %v2225_v18  ;;  %vm2227_vm5 = vweird.f32 %v6170_v51  ;;  %v6220_v6 = vmul.f32 0.70710677, %v6209_v17  ;;  %v2234_v24 = vor.u32 1.1754944e-38, %v2233_v48 }
 0x2aa   : > { %vm2229_vm6 = vmor %vm2227_vm5, %vm2228_vm4  ;;  %v6223_v16 = vadd.f32 %v570_v45, %v4511_v62  ;;  %v3467_v10 = vadd.f32 %v6013_v55, %v3466_v32  ;;  %v2254_v39 = vmul.f32 %v2253_v2, %v5733_v36  ;;  %3513 = vmatmul.f32.gmra.mxu2 %v3379_v38  ;;  %vm2232_vm7 = vcmp.eq.f32.partialorder %v2231_v44, 8.507059e+37  ;;  %v7541_v2 = vld [vmem:[#allocation26_spill] sm:$0xff] }
 0x2ab   : > { %v2230_v57 = vsel %vm2229_vm6, %v4064_v7, %v2226_v33  ;;  %v2719_v46 = vmul.f32 %v6220_v6, %v6220_v6  ;;  %v2292_v51 = vmul.f32 3.8918573e-05, %v5785_v43  ;;  %4065 = vrcp.f32 %v6215_v61 }
 0x2ac   : > { %v2685_v37 = vmul.f32 %v2684_v29, %v6153_v60  ;;  %v2700_v27 = vmul.f32 %v2699_v11, %v6153_v60  ;;  %v2235_v20 = vsel %vm2232_vm7, %v2234_v24, %v2230_v57  ;;  %v6237_v7 = vmul.f32 0.70710677, %v6223_v16 }
 0x2ad   : > { %v2236_v52 = vmul.f32 %v2235_v20, %v5934_v19  ;;  %v6234_v18 = vmin.f32 %v2719_v46, 16.0  ;;  %v3580_v48 = vadd.f32 %v3579_v25, %v3467_v10  ;;  %v6241_v44 = vmul.f32 %v6107_v22, %v7541_v2  ;;  %v7543_v20 = vld [vmem:[#allocation19_spill] sm:$0xff] }
 0x2ae   : > { %v2528_v45 = vadd.f32 0.18741608, %v2527_v58  ;;  %v2255_v32 = vadd.f32 0.014752088, %v2254_v39  ;;  %v2293_v29 = vadd.f32 0.001143296, %v2292_v51  ;;  %v6244_v0 = vmul.f32 %v2450_v1, %v5891_v49 }
 0x2af   : > { %v2568_v11 = vadd.f32 0.18741608, %v2567_v23  ;;  %v2608_v38 = vadd.f32 0.18741608, %v2607_v34  ;;  %v3871_v33 = vclamps-f32 %v2236_v52, 1.0  ;;  %3671 = vst [vmem:[%s6046_s28 + $0x10] sm:$0xff] %v3580_v48  ;;  %v2647_v19 = vmul.f32 %v2646_v5, %v6141_v35 }
 0x2b0   : > { %v2732_v24 = vmul.f32 3.8918573e-05, %v6234_v18  ;;  %v2759_v10 = vmul.f32 %v6237_v7, %v6237_v7  ;;  %v2256_v22 = vmul.f32 %v2255_v32, %v5733_v36  ;;  %v2686_v57 = vadd.f32 0.05243302, %v2685_v37 }
 0x2b1   : > { %v6252_v58 = vadd.f32 1.0, %v2700_v27  ;;  %v3316_v39 = vadd.f32 1.0, %v3871_v33  ;;  %v2294_v49 = vmul.f32 %v2293_v29, %v5785_v43  ;;  %v6255_v1 = vpop.eup %4065  ;;  %v6258_v23 = vmul.f32 0.5, %v6025_v26 }
 0x2b2   : > { %v2733_v34 = vadd.f32 0.001143296, %v2732_v24  ;;  %v6260_v5 = vmin.f32 %v2759_v10, 16.0  ;;  %v2257_v46 = vadd.f32 0.112945676, %v2256_v22  ;;  %v2489_v51 = vmul.f32 %v6205_v59, %v5991_v15 }
 0x2b3   : > { %7542 = vst [vmem:[#allocation20_spill] sm:$0xff] %v6258_v23  ;;  %v3380_v25 = vmul.f32 %v3316_v39, %v7543_v20  ;;  %v2721_v37 = vmul.f32 2.1237322e-06, %v6234_v18  ;;  %v2295_v27 = vadd.f32 0.014752088, %v2294_v49  ;;  %v2529_v52 = vmul.f32 %v2528_v45, %v6068_v30 }
 0x2b4   : > { %v2648_v48 = vadd.f32 0.18741608, %v2647_v19  ;;  %v2734_v2 = vmul.f32 %v2733_v34, %v6234_v18  ;;  %v2772_v26 = vmul.f32 3.8918573e-05, %v6260_v5  ;;  %v2569_v32 = vmul.f32 %v2568_v11, %v6078_v41 }
 0x2b5   : > { %v2687_v29 = vmul.f32 %v2686_v57, %v6153_v60  ;;  %4067 = vrcp.f32 %v6252_v58  ;;  %3626 = vmatmul.f32.gmra.mxu3 %v3380_v25  ;;  %v2258_v59 = vmul.f32 %v2257_v46, %v5733_v36  ;;  %v2609_v33 = vmul.f32 %v2608_v38, %v6100_v50 }
 0x2b6   : > { %v2663_v24 = vmul.f32 %v6255_v1, %v6215_v61  ;;  %v2735_v45 = vadd.f32 0.014752088, %v2734_v2  ;;  %v2773_v19 = vadd.f32 0.001143296, %v2772_v26  ;;  %v2490_v10 = vadd.f32 1.1283791, %v2489_v51 }
 0x2b7   : > { %v2722_v22 = vadd.f32 0.00028619796, %v2721_v37  ;;  %v2259_v39 = vadd.f32 0.4994258, %v2258_v59  ;;  %v2296_v49 = vmul.f32 %v2295_v27, %v5785_v43  ;;  %v2530_v11 = vadd.f32 1.1283791, %v2529_v52 }
 0x2b8   : > { %v2649_v57 = vmul.f32 %v2648_v48, %v6141_v35  ;;  %v2761_v34 = vmul.f32 2.1237322e-06, %v6260_v5  ;;  %v2774_v20 = vmul.f32 %v2773_v19, %v6260_v5  ;;  %v2688_v46 = vadd.f32 0.18741608, %v2687_v29 }
 0x2b9   : > { %v2736_v38 = vmul.f32 %v2735_v45, %v6234_v18  ;;  %v2260_v25 = vmul.f32 %v2259_v39, %v5733_v36  ;;  %v2297_v23 = vadd.f32 0.112945676, %v2296_v49  ;;  %v2570_v2 = vadd.f32 1.1283791, %v2569_v32  ;;  %v460_v39 = vpop.f32.mrf.mxu0 }
 0x2ba   : > { %v6283_v51 = vmul.f32 0.5, %v6039_v56  ;;  %v2610_v37 = vadd.f32 1.1283791, %v2609_v33  ;;  %v2664_v26 = vsub.f32 1.0, %v2663_v24  ;;  %v2723_v35 = vmul.f32 %v2722_v22, %v6234_v18 }
 0x2bb   : > { %v6285_v27 = vpop.eup %4067  ;;  %v2775_v52 = vadd.f32 0.014752088, %v2774_v20  ;;  %v6288_v48 = vadd.f32 1.0, %v2260_v25  ;;  %v2298_v29 = vmul.f32 %v2297_v23, %v5785_v43  ;;  %v6292_v59 = vmul.f32 %v2490_v10, %v5966_v54 }
 0x2bc   : > { %v6295_v36 = vmul.f32 %v2530_v11, %v5988_v8  ;;  %v6298_v56 = vmul.f32 0.5, %v6114_v28  ;;  %v2762_v32 = vadd.f32 0.00028619796, %v2761_v34  ;;  %v2650_v33 = vadd.f32 1.1283791, %v2649_v57 }
 0x2bd   : > { %v2689_v24 = vmul.f32 %v2688_v46, %v6153_v60  ;;  %v2737_v45 = vadd.f32 0.112945676, %v2736_v38  ;;  %4069 = vrcp.f32 %v6288_v48  ;;  %v6303_v19 = vmul.f32 %v2570_v2, %v6036_v47 }
 0x2be   : > { %v6306_v23 = vmul.f32 %v2610_v37, %v6062_v12  ;;  %v2665_v54 = vmul.f32 %v6255_v1, %v2664_v26  ;;  %v2703_v8 = vmul.f32 %v6285_v27, %v6252_v58  ;;  %v2671_v28 = vand.u32 2147483647, %v6215_v61 }
 0x2bf   : > { %v2724_v10 = vadd.f32 0.0036580483, %v2723_v35  ;;  %v2776_v22 = vmul.f32 %v2775_v52, %v6260_v5  ;;  %v2299_v60 = vadd.f32 0.4994258, %v2298_v29  ;;  %v2673_v49 = vand.u32 2147483648, %v6215_v61 }
 0x2c0   : > { %v6315_v47 = vmul.f32 0.5, %v6123_v31  ;;  %v2763_v12 = vmul.f32 %v2762_v32, %v6260_v5  ;;  %v6319_v11 = vadd.f32 %v460_v39, %v4505_v53  ;;  %v6322_v57 = vmul.f32 %v2650_v33, %v6120_v13 }
 0x2c1   : > { %v2690_v34 = vadd.f32 1.1283791, %v2689_v24  ;;  %v2738_v20 = vmul.f32 %v2737_v45, %v6234_v18  ;;  %v2300_v46 = vmul.f32 %v2299_v60, %v5785_v43  ;;  %v2666_v38 = vadd.f32 %v6255_v1, %v2665_v54  ;;  %v573_v54 = vpop.f32.mrf.mxu1 }
 0x2c2   : > { %vm2667_vm8 = vweird.f32 %v6215_v61  ;;  %vm2668_vm9 = vweird.f32 %v6255_v1  ;;  %v2704_v31 = vsub.f32 1.0, %v2703_v8  ;;  %vm6329_vm10 = vcmp.eq.f32.partialorder %v2671_v28, 8.507059e+37 }
 0x2c3   : > { %v4070_v25 = vpop.eup %4069  ;;  %v2725_v13 = vmul.f32 %v2724_v10, %v6234_v18  ;;  %v2777_v37 = vadd.f32 0.112945676, %v2776_v22  ;;  %v6334_v26 = vadd.f32 1.0, %v2300_v46  ;;  %v2674_v35 = vor.u32 1.1754944e-38, %v2673_v49  ;;  %vm6340_vm11 = vmor %vm2667_vm8, %vm2668_vm9 }
 0x2c4   : > { %v2713_v43 = vand.u32 2147483648, %v6252_v58  ;;  %v2764_v52 = vadd.f32 0.0036580483, %v2763_v12  ;;  %v6338_v29 = vmul.f32 0.70710677, %v6319_v11  ;;  %v6345_v32 = vmul.f32 %v2690_v34, %v6133_v9 }
 0x2c5   : > { %v6348_v33 = vmul.f32 0.5, %v6209_v17  ;;  %v2739_v24 = vadd.f32 0.4994258, %v2738_v20  ;;  %v2263_v45 = vmul.f32 %v4070_v25, %v6288_v48  ;;  %v2670_v8 = vsel %vm6340_vm11, %v6255_v1, %v2666_v38  ;;  %v3469_v17 = vpop.f32.mrf.mxu2 }
 0x2c6   : > { %v2705_v28 = vmul.f32 %v6285_v27, %v2704_v31  ;;  %4071 = vrcp.f32 %v6334_v26  ;;  %v2726_v22 = vadd.f32 0.05243302, %v2725_v13  ;;  %v2778_v9 = vmul.f32 %v2777_v37, %v6260_v5 }
 0x2c7   : > { %7548 = vst [vmem:[#allocation21_spill] sm:$0xff] %v6348_v33  ;;  %v2264_v60 = vsub.f32 1.0, %v2263_v45  ;;  %v2332_v39 = vmul.f32 3.8918573e-05, %v5819_v40  ;;  %v6359_v49 = vor.u32 1.1754944e-38, %v2713_v43  ;;  %v2765_v12 = vmul.f32 %v2764_v52, %v6260_v5 }
 0x2c8   : > { %v2799_v1 = vmul.f32 %v6338_v29, %v6338_v29  ;;  %v6365_v34 = vadd.f32 %v573_v54, %v4511_v62  ;;  %v6369_v20 = vsel %vm6329_vm10, %v2674_v35, %v2670_v8  ;;  %v2740_v46 = vmul.f32 %v2739_v24, %v6234_v18 }
 0x2c9   : > { %v2271_v38 = vand.u32 2147483647, %v6288_v48  ;;  %v2273_v31 = vand.u32 2147483648, %v6288_v48  ;;  %v6375_v13 = vadd.f32 %v6285_v27, %v2705_v28  ;;  %v2265_v37 = vmul.f32 %v4070_v25, %v2264_v60 }
 0x2ca   : > { %vm2268_vm12 = vweird.f32 %v4070_v25  ;;  %v3470_v43 = vadd.f32 %v6013_v55, %v3469_v17  ;;  %v2727_v52 = vmul.f32 %v2726_v22, %v6234_v18  ;;  %v2779_v61 = vadd.f32 0.4994258, %v2778_v9  ;;  %v3582_v22 = vpop.f32.mrf.mxu3 }
 0x2cb   : > { %v6379_v45 = vmin.f32 %v2799_v1, 16.0  ;;  %v2333_v2 = vadd.f32 0.001143296, %v2332_v39  ;;  %v2766_v54 = vadd.f32 0.05243302, %v2765_v12  ;;  %v2266_v24 = vadd.f32 %v4070_v25, %v2265_v37 }
 0x2cc   : > { %v4072_v35 = vpop.eup %4071  ;;  %vm2267_vm13 = vweird.f32 %v6288_v48  ;;  %v6383_v8 = vmul.f32 0.70710677, %v6365_v34  ;;  %v6385_v28 = vadd.f32 1.0, %v2740_v46  ;;  %vm2272_vm15 = vcmp.eq.f32.partialorder %v2271_v38, 8.507059e+37 }
 0x2cd   : > { %vm2269_vm14 = vmor %vm2267_vm13, %vm2268_vm12  ;;  %v2274_v60 = vor.u32 1.1754944e-38, %v2273_v31  ;;  %v2303_v55 = vmul.f32 %v4072_v35, %v6334_v26  ;;  %vm2708_vm0 = vweird.f32 %v6285_v27  ;;  %v2812_v17 = vmul.f32 3.8918573e-05, %v6379_v45 }
 0x2ce   : > { %v2270_v9 = vsel %vm2269_vm14, %v4070_v25, %v2266_v24  ;;  %v2839_v48 = vmul.f32 %v6383_v8, %v6383_v8  ;;  %v3583_v39 = vadd.f32 %v3582_v22, %v3470_v43  ;;  %v2780_v12 = vmul.f32 %v2779_v61, %v6260_v5 }
 0x2cf   : > { %v2275_v1 = vsel %vm2272_vm15, %v2274_v60, %v2270_v9  ;;  %v2304_v46 = vsub.f32 1.0, %v2303_v55  ;;  %v2334_v38 = vmul.f32 %v2333_v2, %v5819_v40  ;;  %vm2707_vm1 = vweird.f32 %v6252_v58 }
 0x2d0   : > { %v2276_v31 = vmul.f32 %v2275_v1, %v5946_v4  ;;  %v2311_v37 = vand.u32 2147483647, %v6334_v26  ;;  %v2313_v25 = vand.u32 2147483648, %v6334_v26  ;;  %v2813_v24 = vadd.f32 0.001143296, %v2812_v17  ;;  %3672 = vst [vmem:[%s6046_s28 + $0x18] sm:$0xff] %v3583_v39  ;;  %vm6435_vm7 = vmor %vm2707_vm1, %vm2708_vm0 }
 0x2d1   : > { %v2305_v10 = vmul.f32 %v4072_v35, %v2304_v46  ;;  %vm2308_vm2 = vweird.f32 %v4072_v35  ;;  %v2801_v43 = vmul.f32 2.1237322e-06, %v6379_v45  ;;  %v6400_v22 = vmin.f32 %v2839_v48, 16.0 }
 0x2d2   : > { %4073 = vrcp.f32 %v6385_v28  ;;  %v3872_v61 = vclamps-f32 %v2276_v31, 1.0  ;;  %v2814_v2 = vmul.f32 %v2813_v24, %v6379_v45  ;;  %v2372_v60 = vmul.f32 3.8918573e-05, %v5832_v21 }
 0x2d3   : > { %v2767_v4 = vmul.f32 %v2766_v54, %v6260_v5  ;;  %v6406_v55 = vadd.f32 1.0, %v2780_v12  ;;  %v2306_v9 = vadd.f32 %v4072_v35, %v2305_v10  ;;  %vm2307_vm3 = vweird.f32 %v6334_v26 }
 0x2d4   : > { %v3317_v17 = vadd.f32 1.0, %v3872_v61  ;;  %vm2309_vm4 = vmor %vm2307_vm3, %vm2308_vm2  ;;  %v2314_v39 = vor.u32 1.1754944e-38, %v2313_v25  ;;  %v2815_v1 = vadd.f32 0.014752088, %v2814_v2  ;;  %v2335_v48 = vadd.f32 0.014752088, %v2334_v38 }
 0x2d5   : > { %v7549_v46 = vand.u32 2147483647, %v6252_v58  ;;  %v2310_v24 = vsel %vm2309_vm4, %v4072_v35, %v2306_v9  ;;  %vm2312_vm6 = vcmp.eq.f32.partialorder %v2311_v37, 8.507059e+37  ;;  %v2802_v33 = vadd.f32 0.00028619796, %v2801_v43 }
 0x2d6   : > { %v2841_v54 = vmul.f32 2.1237322e-06, %v6400_v22  ;;  %v2728_v12 = vadd.f32 0.18741608, %v2727_v52  ;;  %v3381_v10 = vmul.f32 %v3317_v17, %v5916_v42  ;;  %v2315_v26 = vsel %vm2312_vm6, %v2314_v39, %v2310_v24 }
 0x2d7   : > { %vm6411_vm5 = vcmp.eq.f32.partialorder %v7549_v46, 8.507059e+37  ;;  %v2816_v61 = vmul.f32 %v2815_v1, %v6379_v45  ;;  %v6419_v25 = vmul.f32 0.5, %v6223_v16  ;;  %4075 = vrcp.f32 %v6406_v55 }
 0x2d8   : > { %v2316_v38 = vmul.f32 %v2315_v26, %v6003_v14  ;;  %v2852_v2 = vmul.f32 3.8918573e-05, %v6400_v22  ;;  %v6424_v35 = vpop.eup %4073  ;;  %v2768_v37 = vadd.f32 0.18741608, %v2767_v4  ;;  %3516 = vmatmul.f32.gmra.mxu2 %v3381_v10  ;;  %v2336_v52 = vmul.f32 %v2335_v48, %v5819_v40 }
 0x2d9   : > { %v2817_v43 = vadd.f32 0.112945676, %v2816_v61  ;;  %v2373_v42 = vadd.f32 0.001143296, %v2372_v60  ;;  %v6429_v9 = vmul.f32 %v6369_v20, %v6322_v57  ;;  %v2803_v4 = vmul.f32 %v2802_v33, %v6379_v45 }
 0x2da   : > { %v3873_v16 = vclamps-f32 %v2316_v38, 1.0  ;;  %v2842_v17 = vadd.f32 0.00028619796, %v2841_v54  ;;  %v2710_v60 = vsel %vm6435_vm7, %v6285_v27, %v6375_v13  ;;  %v2729_v57 = vmul.f32 %v2728_v12, %v6234_v18 }
 0x2db   : > { %v2853_v20 = vadd.f32 0.001143296, %v2852_v2  ;;  %v2337_v39 = vadd.f32 0.112945676, %v2336_v52  ;;  %v2743_v58 = vmul.f32 %v6424_v35, %v6385_v28  ;;  %v2818_v48 = vmul.f32 %v2817_v43, %v6379_v45 }
 0x2dc   : > { %v3318_v1 = vadd.f32 1.0, %v3873_v16  ;;  %v2374_v46 = vmul.f32 %v2373_v42, %v5832_v21  ;;  %v2769_v33 = vmul.f32 %v2768_v37, %v6260_v5  ;;  %v2412_v27 = vmul.f32 3.8918573e-05, %v5874_v3 }
 0x2dd   : > { %v2854_v24 = vmul.f32 %v2853_v20, %v6400_v22  ;;  %v2338_v54 = vmul.f32 %v2337_v39, %v5819_v40  ;;  %v6453_v13 = vpop.eup %4075  ;;  %v2804_v12 = vadd.f32 0.0036580483, %v2803_v4  ;;  %v2843_v10 = vmul.f32 %v2842_v17, %v6400_v22 }
 0x2de   : > { %v3382_v18 = vmul.f32 %v3318_v1, %v5923_v63  ;;  %v2375_v26 = vadd.f32 0.014752088, %v2374_v46  ;;  %v2715_v61 = vsel %vm6411_vm5, %v6359_v49, %v2710_v60  ;;  %v2730_v38 = vadd.f32 1.1283791, %v2729_v57 }
 0x2df   : > { %v2339_v5 = vadd.f32 0.4994258, %v2338_v54  ;;  %v2413_v2 = vadd.f32 0.001143296, %v2412_v27  ;;  %v2744_v37 = vsub.f32 1.0, %v2743_v58  ;;  %v2753_v63 = vand.u32 2147483648, %v6385_v28 }
 0x2e0   : > { %v2751_v43 = vand.u32 2147483647, %v6385_v28  ;;  %3629 = vmatmul.f32.gmra.mxu3 %v3382_v18  ;;  %v2819_v52 = vadd.f32 0.4994258, %v2818_v48  ;;  %v2376_v42 = vmul.f32 %v2375_v26, %v5832_v21  ;;  %v2783_v14 = vmul.f32 %v6453_v13, %v6406_v55  ;;  %v463_v18 = vpop.f32.mrf.mxu0 }
 0x2e1   : > { %v2855_v16 = vadd.f32 0.014752088, %v2854_v24  ;;  %v2340_v4 = vmul.f32 %v2339_v5, %v5819_v40  ;;  %v2770_v31 = vadd.f32 1.1283791, %v2769_v33  ;;  %v2805_v49 = vmul.f32 %v2804_v12, %v6379_v45 }
 0x2e2   : > { %v2844_v17 = vadd.f32 0.0036580483, %v2843_v10  ;;  %v2377_v60 = vadd.f32 0.112945676, %v2376_v42  ;;  %v6468_v57 = vmul.f32 %v2715_v61, %v6345_v32  ;;  %v6471_v20 = vmul.f32 %v2730_v38, %v6220_v6 }
 0x2e3   : > { %v6474_v39 = vmul.f32 0.5, %v6319_v11  ;;  %v2414_v58 = vmul.f32 %v2413_v2, %v5874_v3  ;;  %v2745_v1 = vmul.f32 %v6424_v35, %v2744_v37  ;;  %v2820_v40 = vmul.f32 %v2819_v52, %v6379_v45 }
 0x2e4   : > { %v6479_v48 = vadd.f32 1.0, %v2340_v4  ;;  %v2378_v46 = vmul.f32 %v2377_v60, %v5832_v21  ;;  %vm2747_vm8 = vweird.f32 %v6385_v28  ;;  %v2754_v32 = vor.u32 1.1754944e-38, %v2753_v63 }
 0x2e5   : > { %7554 = vst [vmem:[#allocation17_spill] sm:$0xff] %v6474_v39  ;;  %v2784_v33 = vsub.f32 1.0, %v2783_v14  ;;  %v2856_v6 = vmul.f32 %v2855_v16, %v6400_v22  ;;  %vm6484_vm9 = vcmp.eq.f32.partialorder %v2751_v43, 8.507059e+37  ;;  %v6489_v11 = vmul.f32 %v2770_v31, %v6237_v7  ;;  %v7557_v7 = vld [vmem:[#allocation24_spill] sm:$0xff] }
 0x2e6   : > { %v2806_v54 = vadd.f32 0.05243302, %v2805_v49  ;;  %v2845_v27 = vmul.f32 %v2844_v17, %v6400_v22  ;;  %4077 = vrcp.f32 %v6479_v48  ;;  %v2793_v12 = vand.u32 2147483648, %v6406_v55 }
 0x2e7   : > { %v2379_v10 = vadd.f32 0.4994258, %v2378_v46  ;;  %v6495_v26 = vadd.f32 %v463_v18, %v4505_v53  ;;  %v2415_v61 = vadd.f32 0.014752088, %v2414_v58  ;;  %v2746_v38 = vadd.f32 %v6424_v35, %v2745_v1  ;;  %v3472_v1 = vpop.f32.mrf.mxu2 }
 0x2e8   : > { %vm2748_vm10 = vweird.f32 %v6424_v35  ;;  %v6499_v5 = vadd.f32 1.0, %v2820_v40  ;;  %v2452_v2 = vmul.f32 3.8918573e-05, %v7557_v7  ;;  %v2785_v37 = vmul.f32 %v6453_v13, %v2784_v33 }
 0x2e9   : > { %vm2787_vm11 = vweird.f32 %v6406_v55  ;;  %v2857_v43 = vadd.f32 0.112945676, %v2856_v6  ;;  %v2380_v52 = vmul.f32 %v2379_v10, %v5832_v21  ;;  %v2791_v42 = vand.u32 2147483647, %v6406_v55  ;;  %vm6512_vm12 = vmor %vm2747_vm8, %vm2748_vm10  ;;  %v576_v21 = vpop.f32.mrf.mxu1 }
 0x2ea   : > { %v2807_v63 = vmul.f32 %v2806_v54, %v6379_v45  ;;  %v2846_v14 = vadd.f32 0.05243302, %v2845_v27  ;;  %v6508_v16 = vmul.f32 0.70710677, %v6495_v26  ;;  %vm2788_vm13 = vweird.f32 %v6453_v13 }
 0x2eb   : > { %v6517_v31 = vor.u32 1.1754944e-38, %v2793_v12  ;;  %v6519_v49 = vadd.f32 1.0, %v2380_v52  ;;  %v2416_v17 = vmul.f32 %v2415_v61, %v5874_v3  ;;  %v2750_v58 = vsel %vm6512_vm12, %v6424_v35, %v2746_v38  ;;  %v6548_v61 = vld [vmem:[%s7428_s4] ss:$0 sm:$0xff]  ;;  %vm6555_vm14 = vmor %vm2787_vm11, %vm2788_vm13 }
 0x2ec   : > { %v4078_v60 = vpop.eup %4077  ;;  %4079 = vrcp.f32 %v6499_v5  ;;  %v2879_v28 = vmul.f32 %v6508_v16, %v6508_v16  ;;  %v2453_v40 = vadd.f32 0.001143296, %v2452_v2  ;;  %v6529_v46 = vadd.f32 %v6453_v13, %v2785_v37 }
 0x2ed   : > { %v2858_v33 = vmul.f32 %v2857_v43, %v6400_v22  ;;  %v2343_v6 = vmul.f32 %v4078_v60, %v6479_v48  ;;  %4081 = vrcp.f32 %v6519_v49  ;;  %v2808_v54 = vadd.f32 0.18741608, %v2807_v63 }
 0x2ee   : > { %v6535_v27 = vmul.f32 0.5, %v6365_v34  ;;  %v2847_v35 = vmul.f32 %v2846_v14, %v6400_v22  ;;  %v6539_v18 = vadd.f32 %v576_v21, %v4511_v62  ;;  %v6543_v12 = vsel %vm6484_vm9, %v2754_v32, %v2750_v58 }
 0x2ef   : > { %v2344_v10 = vsub.f32 1.0, %v2343_v6  ;;  %v3473_v38 = vadd.f32 %v6548_v61, %v3472_v1  ;;  %v2417_v2 = vadd.f32 0.112945676, %v2416_v17  ;;  %v2351_v32 = vand.u32 2147483647, %v6479_v48 }
 0x2f0   : > { %7560 = vst [vmem:[#allocation22_spill] sm:$0xff] %v6535_v27  ;;  %v2353_v24 = vand.u32 2147483648, %v6479_v48  ;;  %v6561_v37 = vmin.f32 %v2879_v28, 16.0  ;;  %v2454_v43 = vmul.f32 %v2453_v40, %v7557_v7  ;;  %v2790_v52 = vsel %vm6555_vm14, %v6453_v13, %v6529_v46  ;;  %v3585_v28 = vpop.f32.mrf.mxu3 }
 0x2f1   : > { %v2859_v63 = vadd.f32 0.4994258, %v2858_v33  ;;  %v2345_v14 = vmul.f32 %v4078_v60, %v2344_v10  ;;  %vm2348_vm15 = vweird.f32 %v4078_v60  ;;  %v2809_v4 = vmul.f32 %v2808_v54, %v6379_v45 }
 0x2f2   : > { %v6568_v55 = vpop.eup %4079  ;;  %v2848_v21 = vadd.f32 0.18741608, %v2847_v35  ;;  %v2892_v17 = vmul.f32 3.8918573e-05, %v6561_v37  ;;  %v6573_v58 = vmul.f32 0.70710677, %v6539_v18  ;;  %vm2347_vm0 = vweird.f32 %v6479_v48 }
 0x2f3   : > { %v4082_v1 = vpop.eup %4081  ;;  %v2346_v40 = vadd.f32 %v4078_v60, %v2345_v14  ;;  %v3586_v13 = vadd.f32 %v3585_v28, %v3473_v38  ;;  %v2418_v46 = vmul.f32 %v2417_v2, %v5874_v3  ;;  %vm6577_vm1 = vcmp.eq.f32.partialorder %v2791_v42, 8.507059e+37  ;;  %vm2349_vm2 = vmor %vm2347_vm0, %vm2348_vm15 }
 0x2f4   : > { %vm2352_vm3 = vcmp.eq.f32.partialorder %v2351_v32, 8.507059e+37  ;;  %v2354_v45 = vor.u32 1.1754944e-38, %v2353_v24  ;;  %v2383_v6 = vmul.f32 %v4082_v1, %v6519_v49  ;;  %v2455_v54 = vadd.f32 0.014752088, %v2454_v43  ;;  %v7565_v32 = vld [vmem:[#allocation25_spill] sm:$0xff] }
 0x2f5   : > { %v2823_v35 = vmul.f32 %v6568_v55, %v6499_v5  ;;  %v2860_v10 = vmul.f32 %v2859_v63, %v6400_v22  ;;  %v2350_v34 = vsel %vm2349_vm2, %v4078_v60, %v2346_v40  ;;  %v2893_v48 = vadd.f32 0.001143296, %v2892_v17  ;;  %3673 = vst [vmem:[%s6046_s28 + $0x20] sm:$0xff] %v3586_v13 }
 0x2f6   : > { %v2355_v38 = vsel %vm2352_vm3, %v2354_v45, %v2350_v34  ;;  %v2384_v2 = vsub.f32 1.0, %v2383_v6  ;;  %v2391_v42 = vand.u32 2147483647, %v6519_v49  ;;  %v2919_v14 = vmul.f32 %v6573_v58, %v6573_v58 }
 0x2f7   : > { %v2356_v24 = vmul.f32 %v2355_v38, %v7565_v32  ;;  %v2393_v28 = vand.u32 2147483648, %v6519_v49  ;;  %v2894_v43 = vmul.f32 %v2893_v48, %v6561_v37  ;;  %v2419_v27 = vadd.f32 0.4994258, %v2418_v46 }
 0x2f8   : > { %v2385_v39 = vmul.f32 %v4082_v1, %v2384_v2  ;;  %vm2388_vm4 = vweird.f32 %v4082_v1  ;;  %v2881_v60 = vmul.f32 2.1237322e-06, %v6561_v37  ;;  %v6593_v63 = vmin.f32 %v2919_v14, 16.0 }
 0x2f9   : > { %v3874_v17 = vclamps-f32 %v2356_v24, 1.0  ;;  %v2895_v40 = vadd.f32 0.014752088, %v2894_v43  ;;  %v2420_v13 = vmul.f32 %v2419_v27, %v5874_v3  ;;  %v2456_v45 = vmul.f32 %v2455_v54, %v7557_v7 }
 0x2fa   : > { %v6597_v6 = vadd.f32 1.0, %v2860_v10  ;;  %v2386_v34 = vadd.f32 %v4082_v1, %v2385_v39  ;;  %vm2387_vm5 = vweird.f32 %v6519_v49  ;;  %v2932_v48 = vmul.f32 3.8918573e-05, %v6593_v63  ;;  %v7566_v39 = vld [vmem:[#allocation27_spill] sm:$0xff] }
 0x2fb   : > { %v3319_v46 = vadd.f32 1.0, %v3874_v17  ;;  %vm2389_vm6 = vmor %vm2387_vm5, %vm2388_vm4  ;;  %v2394_v38 = vor.u32 1.1754944e-38, %v2393_v28  ;;  %v2896_v2 = vmul.f32 %v2895_v40, %v6561_v37  ;;  %v6602_v14 = vadd.f32 1.0, %v2420_v13  ;;  %v7567_v28 = vld [vmem:[#allocation16_spill] sm:$0xff] }
 0x2fc   : > { %v2390_v32 = vsel %vm2389_vm6, %v4082_v1, %v2386_v34  ;;  %vm2392_vm7 = vcmp.eq.f32.partialorder %v2391_v42, 8.507059e+37  ;;  %v2882_v24 = vadd.f32 0.00028619796, %v2881_v60  ;;  %v2933_v3 = vadd.f32 0.001143296, %v2932_v48 }
 0x2fd   : > { %v2795_v27 = vsel %vm6577_vm1, %v6517_v31, %v2790_v52  ;;  %v3383_v54 = vmul.f32 %v3319_v46, %v7566_v39  ;;  %v2395_v49 = vsel %vm2392_vm7, %v2394_v38, %v2390_v32  ;;  %v2457_v10 = vadd.f32 0.112945676, %v2456_v45  ;;  %v466_v32 = vpop.f32.mrf.mxu0 }
 0x2fe   : > { %v2849_v43 = vmul.f32 %v2848_v21, %v6400_v22  ;;  %4083 = vrcp.f32 %v6597_v6  ;;  %v2396_v17 = vmul.f32 %v2395_v49, %v7567_v28  ;;  %v2897_v40 = vadd.f32 0.112945676, %v2896_v2 }
 0x2ff   : > { %v2810_v13 = vadd.f32 1.1283791, %v2809_v4  ;;  %v2824_v1 = vsub.f32 1.0, %v2823_v35  ;;  %3519 = vmatmul.f32.gmra.mxu2 %v3383_v54  ;;  %v2934_v42 = vmul.f32 %v2933_v3, %v6593_v63  ;;  %4085 = vrcp.f32 %v6602_v14 }
 0x300   : > { %v6615_v31 = vmul.f32 %v6543_v12, %v6471_v20  ;;  %v2833_v52 = vand.u32 2147483648, %v6499_v5  ;;  %v3875_v33 = vclamps-f32 %v2396_v17, 1.0  ;;  %v2883_v22 = vmul.f32 %v2882_v24, %v6561_v37 }
 0x301   : > { %v2831_v21 = vand.u32 2147483647, %v6499_v5  ;;  %v2921_v60 = vmul.f32 2.1237322e-06, %v6593_v63  ;;  %v2935_v4 = vadd.f32 0.014752088, %v2934_v42  ;;  %v2458_v35 = vmul.f32 %v2457_v10, %v7557_v7 }
 0x302   : > { %v6623_v45 = vmul.f32 %v2795_v27, %v6489_v11  ;;  %v2850_v34 = vadd.f32 1.1283791, %v2849_v43  ;;  %v3320_v48 = vadd.f32 1.0, %v3875_v33  ;;  %v2898_v20 = vmul.f32 %v2897_v40, %v6561_v37  ;;  %v7568_v11 = vld [vmem:[#allocation28_spill] sm:$0xff] }
 0x303   : > { %v6627_v12 = vmul.f32 %v2810_v13, %v6338_v29  ;;  %v2825_v46 = vmul.f32 %v6568_v55, %v2824_v1  ;;  %v2936_v38 = vmul.f32 %v2935_v4, %v6593_v63  ;;  %v2459_v2 = vadd.f32 0.4994258, %v2458_v35 }
 0x304   : > { %v6631_v24 = vpop.eup %4083  ;;  %vm2827_vm8 = vweird.f32 %v6499_v5  ;;  %v2834_v3 = vor.u32 1.1754944e-38, %v2833_v52  ;;  %v3384_v27 = vmul.f32 %v3320_v48, %v7568_v11  ;;  %v2884_v39 = vadd.f32 0.0036580483, %v2883_v22 }
 0x305   : > { %v4086_v54 = vpop.eup %4085  ;;  %vm6635_vm9 = vcmp.eq.f32.partialorder %v2831_v21, 8.507059e+37  ;;  %v2922_v29 = vadd.f32 0.00028619796, %v2921_v60  ;;  %v2937_v10 = vadd.f32 0.112945676, %v2936_v38  ;;  %v2460_v43 = vmul.f32 %v2459_v2, %v7557_v7 }
 0x306   : > { %v6641_v28 = vadd.f32 %v466_v32, %v4505_v53  ;;  %v6644_v17 = vmul.f32 %v2850_v34, %v6383_v8  ;;  %3632 = vmatmul.f32.gmra.mxu3 %v3384_v27  ;;  %v6647_v40 = vmul.f32 0.5, %v6495_v26  ;;  %v2899_v13 = vadd.f32 0.4994258, %v2898_v20 }
 0x307   : > { %v2423_v1 = vmul.f32 %v4086_v54, %v6602_v14  ;;  %v2826_v42 = vadd.f32 %v6568_v55, %v2825_v46  ;;  %vm2828_vm10 = vweird.f32 %v6568_v55  ;;  %v2871_v52 = vand.u32 2147483647, %v6597_v6 }
 0x308   : > { %v2873_v7 = vand.u32 2147483648, %v6597_v6  ;;  %v2863_v33 = vmul.f32 %v6631_v24, %v6597_v6  ;;  %v2938_v8 = vmul.f32 %v2937_v10, %v6593_v63  ;;  %v6657_v21 = vadd.f32 1.0, %v2460_v43  ;;  %vm6669_vm11 = vmor %vm2827_vm8, %vm2828_vm10 }
 0x309   : > { %v2424_v22 = vsub.f32 1.0, %v2423_v1  ;;  %v2885_v26 = vmul.f32 %v2884_v39, %v6561_v37  ;;  %v6661_v60 = vmul.f32 0.5, %v6539_v18  ;;  %v2923_v4 = vmul.f32 %v2922_v29, %v6593_v63  ;;  %v579_v39 = vpop.f32.mrf.mxu1 }
 0x30a   : > { %v6665_v35 = vmul.f32 0.70710677, %v6641_v28  ;;  %v2900_v48 = vmul.f32 %v2899_v13, %v6561_v37  ;;  %v2939_v20 = vadd.f32 0.4994258, %v2938_v8  ;;  %4087 = vrcp.f32 %v6657_v21 }
 0x30b   : > { %v2425_v46 = vmul.f32 %v4086_v54, %v2424_v22  ;;  %v2830_v18 = vsel %vm6669_vm11, %v6568_v55, %v2826_v42  ;;  %vm2428_vm12 = vweird.f32 %v4086_v54  ;;  %v2433_v38 = vand.u32 2147483648, %v6602_v14  ;;  %v3475_v55 = vpop.f32.mrf.mxu2 }
 0x30c   : > { %v2959_v5 = vmul.f32 %v6665_v35, %v6665_v35  ;;  %v2864_v2 = vsub.f32 1.0, %v2863_v33  ;;  %v6681_v32 = vor.u32 1.1754944e-38, %v2873_v7  ;;  %v2431_v27 = vand.u32 2147483647, %v6602_v14 }
 0x30d   : > { %v2426_v11 = vadd.f32 %v4086_v54, %v2425_v46  ;;  %v2886_v29 = vadd.f32 0.05243302, %v2885_v26  ;;  %v2924_v10 = vadd.f32 0.0036580483, %v2923_v4  ;;  %vm2427_vm13 = vweird.f32 %v6602_v14 }
 0x30e   : > { %v6685_v43 = vmin.f32 %v2959_v5, 16.0  ;;  %v6689_v13 = vsel %vm6635_vm9, %v2834_v3, %v2830_v18  ;;  %vm2868_vm14 = vweird.f32 %v6631_v24  ;;  %v6692_v1 = vadd.f32 1.0, %v2900_v48  ;;  %vm2429_vm15 = vmor %vm2427_vm13, %vm2428_vm12 }
 0x30f   : > { %v2940_v42 = vmul.f32 %v2939_v20, %v6593_v63  ;;  %v2430_v7 = vsel %vm2429_vm15, %v4086_v54, %v2426_v11  ;;  %v2434_v33 = vor.u32 1.1754944e-38, %v2433_v38  ;;  %v6698_v14 = vadd.f32 %v579_v39, %v4511_v62 }
 0x310   : > { %v2972_v8 = vmul.f32 3.8918573e-05, %v6685_v43  ;;  %v4088_v22 = vpop.eup %4087  ;;  %v2865_v49 = vmul.f32 %v6631_v24, %v2864_v2  ;;  %vm2867_vm0 = vweird.f32 %v6597_v6  ;;  %vm2432_vm1 = vcmp.eq.f32.partialorder %v2431_v27, 8.507059e+37  ;;  %v3588_v27 = vpop.f32.mrf.mxu3 }
 0x311   : > { %v2961_v3 = vmul.f32 2.1237322e-06, %v6685_v43  ;;  %v3476_v26 = vadd.f32 %v6548_v61, %v3475_v55  ;;  %v2887_v4 = vmul.f32 %v2886_v29, %v6561_v37  ;;  %v2925_v54 = vmul.f32 %v2924_v10, %v6593_v63  ;;  %vm6739_vm7 = vmor %vm2867_vm0, %vm2868_vm14 }
 0x312   : > { %v2435_v34 = vsel %vm2432_vm1, %v2434_v33, %v2430_v7  ;;  %v2463_v48 = vmul.f32 %v4088_v22, %v6657_v21  ;;  %4089 = vrcp.f32 %v6692_v1  ;;  %v6708_v20 = vadd.f32 1.0, %v2940_v42 }
 0x313   : > { %v2436_v46 = vmul.f32 %v2435_v34, %v6241_v44  ;;  %v2471_v18 = vand.u32 2147483647, %v6657_v21  ;;  %v2473_v5 = vand.u32 2147483648, %v6657_v21  ;;  %v2973_v2 = vadd.f32 0.001143296, %v2972_v8 }
 0x314   : > { %v2464_v38 = vsub.f32 1.0, %v2463_v48  ;;  %v6714_v11 = vmul.f32 0.70710677, %v6698_v14  ;;  %vm2468_vm2 = vweird.f32 %v4088_v22  ;;  %v2962_v29 = vadd.f32 0.00028619796, %v2961_v3 }
 0x315   : > { %v3876_v39 = vclamps-f32 %v2436_v46, 1.0  ;;  %v3589_v10 = vadd.f32 %v3588_v27, %v3476_v26  ;;  %v2974_v42 = vmul.f32 %v2973_v2, %v6685_v43  ;;  %v2492_v7 = vmul.f32 3.8918573e-05, %v5991_v15 }
 0x316   : > { %v2465_v55 = vmul.f32 %v4088_v22, %v2464_v38  ;;  %v2999_v44 = vmul.f32 %v6714_v11, %v6714_v11  ;;  %v2866_v33 = vadd.f32 %v6631_v24, %v2865_v49  ;;  %4091 = vrcp.f32 %v6708_v20  ;;  %v7575_v49 = vld [vmem:[#allocation29_spill] sm:$0xff] }
 0x317   : > { %v3321_v8 = vadd.f32 1.0, %v3876_v39  ;;  %3674 = vst [vmem:[%s6046_s28 + $0x28] sm:$0xff] %v3589_v10  ;;  %v2532_v34 = vmul.f32 3.8918573e-05, %v6068_v30  ;;  %vm6726_vm3 = vcmp.eq.f32.partialorder %v2871_v52, 8.507059e+37  ;;  %vm2467_vm4 = vweird.f32 %v6657_v21 }
 0x318   : > { %v2888_v26 = vadd.f32 0.18741608, %v2887_v4  ;;  %v2926_v48 = vadd.f32 0.05243302, %v2925_v54  ;;  %v2466_v46 = vadd.f32 %v4088_v22, %v2465_v55  ;;  %v6731_v38 = vpop.eup %4089  ;;  %vm2469_vm5 = vmor %vm2467_vm4, %vm2468_vm2  ;;  %vm2472_vm6 = vcmp.eq.f32.partialorder %v2471_v18, 8.507059e+37 }
 0x319   : > { %v3385_v2 = vmul.f32 %v3321_v8, %v7575_v49  ;;  %v2474_v27 = vor.u32 1.1754944e-38, %v2473_v5  ;;  %v2975_v39 = vadd.f32 0.014752088, %v2974_v42  ;;  %v2963_v21 = vmul.f32 %v2962_v29, %v6685_v43 }
 0x31a   : > { %v2470_v4 = vsel %vm2469_vm5, %v4088_v22, %v2466_v46  ;;  %v6744_v54 = vmin.f32 %v2999_v44, 16.0  ;;  %v2493_v10 = vadd.f32 0.001143296, %v2492_v7  ;;  %v2870_v18 = vsel %vm6739_vm7, %v6631_v24, %v2866_v33 }
 0x31b   : > { %3522 = vmatmul.f32.gmra.mxu2 %v3385_v2  ;;  %v2475_v5 = vsel %vm2472_vm6, %v2474_v27, %v2470_v4  ;;  %v2976_v55 = vmul.f32 %v2975_v39, %v6685_v43  ;;  %v2533_v42 = vadd.f32 0.001143296, %v2532_v34  ;;  %v2889_v6 = vmul.f32 %v2888_v26, %v6561_v37 }
 0x31c   : > { %v2476_v8 = vmul.f32 %v2475_v5, %v6244_v0  ;;  %v3001_v22 = vmul.f32 2.1237322e-06, %v6744_v54  ;;  %v3012_v29 = vmul.f32 3.8918573e-05, %v6744_v54  ;;  %v6754_v44 = vpop.eup %4091  ;;  %v2903_v7 = vmul.f32 %v6731_v38, %v6692_v1 }
 0x31d   : > { %v2977_v46 = vadd.f32 0.112945676, %v2976_v55  ;;  %v2494_v24 = vmul.f32 %v2493_v10, %v5991_v15  ;;  %v2534_v33 = vmul.f32 %v2533_v42, %v6068_v30  ;;  %v2927_v34 = vmul.f32 %v2926_v48, %v6593_v63 }
 0x31e   : > { %v3877_v49 = vclamps-f32 %v2476_v8, 1.0  ;;  %v2964_v37 = vadd.f32 0.0036580483, %v2963_v21  ;;  %v3013_v26 = vadd.f32 0.001143296, %v3012_v29  ;;  %v6764_v52 = vmul.f32 %v6689_v13, %v6627_v12  ;;  %v7578_v8 = vld [vmem:[#allocation23_spill] sm:$0xff] }
 0x31f   : > { %v2978_v0 = vmul.f32 %v2977_v46, %v6685_v43  ;;  %v3002_v2 = vadd.f32 0.00028619796, %v3001_v22  ;;  %v2495_v27 = vadd.f32 0.014752088, %v2494_v24  ;;  %v2535_v39 = vadd.f32 0.014752088, %v2534_v33 }
 0x320   : > { %v2943_v4 = vmul.f32 %v6754_v44, %v6708_v20  ;;  %v3322_v10 = vadd.f32 1.0, %v3877_v49  ;;  %v3014_v5 = vmul.f32 %v3013_v26, %v6744_v54  ;;  %v2875_v48 = vsel %vm6726_vm3, %v6681_v32, %v2870_v18 }
 0x321   : > { %v2890_v21 = vadd.f32 1.1283791, %v2889_v6  ;;  %v2904_v55 = vsub.f32 1.0, %v2903_v7  ;;  %v2496_v42 = vmul.f32 %v2495_v27, %v5991_v15  ;;  %v2965_v29 = vmul.f32 %v2964_v37, %v6685_v43 }
 0x322   : > { %v3386_v22 = vmul.f32 %v3322_v10, %v7578_v8  ;;  %v2979_v12 = vadd.f32 0.4994258, %v2978_v0  ;;  %v3015_v13 = vadd.f32 0.014752088, %v3014_v5  ;;  %v2928_v46 = vadd.f32 0.18741608, %v2927_v34 }
 0x323   : > { %v3003_v24 = vmul.f32 %v3002_v2, %v6744_v54  ;;  %v2497_v33 = vadd.f32 0.112945676, %v2496_v42  ;;  %v2536_v49 = vmul.f32 %v2535_v39, %v6068_v30  ;;  %v6778_v26 = vmul.f32 %v2875_v48, %v6644_v17 }
 0x324   : > { %v2944_v32 = vsub.f32 1.0, %v2943_v4  ;;  %3635 = vmatmul.f32.gmra.mxu3 %v3386_v22  ;;  %v3016_v3 = vmul.f32 %v3015_v13, %v6744_v54  ;;  %v2572_v18 = vmul.f32 3.8918573e-05, %v6078_v41  ;;  %v6783_v6 = vmul.f32 %v2890_v21, %v6508_v16 }
 0x325   : > { %v2905_v7 = vmul.f32 %v6731_v38, %v2904_v55  ;;  %v2498_v34 = vmul.f32 %v2497_v33, %v5991_v15  ;;  %v2537_v37 = vadd.f32 0.112945676, %v2536_v49  ;;  %v2966_v0 = vadd.f32 0.05243302, %v2965_v29 }
 0x326   : > { %v2980_v2 = vmul.f32 %v2979_v12, %v6685_v43  ;;  %v3017_v27 = vadd.f32 0.112945676, %v3016_v3  ;;  %v2573_v17 = vadd.f32 0.001143296, %v2572_v18  ;;  %vm2907_vm8 = vweird.f32 %v6692_v1 }
 0x327   : > { %v2913_v39 = vand.u32 2147483648, %v6692_v1  ;;  %v2929_v4 = vmul.f32 %v2928_v46, %v6593_v63  ;;  %v3004_v10 = vadd.f32 0.0036580483, %v3003_v24  ;;  %v2945_v16 = vmul.f32 %v6754_v44, %v2944_v32 }
 0x328   : > { %v3018_v5 = vmul.f32 %v3017_v27, %v6744_v54  ;;  %v2499_v48 = vadd.f32 0.4994258, %v2498_v34  ;;  %v2538_v21 = vmul.f32 %v2537_v37, %v6068_v30  ;;  %v2906_v55 = vadd.f32 %v6731_v38, %v2905_v7 }
 0x329   : > { %vm2908_vm9 = vweird.f32 %v6731_v38  ;;  %v2911_v42 = vand.u32 2147483647, %v6692_v1  ;;  %v2574_v8 = vmul.f32 %v2573_v17, %v6078_v41  ;;  %v2967_v22 = vmul.f32 %v2966_v0, %v6685_v43 }
 0x32a   : > { %v6799_v29 = vadd.f32 1.0, %v2980_v2  ;;  %v2500_v63 = vmul.f32 %v2499_v48, %v5991_v15  ;;  %v2539_v12 = vadd.f32 0.4994258, %v2538_v21  ;;  %v2914_v13 = vor.u32 1.1754944e-38, %v2913_v39  ;;  %vm6812_vm11 = vmor %vm2907_vm8, %vm2908_vm9  ;;  %v582_v48 = vpop.f32.mrf.mxu1 }
 0x32b   : > { %v3005_v46 = vmul.f32 %v3004_v10, %v6744_v54  ;;  %v3019_v24 = vadd.f32 0.4994258, %v3018_v5  ;;  %v2612_v33 = vmul.f32 3.8918573e-05, %v6100_v50  ;;  %v2930_v49 = vadd.f32 1.1283791, %v2929_v4 }
 0x32c   : > { %v2946_v32 = vadd.f32 %v6754_v44, %v2945_v16  ;;  %vm2948_vm10 = vweird.f32 %v6754_v44  ;;  %v6806_v3 = vadd.f32 1.0, %v2500_v63  ;;  %vm2947_vm12 = vweird.f32 %v6708_v20 }
 0x32d   : > { %v2951_v18 = vand.u32 2147483647, %v6708_v20  ;;  %v2953_v7 = vand.u32 2147483648, %v6708_v20  ;;  %v2575_v34 = vadd.f32 0.014752088, %v2574_v8  ;;  %v2910_v37 = vsel %vm6812_vm11, %v6731_v38, %v2906_v55  ;;  %vm6824_vm13 = vmor %vm2947_vm12, %vm2948_vm10  ;;  %v469_v20 = vpop.f32.mrf.mxu0 }
 0x32e   : > { %v2968_v0 = vadd.f32 0.18741608, %v2967_v22  ;;  %4093 = vrcp.f32 %v6799_v29  ;;  %v2540_v1 = vmul.f32 %v2539_v12, %v6068_v30  ;;  %v3006_v27 = vadd.f32 0.05243302, %v3005_v46 }
 0x32f   : > { %v3020_v17 = vmul.f32 %v3019_v24, %v6744_v54  ;;  %4095 = vrcp.f32 %v6806_v3  ;;  %v2613_v39 = vadd.f32 0.001143296, %v2612_v33  ;;  %vm2912_vm14 = vcmp.eq.f32.partialorder %v2911_v42, 8.507059e+37 }
 0x330   : > { %v2931_v4 = vmul.f32 %v2930_v49, %v6573_v58  ;;  %v2950_v38 = vsel %vm6824_vm13, %v6754_v44, %v2946_v32  ;;  %v6835_v30 = vmul.f32 0.5, %v6641_v28  ;;  %v2915_v10 = vsel %vm2912_vm14, %v2914_v13, %v2910_v37  ;;  %v3478_v44 = vpop.f32.mrf.mxu2 }
 0x331   : > { %v2954_v16 = vor.u32 1.1754944e-38, %v2953_v7  ;;  %v6838_v5 = vmul.f32 0.5, %v6698_v14  ;;  %v2576_v21 = vmul.f32 %v2575_v34, %v6078_v41  ;;  %vm2952_vm15 = vcmp.eq.f32.partialorder %v2951_v18, 8.507059e+37 }
 0x332   : > { %v2969_v55 = vmul.f32 %v2968_v0, %v6685_v43  ;;  %v6842_v42 = vadd.f32 1.0, %v2540_v1  ;;  %v6845_v58 = vadd.f32 %v469_v20, %v4505_v53  ;;  %v3007_v28 = vmul.f32 %v3006_v27, %v6744_v54 }
 0x333   : > { %v2955_v8 = vsel %vm2952_vm15, %v2954_v16, %v2950_v38  ;;  %v6848_v22 = vadd.f32 1.0, %v3020_v17  ;;  %v2614_v14 = vmul.f32 %v2613_v39, %v6100_v50  ;;  %v6854_v12 = vmul.f32 %v2915_v10, %v6783_v6  ;;  %v3591_v17 = vpop.f32.mrf.mxu3 }
 0x334   : > { %v6851_v63 = vpop.eup %4093  ;;  %v2511_v43 = vand.u32 2147483647, %v6806_v3  ;;  %4097 = vrcp.f32 %v6842_v42  ;;  %v6859_v13 = vadd.f32 %v582_v48, %v4511_v62  ;;  %v2513_v24 = vand.u32 2147483648, %v6806_v3 }
 0x335   : > { %v4096_v46 = vpop.eup %4095  ;;  %v6863_v33 = vmul.f32 0.70710677, %v6845_v58  ;;  %v3479_v49 = vadd.f32 %v6548_v61, %v3478_v44  ;;  %v2577_v32 = vadd.f32 0.112945676, %v2576_v21  ;;  %v6866_v15 = vmul.f32 %v2955_v8, %v2931_v4 }
 0x336   : > { %7583 = vst [vmem:[#allocation26_spill] sm:$0xff] %v6859_v13  ;;  %v6868_v6 = vadd.f32 1.1283791, %v2969_v55  ;;  %v2503_v7 = vmul.f32 %v4096_v46, %v6806_v3  ;;  %v6874_v34 = vmul.f32 %v6851_v63, %v6799_v29  ;;  %v6876_v37 = vadd.f32 0.18741608, %v3007_v28 }
 0x337   : > { %4099 = vrcp.f32 %v6848_v22  ;;  %v2615_v0 = vadd.f32 0.014752088, %v2614_v14  ;;  %vm2507_vm0 = vweird.f32 %v6806_v3  ;;  %v3039_v2 = vmul.f32 %v6863_v33, %v6863_v33 }
 0x338   : > { %v2504_v1 = vsub.f32 1.0, %v2503_v7  ;;  %v6883_v27 = vmul.f32 0.70710677, %v6859_v13  ;;  %vm6885_vm1 = vcmp.eq.f32.partialorder %v2511_v43, 8.507059e+37  ;;  %v2514_v39 = vor.u32 1.1754944e-38, %v2513_v24 }
 0x339   : > { %v3592_v4 = vadd.f32 %v3591_v17, %v3479_v49  ;;  %v2578_v38 = vmul.f32 %v2577_v32, %v6078_v41  ;;  %vm2508_vm2 = vweird.f32 %v4096_v46  ;;  %v6890_v48 = vmin.f32 %v3039_v2, 16.0 }
 0x33a   : > { %v4098_v10 = vpop.eup %4097  ;;  %v2505_v16 = vmul.f32 %v4096_v46, %v2504_v1  ;;  %v3079_v21 = vmul.f32 %v6883_v27, %v6883_v27  ;;  %vm2547_vm3 = vweird.f32 %v6842_v42  ;;  %v2616_v8 = vmul.f32 %v2615_v0, %v6100_v50  ;;  %vm2509_vm4 = vmor %vm2507_vm0, %vm2508_vm2 }
 0x33b   : > { %v2543_v55 = vmul.f32 %v4098_v10, %v6842_v42  ;;  %3675 = vst [vmem:[%s6046_s28 + $0x30] sm:$0xff] %v3592_v4  ;;  %v2579_v44 = vadd.f32 0.4994258, %v2578_v38  ;;  %v3041_v14 = vmul.f32 2.1237322e-06, %v6890_v48  ;;  %v2553_v1 = vand.u32 2147483648, %v6842_v42 }
 0x33c   : > { %v2506_v28 = vadd.f32 %v4096_v46, %v2505_v16  ;;  %v3052_v43 = vmul.f32 3.8918573e-05, %v6890_v48  ;;  %v6900_v24 = vmin.f32 %v3079_v21, 16.0  ;;  %v2551_v7 = vand.u32 2147483647, %v6842_v42 }
 0x33d   : > { %v6902_v49 = vpop.eup %4099  ;;  %v2544_v32 = vsub.f32 1.0, %v2543_v55  ;;  %v2580_v2 = vmul.f32 %v2579_v44, %v6078_v41  ;;  %v3042_v17 = vadd.f32 0.00028619796, %v3041_v14  ;;  %vm2548_vm5 = vweird.f32 %v4098_v10 }
 0x33e   : > { %v2510_v0 = vsel %vm2509_vm4, %v4096_v46, %v2506_v28  ;;  %v3053_v4 = vadd.f32 0.001143296, %v3052_v43  ;;  %v3081_v38 = vmul.f32 2.1237322e-06, %v6900_v24  ;;  %v3092_v3 = vmul.f32 3.8918573e-05, %v6900_v24  ;;  %vm2549_vm6 = vmor %vm2547_vm3, %vm2548_vm5 }
 0x33f   : > { %v2515_v16 = vsel %vm6885_vm1, %v2514_v39, %v2510_v0  ;;  %v2545_v21 = vmul.f32 %v4098_v10, %v2544_v32  ;;  %v3023_v55 = vmul.f32 %v6902_v49, %v6848_v22  ;;  %v2617_v41 = vadd.f32 0.112945676, %v2616_v8 }
 0x340   : > { %v2516_v18 = vmul.f32 %v2515_v16, %v6292_v59  ;;  %v3054_v13 = vmul.f32 %v3053_v4, %v6890_v48  ;;  %v2554_v44 = vor.u32 1.1754944e-38, %v2553_v1  ;;  %v3082_v28 = vadd.f32 0.00028619796, %v3081_v38 }
 0x341   : > { %v2546_v46 = vadd.f32 %v4098_v10, %v2545_v21  ;;  %v3093_v14 = vadd.f32 0.001143296, %v3092_v3  ;;  %v3043_v20 = vmul.f32 %v3042_v17, %v6890_v48  ;;  %v6920_v32 = vadd.f32 1.0, %v2580_v2 }
 0x342   : > { %v3878_v43 = vclamps-f32 %v2516_v18, 1.0  ;;  %v3055_v39 = vadd.f32 0.014752088, %v3054_v13  ;;  %vm2552_vm7 = vcmp.eq.f32.partialorder %v2551_v7, 8.507059e+37  ;;  %v3083_v59 = vmul.f32 %v3082_v28, %v6900_v24 }
 0x343   : > { %v2550_v0 = vsel %vm2549_vm6, %v4098_v10, %v2546_v46  ;;  %v3094_v4 = vmul.f32 %v3093_v14, %v6900_v24  ;;  %v2618_v18 = vmul.f32 %v2617_v41, %v6100_v50  ;;  %v2984_v42 = vsub.f32 1.0, %v6874_v34  ;;  %v7586_v10 = vld [vmem:[#allocation18_spill] sm:$0xff]  ;;  %v472_v14 = vpop.f32.mrf.mxu0 }
 0x344   : > { %v3323_v8 = vadd.f32 1.0, %v3878_v43  ;;  %v2555_v16 = vsel %vm2552_vm7, %v2554_v44, %v2550_v0  ;;  %v3056_v1 = vmul.f32 %v3055_v39, %v6890_v48  ;;  %4101 = vrcp.f32 %v6920_v32 }
 0x345   : > { %v2556_v38 = vmul.f32 %v2555_v16, %v6295_v36  ;;  %v3095_v17 = vadd.f32 0.014752088, %v3094_v4  ;;  %v3024_v13 = vsub.f32 1.0, %v3023_v55  ;;  %v3044_v2 = vadd.f32 0.0036580483, %v3043_v20 }
 0x346   : > { %v3387_v7 = vmul.f32 %v3323_v8, %v7586_v10  ;;  %v3057_v21 = vadd.f32 0.112945676, %v3056_v1  ;;  %v2991_v3 = vand.u32 2147483647, %v6799_v29  ;;  %v3084_v44 = vadd.f32 0.0036580483, %v3083_v59 }
 0x347   : > { %v3879_v46 = vclamps-f32 %v2556_v38, 1.0  ;;  %v3096_v28 = vmul.f32 %v3095_v17, %v6900_v24  ;;  %v6934_v41 = vmul.f32 %v6868_v6, %v6665_v35  ;;  %v3009_v36 = vmul.f32 %v6876_v37, %v6744_v54  ;;  %v7590_v8 = vld [vmem:[#allocation15_spill] sm:$0xff] }
 0x348   : > { %3525 = vmatmul.f32.gmra.mxu2 %v3387_v7  ;;  %v3058_v34 = vmul.f32 %v3057_v21, %v6890_v48  ;;  %v2619_v55 = vadd.f32 0.4994258, %v2618_v18  ;;  %v2985_v43 = vmul.f32 %v6851_v63, %v2984_v42  ;;  %vm2987_vm8 = vweird.f32 %v6799_v29 }
 0x349   : > { %v3324_v20 = vadd.f32 1.0, %v3879_v46  ;;  %v3097_v39 = vadd.f32 0.112945676, %v3096_v28  ;;  %v7587_v0 = vand.u32 2147483648, %v6799_v29  ;;  %v3025_v35 = vmul.f32 %v6902_v49, %v3024_v13 }
 0x34a   : > { %v3045_v6 = vmul.f32 %v3044_v2, %v6890_v48  ;;  %v2620_v54 = vmul.f32 %v2619_v55, %v6100_v50  ;;  %v6946_v37 = vpop.eup %4101  ;;  %vm6948_vm9 = vcmp.eq.f32.partialorder %v2991_v3, 8.507059e+37  ;;  %v3059_v1 = vadd.f32 0.4994258, %v3058_v34  ;;  %v3481_v34 = vpop.f32.mrf.mxu2 }
 0x34b   : > { %v2994_v59 = vor.u32 1.1754944e-38, %v7587_v0  ;;  %v3388_v16 = vmul.f32 %v3324_v20, %v7590_v8  ;;  %v3085_v18 = vmul.f32 %v3084_v44, %v6900_v24  ;;  %v6955_v42 = vadd.f32 %v472_v14, %v4505_v53  ;;  %v3594_v55 = vpop.f32.mrf.mxu3  ;;  %v585_v8 = vpop.f32.mrf.mxu1 }
 0x34c   : > { %vm2988_vm10 = vweird.f32 %v6851_v63  ;;  %v3010_v38 = vadd.f32 1.1283791, %v3009_v36  ;;  %v3031_v17 = vand.u32 2147483647, %v6848_v22  ;;  %v2583_v50 = vmul.f32 %v6946_v37, %v6920_v32 }
 0x34d   : > { %v2986_v13 = vadd.f32 %v6851_v63, %v2985_v43  ;;  %v3033_v10 = vand.u32 2147483648, %v6848_v22  ;;  %3638 = vmatmul.f32.gmra.mxu3 %v3388_v16  ;;  %v3098_v7 = vmul.f32 %v3097_v39, %v6900_v24  ;;  %v6964_v2 = vadd.f32 1.0, %v2620_v54  ;;  %vm6977_vm12 = vmor %vm2987_vm8, %vm2988_vm10 }
 0x34e   : > { %v3026_v21 = vadd.f32 %v6902_v49, %v3025_v35  ;;  %vm3028_vm11 = vweird.f32 %v6902_v49  ;;  %v2584_v3 = vsub.f32 1.0, %v2583_v50  ;;  %v6969_v46 = vmul.f32 0.70710677, %v6955_v42 }
 0x34f   : > { %v3046_v44 = vadd.f32 0.05243302, %v3045_v6  ;;  %v3060_v28 = vmul.f32 %v3059_v1, %v6890_v48  ;;  %v3086_v36 = vadd.f32 0.05243302, %v3085_v18  ;;  %4103 = vrcp.f32 %v6964_v2 }
 0x350   : > { %v6982_v43 = vmul.f32 %v3010_v38, %v6714_v11  ;;  %vm3027_vm13 = vweird.f32 %v6848_v22  ;;  %vm6985_vm14 = vcmp.eq.f32.partialorder %v3031_v17, 8.507059e+37  ;;  %v2593_v39 = vand.u32 2147483648, %v6920_v32 }
 0x351   : > { %v2990_v0 = vsel %vm6977_vm12, %v6851_v63, %v2986_v13  ;;  %v3034_v29 = vor.u32 1.1754944e-38, %v3033_v10  ;;  %v3099_v35 = vadd.f32 0.4994258, %v3098_v7  ;;  %v2585_v6 = vmul.f32 %v6946_v37, %v2584_v3  ;;  %vm6996_vm15 = vmor %vm3027_vm13, %vm3028_vm11 }
 0x352   : > { %v7001_v22 = vmul.f32 0.5, %v6845_v58  ;;  %vm2588_vm0 = vweird.f32 %v6946_v37  ;;  %v2591_v54 = vand.u32 2147483647, %v6920_v32  ;;  %v3119_v63 = vmul.f32 %v6969_v46, %v6969_v46 }
 0x353   : > { %v3030_v16 = vsel %vm6996_vm15, %v6902_v49, %v3026_v21  ;;  %v3047_v1 = vmul.f32 %v3046_v44, %v6890_v48  ;;  %v7011_v18 = vadd.f32 1.0, %v3060_v28  ;;  %v3087_v38 = vmul.f32 %v3086_v36, %v6900_v24  ;;  %v7030_v36 = vpop.f32.mrf.mxu2  ;;  %v7032_v14 = vpop.f32.mrf.mxu3 }
 0x354   : > { %v2995_v58 = vsel %vm6948_vm9, %v2994_v59, %v2990_v0  ;;  %v2586_v17 = vadd.f32 %v6946_v37, %v2585_v6  ;;  %vm2587_vm1 = vweird.f32 %v6920_v32  ;;  %v2594_v50 = vor.u32 1.1754944e-38, %v2593_v39 }
 0x355   : > { %v4104_v13 = vpop.eup %4103  ;;  %v3100_v10 = vmul.f32 %v3099_v35, %v6900_v24  ;;  %vm2589_vm2 = vmor %vm2587_vm1, %vm2588_vm0  ;;  %v7019_v7 = vmin.f32 %v3119_v63, 16.0  ;;  %v7022_v49 = vadd.f32 %v585_v8, %v4511_v62  ;;  %v3482_v21 = vadd.f32 %v6548_v61, %v3481_v34 }
 0x356   : > { %v3035_v4 = vsel %vm6985_vm14, %v3034_v29, %v3030_v16  ;;  %v2590_v59 = vsel %vm2589_vm2, %v6946_v37, %v2586_v17  ;;  %vm2592_vm3 = vcmp.eq.f32.partialorder %v2591_v54, 8.507059e+37  ;;  %v2623_v32 = vmul.f32 %v4104_v13, %v6964_v2 }
 0x357   : > { %v3048_v3 = vadd.f32 0.18741608, %v3047_v1  ;;  %4105 = vrcp.f32 %v7011_v18  ;;  %v3088_v44 = vadd.f32 0.18741608, %v3087_v38  ;;  %v2595_v28 = vsel %vm2592_vm3, %v2594_v50, %v2590_v59  ;;  %v7597_v59 = vld [vmem:[#allocation20_spill] sm:$0xff] }
 0x358   : > { %v2596_v39 = vmul.f32 %v2595_v28, %v6303_v19  ;;  %v2624_v61 = vsub.f32 1.0, %v2623_v32  ;;  %v3121_v34 = vmul.f32 2.1237322e-06, %v7019_v7  ;;  %v3132_v37 = vmul.f32 3.8918573e-05, %v7019_v7 }
 0x359   : > { %v7037_v20 = vadd.f32 1.0, %v3100_v10  ;;  %v2633_v0 = vand.u32 2147483648, %v6964_v2  ;;  %v7041_v29 = vmul.f32 0.70710677, %v7022_v49  ;;  %v3595_v35 = vadd.f32 %v3594_v55, %v3482_v21 }
 0x35a   : > { %v3880_v6 = vclamps-f32 %v2596_v39, 1.0  ;;  %v2625_v11 = vmul.f32 %v4104_v13, %v2624_v61  ;;  %vm2628_vm4 = vweird.f32 %v4104_v13  ;;  %v2631_v54 = vand.u32 2147483647, %v6964_v2 }
 0x35b   : > { %v3049_v19 = vmul.f32 %v3048_v3, %v6890_v48  ;;  %v3122_v63 = vadd.f32 0.00028619796, %v3121_v34  ;;  %v3133_v8 = vadd.f32 0.001143296, %v3132_v37  ;;  %v3159_v16 = vmul.f32 %v7041_v29, %v7041_v29  ;;  %3676 = vst [vmem:[%s6046_s28 + $0x38] sm:$0xff] %v3595_v35  ;;  %v7059_v61 = vpop.f32.mrf.mxu2  ;;  %v7061_v34 = vpop.f32.mrf.mxu3 }
 0x35c   : > { %v3325_v1 = vadd.f32 1.0, %v3880_v6  ;;  %v2626_v38 = vadd.f32 %v4104_v13, %v2625_v11  ;;  %vm2627_vm5 = vweird.f32 %v6964_v2  ;;  %v3882_v17 = vclamps-f32 %v6429_v9, 1.0 }
 0x35d   : > { %v7050_v55 = vpop.eup %4105  ;;  %4107 = vrcp.f32 %v7037_v20  ;;  %vm2629_vm6 = vmor %vm2627_vm5, %vm2628_vm4  ;;  %v2634_v50 = vor.u32 1.1754944e-38, %v2633_v0  ;;  %v3134_v48 = vmul.f32 %v3133_v8, %v7019_v7  ;;  %v7054_v10 = vmin.f32 %v3159_v16, 16.0 }
 0x35e   : > { %v3089_v21 = vmul.f32 %v3088_v44, %v6900_v24  ;;  %v3389_v32 = vmul.f32 %v3325_v1, %v7597_v59  ;;  %v2630_v3 = vsel %vm2629_vm6, %v4104_v13, %v2626_v38  ;;  %vm2632_vm7 = vcmp.eq.f32.partialorder %v2631_v54, 8.507059e+37  ;;  %v588_v1 = vpop.f32.mrf.mxu1 }
 0x35f   : > { %v3050_v28 = vadd.f32 1.1283791, %v3049_v19  ;;  %v2635_v2 = vsel %vm2632_vm7, %v2634_v50, %v2630_v3  ;;  %v3123_v9 = vmul.f32 %v3122_v63, %v7019_v7  ;;  %v3135_v39 = vadd.f32 0.014752088, %v3134_v48  ;;  %v475_v63 = vpop.f32.mrf.mxu0 }
 0x360   : > { %v7064_v37 = vmul.f32 %v2995_v58, %v6934_v41  ;;  %3528 = vmatmul.f32.gmra.mxu2 %v3389_v32  ;;  %v2636_v0 = vmul.f32 %v2635_v2, %v6306_v23  ;;  %v3161_v24 = vmul.f32 2.1237322e-06, %v7054_v10  ;;  %v3327_v44 = vadd.f32 1.0, %v3882_v17 }
 0x361   : > { %v7069_v13 = vmul.f32 %v3035_v4, %v6982_v43  ;;  %v3063_v35 = vmul.f32 %v7050_v55, %v7011_v18  ;;  %v3136_v6 = vmul.f32 %v3135_v39, %v7019_v7  ;;  %v3172_v11 = vmul.f32 3.8918573e-05, %v7054_v10 }
 0x362   : > { %v3073_v54 = vand.u32 2147483648, %v7011_v18  ;;  %v3090_v41 = vadd.f32 1.1283791, %v3089_v21  ;;  %v3881_v58 = vclamps-f32 %v2636_v0, 1.0  ;;  %v3162_v19 = vadd.f32 0.00028619796, %v3161_v24 }
 0x363   : > { %v7076_v23 = vpop.eup %4107  ;;  %v7079_v8 = vmul.f32 %v3050_v28, %v6863_v33  ;;  %v3124_v43 = vadd.f32 0.0036580483, %v3123_v9  ;;  %v3137_v4 = vadd.f32 0.112945676, %v3136_v6  ;;  %v3173_v16 = vadd.f32 0.001143296, %v3172_v11  ;;  %v7103_v24 = vpop.f32.mrf.mxu2 }
 0x364   : > { %v3326_v38 = vadd.f32 1.0, %v3881_v58  ;;  %v3163_v17 = vmul.f32 %v3162_v19, %v7054_v10  ;;  %v3391_v50 = vmul.f32 %v3327_v44, %v6298_v56  ;;  %v3883_v48 = vclamps-f32 %v6468_v57, 1.0  ;;  %v7099_v0 = vld [vmem:[%s7428_s4] ss:$0 sm:$0xff]  ;;  %v7105_v44 = vpop.f32.mrf.mxu3 }
 0x365   : > { %v3064_v21 = vsub.f32 1.0, %v3063_v35  ;;  %v3138_v59 = vmul.f32 %v3137_v4, %v7019_v7  ;;  %v3174_v32 = vmul.f32 %v3173_v16, %v7054_v10  ;;  %v7087_v3 = vadd.f32 %v475_v63, %v4505_v53 }
 0x366   : > { %v3071_v33 = vand.u32 2147483647, %v7011_v18  ;;  %v3103_v28 = vmul.f32 %v7076_v23, %v7037_v20  ;;  %v3390_v2 = vmul.f32 %v3326_v38, %v6283_v51  ;;  %v7094_v9 = vadd.f32 %v588_v1, %v4511_v62 }
 0x367   : > { %v3139_v56 = vadd.f32 0.4994258, %v3138_v59  ;;  %v3164_v57 = vadd.f32 0.0036580483, %v3163_v17  ;;  %v3175_v39 = vadd.f32 0.014752088, %v3174_v32  ;;  %v3485_v53 = vadd.f32 %v7099_v0, %v7030_v36 }
 0x368   : > { %vm3067_vm8 = vweird.f32 %v7011_v18  ;;  %v7108_v51 = vor.u32 1.1754944e-38, %v3073_v54  ;;  %3641 = vmatmul.f32.gmra.mxu3 %v3390_v2  ;;  %v3125_v62 = vmul.f32 %v3124_v43, %v7019_v7  ;;  %3531 = vmatmul.f32.gmra.mxu2 %v3391_v50  ;;  %v3328_v35 = vadd.f32 1.0, %v3883_v48 }
 0x369   : > { %v7112_v6 = vmul.f32 0.70710677, %v7087_v3  ;;  %v3065_v11 = vmul.f32 %v7050_v55, %v3064_v21  ;;  %v7116_v36 = vmul.f32 %v3090_v41, %v6883_v27  ;;  %v3140_v58 = vmul.f32 %v3139_v56, %v7019_v7 }
 0x36a   : > { %v3176_v19 = vmul.f32 %v3175_v39, %v7054_v10  ;;  %v3104_v54 = vsub.f32 1.0, %v3103_v28  ;;  %v7123_v43 = vmul.f32 0.70710677, %v7094_v9  ;;  %v3598_v4 = vadd.f32 %v7032_v14, %v3485_v53 }
 0x36b   : > { %v3199_v63 = vmul.f32 %v7112_v6, %v7112_v6  ;;  %v7126_v16 = vadd.f32 1.0, %v3140_v58  ;;  %v3165_v1 = vmul.f32 %v3164_v57, %v7054_v10  ;;  %v3884_v27 = vclamps-f32 %v6615_v31, 1.0  ;;  %v7152_v39 = vpop.f32.mrf.mxu2 }
 0x36c   : > { %v3177_v38 = vadd.f32 0.112945676, %v3176_v19  ;;  %v3126_v41 = vadd.f32 0.05243302, %v3125_v62  ;;  %v3392_v17 = vmul.f32 %v3328_v35, %v6315_v47  ;;  %v3239_v48 = vmul.f32 %v7123_v43, %v7123_v43  ;;  %3677 = vst [vmem:[%s6046_s28 + $0x40] sm:$0xff] %v3598_v4  ;;  %v7154_v53 = vpop.f32.mrf.mxu3 }
 0x36d   : > { %v7131_v50 = vmin.f32 %v3199_v63, 16.0  ;;  %vm3068_vm9 = vweird.f32 %v7050_v55  ;;  %vm7137_vm10 = vcmp.eq.f32.partialorder %v3071_v33, 8.507059e+37  ;;  %v3111_v21 = vand.u32 2147483647, %v7037_v20 }
 0x36e   : > { %v3113_v59 = vand.u32 2147483648, %v7037_v20  ;;  %4109 = vrcp.f32 %v7126_v16  ;;  %v3066_v47 = vadd.f32 %v7050_v55, %v3065_v11  ;;  %v3105_v31 = vmul.f32 %v7076_v23, %v3104_v54  ;;  %vm7162_vm12 = vmor %vm3067_vm8, %vm3068_vm9 }
 0x36f   : > { %vm3107_vm11 = vweird.f32 %v7037_v20  ;;  %v3178_v32 = vmul.f32 %v3177_v38, %v7054_v10  ;;  %v3201_v28 = vmul.f32 2.1237322e-06, %v7131_v50  ;;  %v3166_v33 = vadd.f32 0.05243302, %v3165_v1  ;;  %v7602_v1 = vld [vmem:[#allocation21_spill] sm:$0xff] }
 0x370   : > { %v3212_v2 = vmul.f32 3.8918573e-05, %v7131_v50  ;;  %v7150_v56 = vmin.f32 %v3239_v48, 16.0  ;;  %v3329_v57 = vadd.f32 1.0, %v3884_v27  ;;  %v3127_v62 = vmul.f32 %v3126_v41, %v7019_v7  ;;  %3644 = vmatmul.f32.gmra.mxu3 %v3392_v17 }
 0x371   : > { %v3179_v35 = vadd.f32 0.4994258, %v3178_v32  ;;  %v3202_v11 = vadd.f32 0.00028619796, %v3201_v28  ;;  %v3885_v58 = vclamps-f32 %v6623_v45, 1.0  ;;  %v3070_v27 = vsel %vm7162_vm12, %v7050_v55, %v3066_v47 }
 0x372   : > { %v3213_v54 = vadd.f32 0.001143296, %v3212_v2  ;;  %v3241_v63 = vmul.f32 2.1237322e-06, %v7150_v56  ;;  %v3252_v4 = vmul.f32 3.8918573e-05, %v7150_v56  ;;  %v3393_v38 = vmul.f32 %v3329_v57, %v7602_v1 }
 0x373   : > { %vm3108_vm13 = vweird.f32 %v7076_v23  ;;  %v3180_v45 = vmul.f32 %v3179_v35, %v7054_v10  ;;  %v3203_v18 = vmul.f32 %v3202_v11, %v7131_v50  ;;  %v3106_v17 = vadd.f32 %v7076_v23, %v3105_v31 }
 0x374   : > { %v7175_v41 = vpop.eup %4109  ;;  %v3214_v48 = vmul.f32 %v3213_v54, %v7131_v50  ;;  %v3242_v32 = vadd.f32 0.00028619796, %v3241_v63  ;;  %v3253_v28 = vadd.f32 0.001143296, %v3252_v4  ;;  %3534 = vmatmul.f32.gmra.mxu2 %v3393_v38  ;;  %v3128_v2 = vadd.f32 0.18741608, %v3127_v62  ;;  %vm7196_vm14 = vmor %vm3107_vm11, %vm3108_vm13  ;;  %v7205_v4 = vpop.f32.mrf.mxu2 }
 0x375   : > { %v3143_v57 = vmul.f32 %v7175_v41, %v7126_v16  ;;  %v7181_v55 = vadd.f32 1.0, %v3180_v45  ;;  %v3330_v47 = vadd.f32 1.0, %v3885_v58  ;;  %v3167_v35 = vmul.f32 %v3166_v33, %v7054_v10  ;;  %v7207_v38 = vpop.f32.mrf.mxu3 }
 0x376   : > { %v3204_v19 = vadd.f32 0.0036580483, %v3203_v18  ;;  %v3215_v11 = vadd.f32 0.014752088, %v3214_v48  ;;  %v3254_v1 = vmul.f32 %v3253_v28, %v7150_v56  ;;  %v3075_v31 = vsel %vm7137_vm10, %v7108_v51, %v3070_v27 }
 0x377   : > { %4111 = vrcp.f32 %v7181_v55  ;;  %v3243_v62 = vmul.f32 %v3242_v32, %v7150_v56  ;;  %v3488_v54 = vadd.f32 %v7099_v0, %v7059_v61  ;;  %vm7200_vm15 = vcmp.eq.f32.partialorder %v3111_v21, 8.507059e+37 }
 0x378   : > { %v3114_v51 = vor.u32 1.1754944e-38, %v3113_v59  ;;  %v3144_v14 = vsub.f32 1.0, %v3143_v57  ;;  %v3216_v63 = vmul.f32 %v3215_v11, %v7131_v50  ;;  %v3110_v20 = vsel %vm7196_vm14, %v7076_v23, %v3106_v17 }
 0x379   : > { %v3205_v61 = vmul.f32 %v3204_v19, %v7131_v50  ;;  %v3255_v27 = vadd.f32 0.014752088, %v3254_v1  ;;  %v3394_v21 = vmul.f32 %v3330_v47, %v6419_v25  ;;  %v7215_v45 = vmul.f32 %v3075_v31, %v7079_v8 }
 0x37a   : > { %v3129_v59 = vmul.f32 %v3128_v2, %v7019_v7  ;;  %v3168_v18 = vadd.f32 0.18741608, %v3167_v35  ;;  %v3217_v48 = vadd.f32 0.112945676, %v3216_v63  ;;  %v3244_v32 = vadd.f32 0.0036580483, %v3243_v62 }
 0x37b   : > { %v3256_v28 = vmul.f32 %v3255_v27, %v7150_v56  ;;  %3647 = vmatmul.f32.gmra.mxu3 %v3394_v21  ;;  %v3601_v57 = vadd.f32 %v7061_v34, %v3488_v54  ;;  %v3886_v23 = vclamps-f32 %v6764_v52, 1.0  ;;  %v3115_v17 = vsel %vm7200_vm15, %v3114_v51, %v3110_v20 }
 0x37c   : > { %v3145_v25 = vmul.f32 %v7175_v41, %v3144_v14  ;;  %v3218_v8 = vmul.f32 %v3217_v48, %v7131_v50  ;;  %v3887_v47 = vclamps-f32 %v6778_v26, 1.0  ;;  %v3206_v2 = vadd.f32 0.05243302, %v3205_v61  ;;  %v3499_v14 = vpop.f32.mrf.mxu2 }
 0x37d   : > { %v7226_v7 = vpop.eup %4111  ;;  %v3257_v35 = vadd.f32 0.112945676, %v3256_v28  ;;  %3678 = vst [vmem:[%s6046_s28 + $0x48] sm:$0xff] %v3601_v57  ;;  %v3331_v19 = vadd.f32 1.0, %v3886_v23  ;;  %v3491_v34 = vadd.f32 %v7099_v0, %v7103_v24  ;;  %v3130_v11 = vadd.f32 1.1283791, %v3129_v59  ;;  %v7241_v63 = vpop.f32.mrf.mxu3 }
 0x37e   : > { %vm3147_vm0 = vweird.f32 %v7126_v16  ;;  %v3151_v52 = vand.u32 2147483647, %v7126_v16  ;;  %v3183_v1 = vmul.f32 %v7226_v7, %v7181_v55  ;;  %v3169_v31 = vmul.f32 %v3168_v18, %v7054_v10  ;;  %v7607_v24 = vld [vmem:[#allocation17_spill] sm:$0xff]  ;;  %v7608_v18 = vld [vmem:[#allocation22_spill] sm:$0xff] }
 0x37f   : > { %v3219_v26 = vadd.f32 0.4994258, %v3218_v8  ;;  %v3245_v62 = vmul.f32 %v3244_v32, %v7150_v56  ;;  %v3258_v54 = vmul.f32 %v3257_v35, %v7150_v56  ;;  %v3146_v33 = vadd.f32 %v7175_v41, %v3145_v25 }
 0x380   : > { %vm3148_vm1 = vweird.f32 %v7175_v41  ;;  %v3395_v58 = vmul.f32 %v3331_v19, %v7607_v24  ;;  %v3332_v51 = vadd.f32 1.0, %v3887_v47  ;;  %v3207_v20 = vmul.f32 %v3206_v2, %v7131_v50 }
 0x381   : > { %v3220_v10 = vmul.f32 %v3219_v26, %v7131_v50  ;;  %v3259_v61 = vadd.f32 0.4994258, %v3258_v54  ;;  %v3604_v27 = vadd.f32 %v7105_v44, %v3491_v34  ;;  %v3153_v21 = vand.u32 2147483648, %v7126_v16  ;;  %vm7262_vm2 = vmor %vm3147_vm0, %vm3148_vm1 }
 0x382   : > { %v3184_v59 = vsub.f32 1.0, %v3183_v1  ;;  %3537 = vmatmul.f32.gmra.mxu2 %v3395_v58  ;;  %v3396_v48 = vmul.f32 %v3332_v51, %v7608_v18  ;;  %v3888_v32 = vclamps-f32 %v6854_v12, 1.0  ;;  %v3246_v57 = vadd.f32 0.05243302, %v3245_v62 }
 0x383   : > { %v7249_v28 = vadd.f32 1.0, %v3220_v10  ;;  %v3260_v23 = vmul.f32 %v3259_v61, %v7150_v56  ;;  %3679 = vst [vmem:[%s6046_s28 + $0x50] sm:$0xff] %v3604_v27  ;;  %v3889_v25 = vclamps-f32 %v6866_v15, 1.0  ;;  %v7255_v8 = vmul.f32 %v3115_v17, %v7116_v36 }
 0x384   : > { %v3131_v44 = vmul.f32 %v3130_v11, %v6969_v46  ;;  %v3170_v12 = vadd.f32 1.1283791, %v3169_v31  ;;  %3650 = vmatmul.f32.gmra.mxu3 %v3396_v48  ;;  %v3333_v2 = vadd.f32 1.0, %v3888_v32  ;;  %v3150_v15 = vsel %vm7262_vm2, %v7175_v41, %v3146_v33 }
 0x385   : > { %v3208_v35 = vadd.f32 0.18741608, %v3207_v20  ;;  %4113 = vrcp.f32 %v7249_v28  ;;  %v3494_v46 = vadd.f32 %v7099_v0, %v7152_v39  ;;  %v3154_v36 = vor.u32 1.1754944e-38, %v3153_v21  ;;  %v3502_v39 = vpop.f32.mrf.mxu2  ;;  %v3615_v62 = vpop.f32.mrf.mxu3 }
 0x386   : > { %v3185_v16 = vmul.f32 %v7226_v7, %v3184_v59  ;;  %v7273_v17 = vadd.f32 1.0, %v3260_v23  ;;  %v3397_v19 = vmul.f32 %v3333_v2, %v6647_v40  ;;  %vm3152_vm3 = vcmp.eq.f32.partialorder %v3151_v52, 8.507059e+37 }
 0x387   : > { %v3191_v34 = vand.u32 2147483647, %v7181_v55  ;;  %v3247_v11 = vmul.f32 %v3246_v57, %v7150_v56  ;;  %v3334_v1 = vadd.f32 1.0, %v3889_v25  ;;  %v3155_v41 = vsel %vm3152_vm3, %v3154_v36, %v3150_v15 }
 0x388   : > { %v3171_v31 = vmul.f32 %v3170_v12, %v7041_v29  ;;  %v3193_v26 = vand.u32 2147483648, %v7181_v55  ;;  %4115 = vrcp.f32 %v7273_v17  ;;  %vm3188_vm4 = vweird.f32 %v7226_v7 }
 0x389   : > { %v3209_v40 = vmul.f32 %v3208_v35, %v7131_v50  ;;  %v3398_v52 = vmul.f32 %v3334_v1, %v6661_v60  ;;  %v3607_v54 = vadd.f32 %v7154_v53, %v3494_v46  ;;  %v3186_v33 = vadd.f32 %v7226_v7, %v3185_v16 }
 0x38a   : > { %3540 = vmatmul.f32.gmra.mxu2 %v3397_v19  ;;  %v3890_v29 = vclamps-f32 %v7064_v37, 1.0  ;;  %v3891_v24 = vclamps-f32 %v7069_v13, 1.0  ;;  %v3497_v58 = vadd.f32 %v7099_v0, %v7205_v4  ;;  %vm3187_vm5 = vweird.f32 %v7181_v55 }
 0x38b   : > { %v7290_v51 = vpop.eup %4113  ;;  %vm7293_vm6 = vcmp.eq.f32.partialorder %v3191_v34, 8.507059e+37  ;;  %v3248_v60 = vadd.f32 0.18741608, %v3247_v11  ;;  %3680 = vst [vmem:[%s6046_s28 + $0x58] sm:$0xff] %v3607_v54  ;;  %v3500_v53 = vadd.f32 %v7099_v0, %v3499_v14  ;;  %v3194_v20 = vor.u32 1.1754944e-38, %v3193_v26  ;;  %vm7305_vm7 = vmor %vm3187_vm5, %vm3188_vm4 }
 0x38c   : > { %v3223_v37 = vmul.f32 %v7290_v51, %v7249_v28  ;;  %3653 = vmatmul.f32.gmra.mxu3 %v3398_v52  ;;  %v3335_v13 = vadd.f32 1.0, %v3890_v29  ;;  %v3336_v4 = vadd.f32 1.0, %v3891_v24  ;;  %v7301_v10 = vmul.f32 %v3155_v41, %v3131_v44 }
 0x38d   : > { %v3210_v61 = vadd.f32 1.1283791, %v3209_v40  ;;  %v3610_v14 = vadd.f32 %v7207_v38, %v3497_v58  ;;  %v3613_v27 = vadd.f32 %v7241_v63, %v3500_v53  ;;  %v3190_v59 = vsel %vm7305_vm7, %v7226_v7, %v3186_v33  ;;  %v3505_v25 = vpop.f32.mrf.mxu2 }
 0x38e   : > { %v4116_v21 = vpop.eup %4115  ;;  %v3224_v18 = vsub.f32 1.0, %v3223_v37  ;;  %v3399_v48 = vmul.f32 %v3335_v13, %v6835_v30  ;;  %v3892_v32 = vclamps-f32 %v7215_v45, 1.0  ;;  %vm3227_vm8 = vweird.f32 %v7249_v28  ;;  %v3618_v45 = vpop.f32.mrf.mxu3 }
 0x38f   : > { %v3249_v57 = vmul.f32 %v3248_v60, %v7150_v56  ;;  %v3263_v23 = vmul.f32 %v4116_v21, %v7273_v17  ;;  %3681 = vst [vmem:[%s6046_s28 + $0x60] sm:$0xff] %v3610_v14  ;;  %v3893_v38 = vclamps-f32 %v7255_v8, 1.0  ;;  %vm3228_vm9 = vweird.f32 %v7290_v51 }
 0x390   : > { %v3225_v63 = vmul.f32 %v7290_v51, %v3224_v18  ;;  %v3400_v7 = vmul.f32 %v3336_v4, %v6838_v5  ;;  %3682 = vst [vmem:[%s6046_s28 + $0x68] sm:$0xff] %v3613_v27  ;;  %v3503_v30 = vadd.f32 %v7099_v0, %v3502_v39  ;;  %v3195_v44 = vsel %vm7293_vm6, %v3194_v20, %v3190_v59  ;;  %vm7336_vm10 = vmor %vm3227_vm8, %vm3228_vm9 }
 0x391   : > { %v3233_v56 = vand.u32 2147483648, %v7249_v28  ;;  %v3264_v47 = vsub.f32 1.0, %v3263_v23  ;;  %v3506_v12 = vadd.f32 %v7099_v0, %v3505_v25  ;;  %v3231_v2 = vand.u32 2147483647, %v7249_v28  ;;  %v7617_v28 = vld [vmem:[#allocation26_spill] sm:$0xff] }
 0x392   : > { %v3226_v8 = vadd.f32 %v7290_v51, %v3225_v63  ;;  %3543 = vmatmul.f32.gmra.mxu2 %v3399_v48  ;;  %v3337_v5 = vadd.f32 1.0, %v3892_v32  ;;  %v3616_v15 = vadd.f32 %v3615_v62, %v3503_v30  ;;  %vm3268_vm11 = vweird.f32 %v4116_v21 }
 0x393   : > { %v3265_v46 = vmul.f32 %v4116_v21, %v3264_v47  ;;  %v3273_v36 = vand.u32 2147483648, %v7273_v17  ;;  %v3619_v16 = vadd.f32 %v3618_v45, %v3506_v12  ;;  %v3196_v19 = vmul.f32 %v3195_v44, %v3171_v31 }
 0x394   : > { %v3230_v34 = vsel %vm7336_vm10, %v7290_v51, %v3226_v8  ;;  %v3271_v11 = vand.u32 2147483647, %v7273_v17  ;;  %3656 = vmatmul.f32.gmra.mxu3 %v3400_v7  ;;  %v3338_v1 = vadd.f32 1.0, %v3893_v38  ;;  %3683 = vst [vmem:[%s6046_s28 + $0x70] sm:$0xff] %v3616_v15  ;;  %v650_v41 = vmul.f32 0.5, %v7617_v28 }
 0x395   : > { %v3234_v26 = vor.u32 1.1754944e-38, %v3233_v56  ;;  %v3266_v39 = vadd.f32 %v4116_v21, %v3265_v46  ;;  %vm3267_vm12 = vweird.f32 %v7273_v17  ;;  %3684 = vst [vmem:[%s6046_s28 + $0x78] sm:$0xff] %v3619_v16  ;;  %vm3232_vm13 = vcmp.eq.f32.partialorder %v3231_v2, 8.507059e+37  ;;  %v3508_v51 = vpop.f32.mrf.mxu2 }
 0x396   : > { %v3250_v62 = vadd.f32 1.1283791, %v3249_v57  ;;  %vm3269_vm14 = vmor %vm3267_vm12, %vm3268_vm11  ;;  %v3401_v31 = vmul.f32 %v3337_v5, %v7001_v22  ;;  %v3894_v40 = vclamps-f32 %v7301_v10, 1.0  ;;  %v3274_v33 = vor.u32 1.1754944e-38, %v3273_v36  ;;  %v3621_v17 = vpop.f32.mrf.mxu3 }
 0x397   : > { %v3235_v52 = vsel %vm3232_vm13, %v3234_v26, %v3230_v34  ;;  %v3270_v54 = vsel %vm3269_vm14, %v4116_v21, %v3266_v39  ;;  %v3211_v29 = vmul.f32 %v3210_v61, %v7112_v6  ;;  %vm3272_vm15 = vcmp.eq.f32.partialorder %v3271_v11, 8.507059e+37 }
 0x398   : > { %v3402_v24 = vmul.f32 %v3338_v1, %v650_v41  ;;  %v3895_v58 = vclamps-f32 %v3196_v19, 1.0  ;;  %v3275_v50 = vsel %vm3272_vm15, %v3274_v33, %v3270_v54  ;;  %v3509_v60 = vadd.f32 %v7099_v0, %v3508_v51 }
 0x399   : > { %v3236_v53 = vmul.f32 %v3235_v52, %v3211_v29  ;;  %v3251_v20 = vmul.f32 %v3250_v62, %v7123_v43  ;;  %v3339_v22 = vadd.f32 1.0, %v3894_v40  ;;  %v651_v13 = vmul.f32 0.5, %v6955_v42 }
 0x39a   : > { %3546 = vmatmul.f32.gmra.mxu2 %v3401_v31  ;;  %v3622_v37 = vadd.f32 %v3621_v17, %v3509_v60  ;;  %v3340_v6 = vadd.f32 1.0, %v3895_v58  ;;  %v652_v10 = vmul.f32 0.5, %v7022_v49  ;;  %v653_v42 = vmul.f32 0.5, %v7087_v3 }
 0x39b   : > { %v3276_v4 = vmul.f32 %v3275_v50, %v3251_v20  ;;  %v3403_v55 = vmul.f32 %v3339_v22, %v651_v13  ;;  %v3896_v61 = vclamps-f32 %v3236_v53, 1.0  ;;  %v654_v49 = vmul.f32 0.5, %v7094_v9 }
 0x39c   : > { %3659 = vmatmul.f32.gmra.mxu3 %v3402_v24  ;;  %3685 = vst [vmem:[%s6046_s28 + $0x80] sm:$0xff] %v3622_v37  ;;  %v3404_v14 = vmul.f32 %v3340_v6, %v652_v10 }
 0x39d   : > { %v3897_v27 = vclamps-f32 %v3276_v4, 1.0  ;;  %v3511_v21 = vpop.f32.mrf.mxu2  ;;  %v3341_v18 = vadd.f32 1.0, %v3896_v61 }
 0x39e   : > { %v3624_v59 = vpop.f32.mrf.mxu3  ;;  %v3512_v43 = vadd.f32 %v7099_v0, %v3511_v21 }
 0x39f   : > { %v3342_v32 = vadd.f32 1.0, %v3897_v27  ;;  %v3405_v57 = vmul.f32 %v3341_v18, %v653_v42 }
 0x3a0   : > { %v3625_v48 = vadd.f32 %v3624_v59, %v3512_v43 }
 0x3a1   : > { %v3406_v23 = vmul.f32 %v3342_v32, %v654_v49 }
 0x3a2   : > { %3549 = vmatmul.f32.gmra.mxu2 %v3403_v55  ;;  %3686 = vst [vmem:[%s6046_s28 + $0x88] sm:$0xff] %v3625_v48 }
 0x3a4   : > { %3662 = vmatmul.f32.gmra.mxu3 %v3404_v14 }
 0x3a5   : > { %v3514_v38 = vpop.f32.mrf.mxu2 }
 0x3a6   : > { %v3627_v63 = vpop.f32.mrf.mxu3  ;;  %v3515_v7 = vadd.f32 %v7099_v0, %v3514_v38 }
 0x3a8   : > { %v3628_v30 = vadd.f32 %v3627_v63, %v3515_v7 }
 0x3aa   : > { %3552 = vmatmul.f32.gmra.mxu2 %v3405_v57  ;;  %3687 = vst [vmem:[%s6046_s28 + $0x90] sm:$0xff] %v3628_v30 }
 0x3ac   : > { %3665 = vmatmul.f32.gmra.mxu3 %v3406_v23 }
 0x3ad   : > { %v3517_v25 = vpop.f32.mrf.mxu2 }
 0x3ae   : > { %v3630_v3 = vpop.f32.mrf.mxu3  ;;  %v3518_v45 = vadd.f32 %v7099_v0, %v3517_v25 }
 0x3b0   : > { %v3631_v44 = vadd.f32 %v3630_v3, %v3518_v45 }
 0x3b2   : > { %3688 = vst [vmem:[%s6046_s28 + $0x98] sm:$0xff] %v3631_v44 }
 0x3b5   : > { %v3520_v9 = vpop.f32.mrf.mxu2 }
 0x3b6   : > { %v3633_v56 = vpop.f32.mrf.mxu3  ;;  %v3521_v47 = vadd.f32 %v7099_v0, %v3520_v9 }
 0x3b8   : > { %v3634_v12 = vadd.f32 %v3633_v56, %v3521_v47 }
 0x3ba   : > { %3689 = vst [vmem:[%s6046_s28 + $0xa0] sm:$0xff] %v3634_v12 }
 0x3bd   : > { %v3523_v8 = vpop.f32.mrf.mxu2 }
 0x3be   : > { %v3524_v2 = vadd.f32 %v7099_v0, %v3523_v8  ;;  %v3636_v5 = vpop.f32.mrf.mxu3 }
 0x3c0   : > { %v3637_v15 = vadd.f32 %v3636_v5, %v3524_v2 }
 0x3c2   : > { %3690 = vst [vmem:[%s6046_s28 + $0xa8] sm:$0xff] %v3637_v15 }
 0x3cb   : > { %v3526_v35 = vpop.f32.mrf.mxu2 }
 0x3cc   : > { %v3527_v46 = vadd.f32 %v7099_v0, %v3526_v35 }
 0x3d0   : > { %v3639_v36 = vpop.f32.mrf.mxu3 }
 0x3d1   : > { %v3640_v16 = vadd.f32 %v3639_v36, %v3527_v46 }
 0x3d3   : > { %3691 = vst [vmem:[%s6046_s28 + $0xb0] sm:$0xff] %v3640_v16 }
 0x3e3   : > { %v3529_v19 = vpop.f32.mrf.mxu2 }
 0x3e4   : > { %v3530_v34 = vadd.f32 %v7099_v0, %v3529_v19 }
 0x3eb   : > { %v3642_v11 = vpop.f32.mrf.mxu3  ;;  %v3532_v28 = vpop.f32.mrf.mxu2 }
 0x3ec   : > { %v3643_v1 = vadd.f32 %v3642_v11, %v3530_v34  ;;  %v3533_v41 = vadd.f32 %v7099_v0, %v3532_v28 }
 0x3ee   : > { %3692 = vst [vmem:[%s6046_s28 + $0xb8] sm:$0xff] %v3643_v1 }
 0x3f3   : > { %v3645_v26 = vpop.f32.mrf.mxu3 }
 0x3f4   : > { %v3646_v39 = vadd.f32 %v3645_v26, %v3533_v41 }
 0x3f6   : > { %3693 = vst [vmem:[%s6046_s28 + $0xc0] sm:$0xff] %v3646_v39 }
 0x3f7   : > { %v3535_v62 = vpop.f32.mrf.mxu2 }
 0x3f8   : > { %v3536_v31 = vadd.f32 %v7099_v0, %v3535_v62 }
 0x3fe   : > { %v3648_v40 = vpop.f32.mrf.mxu3 }
 0x3ff   : > { %v3649_v52 = vadd.f32 %v3648_v40, %v3536_v31 }
 0x401   : > { %3694 = vst [vmem:[%s6046_s28 + $0xc8] sm:$0xff] %v3649_v52 }
 0x405   : > { %v3538_v54 = vpop.f32.mrf.mxu2 }
 0x406   : > { %v3539_v33 = vadd.f32 %v7099_v0, %v3538_v54 }
 0x407   : > { %v3651_v29 = vpop.f32.mrf.mxu3 }
 0x408   : > { %v3652_v24 = vadd.f32 %v3651_v29, %v3539_v33 }
 0x40a   : > { %3695 = vst [vmem:[%s6046_s28 + $0xd0] sm:$0xff] %v3652_v24 }
 0x40d   : > { %v3541_v58 = vpop.f32.mrf.mxu2 }
 0x40e   : > { %v3542_v51 = vadd.f32 %v7099_v0, %v3541_v58 }
 0x40f   : > { %v3654_v17 = vpop.f32.mrf.mxu3 }
 0x410   : > { %v3655_v50 = vadd.f32 %v3654_v17, %v3542_v51 }
 0x412   : > { %3696 = vst [vmem:[%s6046_s28 + $0xd8] sm:$0xff] %v3655_v50 }
 0x415   : > { %v3544_v60 = vpop.f32.mrf.mxu2 }
 0x416   : > { %v3545_v53 = vadd.f32 %v7099_v0, %v3544_v60 }
 0x417   : > { %v3657_v20 = vpop.f32.mrf.mxu3 }
 0x418   : > { %v3658_v22 = vadd.f32 %v3657_v20, %v3545_v53 }
 0x41a   : > { %3697 = vst [vmem:[%s6046_s28 + $0xe0] sm:$0xff] %v3658_v22 }
 0x41d   : > { %v3547_v37 = vpop.f32.mrf.mxu2 }
 0x41e   : > { %v3548_v13 = vadd.f32 %v7099_v0, %v3547_v37 }
 0x41f   : > { %v3660_v4 = vpop.f32.mrf.mxu3 }
 0x420   : > { %v3661_v6 = vadd.f32 %v3660_v4, %v3548_v13 }
 0x422   : > { %3698 = vst [vmem:[%s6046_s28 + $0xe8] sm:$0xff] %v3661_v6 }
 0x425   : > { %v3550_v10 = vpop.f32.mrf.mxu2 }
 0x426   : > { %v3551_v55 = vadd.f32 %v7099_v0, %v3550_v10 }
 0x427   : > { %v3663_v61 = vpop.f32.mrf.mxu3 }
 0x428   : > { %v3664_v14 = vadd.f32 %v3663_v61, %v3551_v55 }
 0x42a   : > { %3699 = vst [vmem:[%s6046_s28 + $0xf0] sm:$0xff] %v3664_v14 }
 0x42d   : > { %v3553_v27 = vpop.f32.mrf.mxu2 }
 0x42e   : > { %v3554_v21 = vadd.f32 %v7099_v0, %v3553_v27 }
 0x42f   : > { %v3666_v59 = vpop.f32.mrf.mxu3 }
 0x430   : > { %v3667_v43 = vadd.f32 %v3666_v59, %v3554_v21 }
 0x432   : > { %3700 = vst [vmem:[%s6046_s28 + $0xf8] sm:$0xff] %v3667_v43 }
 0x433   : > { %4266 = shalt.err (!%p4263_p10)
}
 0x434   : > { %s4322_s17 = smov 128   ;;  %s4323_s28 = smov 8  }
 0x435   : > { %3919 = dma.vmem_to_hbm [thread:$0]  (%p4439_p3), %s3715_s7, 4096, %s3717_s27, %s3702_s8, %s4322_s17, %s4322_s17, %s4323_s28  }
 0x436 PF: > { %s3731_s6 = sand.u32 1, %s4301_s18   ;;  %p7618_p12 = scmp.ge.s32.totalorder %s4313_s21, 2 }
 0x437   : > { %s3732_s13 = scalar_lea.sflag [#allocation4], %s3731_s6 }
 0x438   : > { %p3936_p13 = pnand %p7618_p12, %p4389_p6 }
 0x43a   : > { %p3937_p0 = pneg %p3936_p13 }
 0x43c   : > { %4296 = dma.done.wait (%p3937_p0), %s3732_s13, 4096  }
 0x43d   : > { %4298 = vsyncadd (%p3937_p0), %s3732_s13, 4294963200  ;;  %p20_p5 = scmp.ge.s32.totalorder %s4426_s30, 4   ;;  %s7619_s18 = smov %s4305_s19 }
 0x43e   : > { %s7620_s19 = smov %s4309_s20  ;;  %s7621_s20 = smov %s4435_s9 }
 0x43f   : > { %s7622_s21 = smov %s4426_s30  ;;  %22 = sbr.rel (!%p20_p5) target bundleno = 7 (0x7), region = 97 }
 0x444   :  { %3738 = vsyncpa [#allocation3], 1 }
 0x445   :  { %3740 = vsyncpa [#allocation3 + $0x1], 1 }
 0x446   :  { %3741 = vsyncpa [#allocation6], 1 }
 0x447   :  { %3742 = vsyncpa [#allocation9], 1 }
 0x448   :  { %3743 = vsyncpa [#allocation4], 1 }
 0x449   :  { %3745 = vsyncpa [#allocation4 + $0x1], 1 }

</bundles_post_ra>
